<compile_context>
chip_gen: v5e
topology: v5e:2x2
jax: 0.10.0
libtpu: 0.0.40
codegen_flags: <defaults>
</compile_context>

<pallas_src>
import functools
import math

import jax
import jax.numpy as jnp
from jax.experimental import pallas as pl
from jax.experimental.pallas import tpu as pltpu

# ----------------------- scaled-down ViT config -----------------------
IMG = 32          # image spatial size            (224 in the real model)
PATCH = 16        # patch size                    (16)
IN_CH = 3         # input channels                (3)
DIM = 64          # embed dim                     (768)
DEPTH = 2         # transformer blocks            (12)
HEADS = 4         # attention heads               (12)
MLP = 4 * DIM     # MLP hidden dim                (3072)
PROJ = 32         # image_projection output dim   (512)
LN_EPS = 1e-6     # timm ViT LayerNorm eps

NUM_PATCHES = (IMG // PATCH) ** 2
SEQ = NUM_PATCHES + 1        # +1 cls token
HEAD_DIM = DIM // HEADS

MM_DTYPE = jnp.bfloat16      # MXU-native matmul input dtype; accumulation stays f32


# --------------------------- in-kernel helpers ---------------------------
def _mm(a, w):
    """Matmul with bf16 operands, f32 accumulation (weights are already bf16)."""
    return jnp.dot(a.astype(MM_DTYPE), w.astype(MM_DTYPE),
                   preferred_element_type=jnp.float32)


def _mm_t(a, b):
    """a:(M,K), b:(N,K) -> (M,N); contract last dims directly (no K transpose)."""
    return jax.lax.dot_general(a.astype(MM_DTYPE), b.astype(MM_DTYPE),
                               (((1,), (1,)), ((), ())),
                               preferred_element_type=jnp.float32)


def _layernorm(x, g, b, eps=LN_EPS):
    mu = jnp.mean(x, axis=-1, keepdims=True)
    var = jnp.mean(jnp.square(x - mu), axis=-1, keepdims=True)
    return (x - mu) * jax.lax.rsqrt(var + eps) * g + b


def _gelu_tanh(x):
    # TODO(synk): timm uses exact erf-GELU; tanh approximation used (EUP-friendly).
    c = math.sqrt(2.0 / math.pi)
    return 0.5 * x * (1.0 + jnp.tanh(c * (x + 0.044715 * x * x * x)))


# ------------------------------- fused kernel ---------------------------------
def _vit_kernel(patches_ref, pw_ref, pb_ref, cls_ref, pos_ref,
                ln1_g, ln1_b, qkv_w, qkv_b, proj_w, proj_b,
                ln2_g, ln2_b, fc1_w, fc1_b, fc2_w, fc2_b,
                norm_g, norm_b, img_proj, o_ref, *, batch, scale):
    """Entire ViT forward for the whole batch, fully resident in VMEM."""
    # ---- 1) patch embed + cls token + positional embedding -> (B*SEQ, DIM) ----
    emb = _mm(patches_ref[...], pw_ref[...]) + pb_ref[...]        # (B*NP, DIM) f32
    pos = pos_ref[...]                                            # (SEQ, DIM)  f32
    cls_row = cls_ref[...] + pos[0:1, :]                          # (1, DIM)
    pos_patch = pos[1:, :]                                        # (NP, DIM)
    rows = []
    for b in range(batch):
        rows.append(cls_row)
        rows.append(emb[b * NUM_PATCHES:(b + 1) * NUM_PATCHES] + pos_patch)
    x = jnp.concatenate(rows, axis=0)                             # (B*SEQ, DIM) f32

    # ---- 2) DEPTH transformer blocks (batch folded into the M dimension) ----
    for d in range(DEPTH):
        # -- attention: x = x + proj(MHA(LN1(x))) --
        h = _layernorm(x, ln1_g[d], ln1_b[d])
        qkv = _mm(h, qkv_w[d]) + qkv_b[d]                         # (B*SEQ, 3*DIM)

        # Scores for every (batch, head), stacked on the sublane axis so the
        # softmax is ONE max/exp/sum pass over a (B*HEADS*SEQ, SEQ) tile.
        s_rows = []
        for b in range(batch):
            r0 = b * SEQ
            for hd in range(HEADS):
                c0 = hd * HEAD_DIM
                q = qkv[r0:r0 + SEQ, c0:c0 + HEAD_DIM]
                k = qkv[r0:r0 + SEQ, DIM + c0:DIM + c0 + HEAD_DIM]
                s_rows.append(_mm_t(q, k) * scale)                # (SEQ, SEQ)
        s = jnp.concatenate(s_rows, axis=0)                       # (B*HEADS*SEQ, SEQ)
        s = s - jnp.max(s, axis=-1, keepdims=True)
        p = jnp.exp(s)
        p = p / jnp.sum(p, axis=-1, keepdims=True)                # exact softmax

        # PV matmuls; each head is folded straight into the output projection
        # (no narrow concatenation of head outputs).
        pw_d = proj_w[d]
        y = x + proj_b[d]                                         # residual + bias
        out_rows = []
        for b in range(batch):
            r0 = b * SEQ
            acc = y[r0:r0 + SEQ]
            for hd in range(HEADS):
                c0 = hd * HEAD_DIM
                v = qkv[r0:r0 + SEQ, 2 * DIM + c0:2 * DIM + c0 + HEAD_DIM]
                p_bh = p[(b * HEADS + hd) * SEQ:(b * HEADS + hd + 1) * SEQ]
                o_h = _mm(p_bh, v)                                # (SEQ, HEAD_DIM)
                acc = acc + _mm(o_h, pw_d[c0:c0 + HEAD_DIM, :])
            out_rows.append(acc)
        x = jnp.concatenate(out_rows, axis=0)                     # (B*SEQ, DIM)

        # -- MLP: x = x + fc2(gelu(fc1(LN2(x)))) -- (all rows in one matmul)
        h2 = _layernorm(x, ln2_g[d], ln2_b[d])
        h2 = _gelu_tanh(_mm(h2, fc1_w[d]) + fc1_b[d])             # (B*SEQ, MLP)
        x = x + _mm(h2, fc2_w[d]) + fc2_b[d]

    # ---- 3) final LayerNorm of cls rows + image_projection (one slab) ----
    cls_rows = jnp.concatenate([x[b * SEQ:b * SEQ + 1] for b in range(batch)],
                               axis=0)                            # (B, DIM)
    hcls = _layernorm(cls_rows, norm_g[...], norm_b[...])
    o_ref[...] = _mm(hcls, img_proj[...]).astype(o_ref.dtype)     # (B, PROJ)


# ------------------------------- wrapper ---------------------------------
def _stack_blocks(blocks, name, dtype=None):
    arr = jnp.stack([blk[name] for blk in blocks], axis=0)
    return arr.astype(dtype) if dtype is not None else arr


def image_encoder_ulip_forward(params, image):
    """image: (B, C, H, W) float32 (NCHW, as in the PyTorch module)."""
    b, c, h, w = image.shape
    nph, npw = h // PATCH, w // PATCH

    # -- patchify (free glue): NCHW -> (B*num_patches, C*P*P), matching Conv2d k=s=16
    patches = image.reshape(b, c, nph, PATCH, npw, PATCH)
    patches = patches.transpose(0, 2, 4, 1, 3, 5).reshape(
        b * nph * npw, c * PATCH * PATCH)

    blocks = params["blocks"]
    # Matmul weights pre-cast to bf16 ONCE in the wrapper (halves weight DMA /
    # VMEM and removes in-kernel re-casts); LN params / biases stay f32.
    args = [
        patches,
        params["patch_w"].astype(MM_DTYPE), params["patch_b"],
        params["cls_token"], params["pos_embed"],
        _stack_blocks(blocks, "ln1_g"), _stack_blocks(blocks, "ln1_b"),
        _stack_blocks(blocks, "qkv_w", MM_DTYPE), _stack_blocks(blocks, "qkv_b"),
        _stack_blocks(blocks, "proj_w", MM_DTYPE), _stack_blocks(blocks, "proj_b"),
        _stack_blocks(blocks, "ln2_g"), _stack_blocks(blocks, "ln2_b"),
        _stack_blocks(blocks, "fc1_w", MM_DTYPE), _stack_blocks(blocks, "fc1_b"),
        _stack_blocks(blocks, "fc2_w", MM_DTYPE), _stack_blocks(blocks, "fc2_b"),
        params["norm_g"], params["norm_b"],
        params["image_projection"].astype(MM_DTYPE),
    ]
    scale = 1.0 / math.sqrt(HEAD_DIM)

    # Single fused pallas_call: every input is mapped whole into VMEM (no grid),
    # so there is exactly one launch and zero intermediate HBM traffic.
    return pl.pallas_call(
        functools.partial(_vit_kernel, batch=b, scale=scale),
        out_shape=jax.ShapeDtypeStruct((b, PROJ), jnp.float32),
        compiler_params=pltpu.CompilerParams(vmem_limit_bytes=32 * 1024 * 1024),
    )(*args)


# ------------------------------ parameters --------------------------------
def init_params(key):
    def nrm(k, shape, std=0.02):
        return (std * jax.random.normal(k, shape)).astype(jnp.float32)

    keys = iter(jax.random.split(key, 8 + DEPTH * 6))
    params = {
        "patch_w": nrm(next(keys), (IN_CH * PATCH * PATCH, DIM)),
        "patch_b": jnp.zeros((1, DIM), jnp.float32),
        "cls_token": nrm(next(keys), (1, DIM)),
        "pos_embed": nrm(next(keys), (SEQ, DIM)),
        "norm_g": jnp.ones((1, DIM), jnp.float32),
        "norm_b": jnp.zeros((1, DIM), jnp.float32),
        "image_projection": nrm(next(keys), (DIM, PROJ)),
        "blocks": [],
    }
    for _ in range(DEPTH):
        params["blocks"].append({
            "ln1_g": jnp.ones((1, DIM), jnp.float32),
            "ln1_b": jnp.zeros((1, DIM), jnp.float32),
            "qkv_w": nrm(next(keys), (DIM, 3 * DIM)),
            "qkv_b": jnp.zeros((1, 3 * DIM), jnp.float32),
            "proj_w": nrm(next(keys), (DIM, DIM)),
            "proj_b": jnp.zeros((1, DIM), jnp.float32),
            "ln2_g": jnp.ones((1, DIM), jnp.float32),
            "ln2_b": jnp.zeros((1, DIM), jnp.float32),
            "fc1_w": nrm(next(keys), (DIM, MLP)),
            "fc1_b": jnp.zeros((1, MLP), jnp.float32),
            "fc2_w": nrm(next(keys), (MLP, DIM)),
            "fc2_b": jnp.zeros((1, DIM), jnp.float32),
        })
    return params


# --------------------------------- main -------------------------------------
if __name__ == "__main__":
    key = jax.random.PRNGKey(0)
    k_params, k_img = jax.random.split(key)
    params = init_params(k_params)
    image = jax.random.normal(k_img, (2, IN_CH, IMG, IMG), dtype=jnp.float32)

    out = jax.jit(image_encoder_ulip_forward)(params, image)
    out = jax.block_until_ready(out)
    assert out.shape == (2, PROJ) and out.dtype == jnp.float32
    print("KERNEL_OK")
</pallas_src>

<mosaic_0001>
module attributes {stable_mosaic.version = 11 : i64} {
  func.func @_vit_kernel(%arg0: memref<8x768xf32, #tpu.memory_space<vmem>>, %arg1: memref<768x64xbf16, #tpu.memory_space<vmem>>, %arg2: memref<1x64xf32, #tpu.memory_space<vmem>>, %arg3: memref<1x64xf32, #tpu.memory_space<vmem>>, %arg4: memref<5x64xf32, #tpu.memory_space<vmem>>, %arg5: memref<2x1x64xf32, #tpu.memory_space<vmem>>, %arg6: memref<2x1x64xf32, #tpu.memory_space<vmem>>, %arg7: memref<2x64x192xbf16, #tpu.memory_space<vmem>>, %arg8: memref<2x1x192xf32, #tpu.memory_space<vmem>>, %arg9: memref<2x64x64xbf16, #tpu.memory_space<vmem>>, %arg10: memref<2x1x64xf32, #tpu.memory_space<vmem>>, %arg11: memref<2x1x64xf32, #tpu.memory_space<vmem>>, %arg12: memref<2x1x64xf32, #tpu.memory_space<vmem>>, %arg13: memref<2x64x256xbf16, #tpu.memory_space<vmem>>, %arg14: memref<2x1x256xf32, #tpu.memory_space<vmem>>, %arg15: memref<2x256x64xbf16, #tpu.memory_space<vmem>>, %arg16: memref<2x1x64xf32, #tpu.memory_space<vmem>>, %arg17: memref<1x64xf32, #tpu.memory_space<vmem>>, %arg18: memref<1x64xf32, #tpu.memory_space<vmem>>, %arg19: memref<64x32xbf16, #tpu.memory_space<vmem>>, %arg20: memref<2x32xf32, #tpu.memory_space<vmem>>) attributes {dimension_semantics = [], scalar_prefetch = 0 : i64, scratch_operands = 0 : i64, tpu.core_type = #tpu.core_type<tc>} {
    %c0 = arith.constant 0 : index
    %c0_0 = arith.constant 0 : index
    %0 = vector.load %arg0[%c0, %c0_0] : memref<8x768xf32, #tpu.memory_space<vmem>>, vector<8x768xf32>
    %c0_1 = arith.constant 0 : index
    %c0_2 = arith.constant 0 : index
    %1 = vector.load %arg1[%c0_1, %c0_2] : memref<768x64xbf16, #tpu.memory_space<vmem>>, vector<768x64xbf16>
    %2 = arith.truncf %0 : vector<8x768xf32> to vector<8x768xbf16>
    %cst = arith.constant dense<0.000000e+00> : vector<8x64xf32>
    %3 = tpu.matmul %2, %1, %cst {dimension_numbers = #tpu.dot_dimension_numbers<[1], [0], [0], [1], [0, 0, 1, 1], [], []>} : vector<8x768xbf16>, vector<768x64xbf16>, vector<8x64xf32> -> vector<8x64xf32>
    %c0_3 = arith.constant 0 : index
    %c0_4 = arith.constant 0 : index
    %4 = vector.load %arg2[%c0_3, %c0_4] : memref<1x64xf32, #tpu.memory_space<vmem>>, vector<1x64xf32>
    %5 = vector.broadcast %4 : vector<1x64xf32> to vector<8x64xf32>
    %6 = arith.addf %3, %5 : vector<8x64xf32>
    %c0_5 = arith.constant 0 : index
    %c0_6 = arith.constant 0 : index
    %7 = vector.load %arg4[%c0_5, %c0_6] : memref<5x64xf32, #tpu.memory_space<vmem>>, vector<5x64xf32>
    %c0_7 = arith.constant 0 : index
    %c0_8 = arith.constant 0 : index
    %8 = vector.load %arg3[%c0_7, %c0_8] : memref<1x64xf32, #tpu.memory_space<vmem>>, vector<1x64xf32>
    %9 = vector.extract_strided_slice %7 {offsets = [0, 0], sizes = [1, 64], strides = [1, 1]} : vector<5x64xf32> to vector<1x64xf32>
    %10 = arith.addf %8, %9 : vector<1x64xf32>
    %11 = vector.extract_strided_slice %7 {offsets = [1, 0], sizes = [4, 64], strides = [1, 1]} : vector<5x64xf32> to vector<4x64xf32>
    %12 = vector.extract_strided_slice %6 {offsets = [0, 0], sizes = [4, 64], strides = [1, 1]} : vector<8x64xf32> to vector<4x64xf32>
    %13 = arith.addf %12, %11 : vector<4x64xf32>
    %14 = vector.extract_strided_slice %6 {offsets = [4, 0], sizes = [4, 64], strides = [1, 1]} : vector<8x64xf32> to vector<4x64xf32>
    %15 = arith.addf %14, %11 : vector<4x64xf32>
    %16 = tpu.concatenate %10, %13, %10, %15 in 0 : vector<1x64xf32>, vector<4x64xf32>, vector<1x64xf32>, vector<4x64xf32> -> vector<10x64xf32>
    %c0_9 = arith.constant 0 : index
    %c0_10 = arith.constant 0 : index
    %c0_11 = arith.constant 0 : index
    %17 = vector.load %arg5[%c0_9, %c0_10, %c0_11] : memref<2x1x64xf32, #tpu.memory_space<vmem>>, vector<1x1x64xf32>
    %18 = vector.shape_cast %17 : vector<1x1x64xf32> to vector<1x64xf32>
    %c0_12 = arith.constant 0 : index
    %c0_13 = arith.constant 0 : index
    %c0_14 = arith.constant 0 : index
    %19 = vector.load %arg6[%c0_12, %c0_13, %c0_14] : memref<2x1x64xf32, #tpu.memory_space<vmem>>, vector<1x1x64xf32>
    %20 = vector.shape_cast %19 : vector<1x1x64xf32> to vector<1x64xf32>
    %cst_15 = arith.constant dense<0.000000e+00> : vector<10xf32>
    %21 = vector.multi_reduction <add>, %16, %cst_15 [1] : vector<10x64xf32> to vector<10xf32>
    %22 = vector.shape_cast %21 : vector<10xf32> to vector<10x1xf32>
    %cst_16 = arith.constant 6.400000e+01 : f32
    %23 = vector.broadcast %cst_16 : f32 to vector<10x1xf32>
    %24 = arith.divf %22, %23 : vector<10x1xf32>
    %25 = vector.broadcast %24 : vector<10x1xf32> to vector<10x64xf32>
    %26 = arith.subf %16, %25 : vector<10x64xf32>
    %27 = arith.mulf %26, %26 : vector<10x64xf32>
    %cst_17 = arith.constant dense<0.000000e+00> : vector<10xf32>
    %28 = vector.multi_reduction <add>, %27, %cst_17 [1] : vector<10x64xf32> to vector<10xf32>
    %29 = vector.shape_cast %28 : vector<10xf32> to vector<10x1xf32>
    %cst_18 = arith.constant 6.400000e+01 : f32
    %30 = vector.broadcast %cst_18 : f32 to vector<10x1xf32>
    %31 = arith.divf %29, %30 : vector<10x1xf32>
    %32 = vector.broadcast %24 : vector<10x1xf32> to vector<10x64xf32>
    %33 = arith.subf %16, %32 : vector<10x64xf32>
    %cst_19 = arith.constant 9.99999997E-7 : f32
    %34 = vector.broadcast %cst_19 : f32 to vector<10x1xf32>
    %35 = arith.addf %31, %34 : vector<10x1xf32>
    %36 = math.rsqrt %35 : vector<10x1xf32>
    %37 = vector.broadcast %36 : vector<10x1xf32> to vector<10x64xf32>
    %38 = arith.mulf %33, %37 : vector<10x64xf32>
    %39 = vector.broadcast %18 : vector<1x64xf32> to vector<10x64xf32>
    %40 = arith.mulf %38, %39 : vector<10x64xf32>
    %41 = vector.broadcast %20 : vector<1x64xf32> to vector<10x64xf32>
    %42 = arith.addf %40, %41 : vector<10x64xf32>
    %c0_20 = arith.constant 0 : index
    %c0_21 = arith.constant 0 : index
    %c0_22 = arith.constant 0 : index
    %43 = vector.load %arg7[%c0_20, %c0_21, %c0_22] : memref<2x64x192xbf16, #tpu.memory_space<vmem>>, vector<1x64x192xbf16>
    %44 = vector.shape_cast %43 : vector<1x64x192xbf16> to vector<64x192xbf16>
    %45 = arith.truncf %42 : vector<10x64xf32> to vector<10x64xbf16>
    %cst_23 = arith.constant dense<0.000000e+00> : vector<10x192xf32>
    %46 = tpu.matmul %45, %44, %cst_23 {dimension_numbers = #tpu.dot_dimension_numbers<[1], [0], [0], [1], [0, 0, 1, 1], [], []>} : vector<10x64xbf16>, vector<64x192xbf16>, vector<10x192xf32> -> vector<10x192xf32>
    %c0_24 = arith.constant 0 : index
    %c0_25 = arith.constant 0 : index
    %c0_26 = arith.constant 0 : index
    %47 = vector.load %arg8[%c0_24, %c0_25, %c0_26] : memref<2x1x192xf32, #tpu.memory_space<vmem>>, vector<1x1x192xf32>
    %48 = vector.shape_cast %47 : vector<1x1x192xf32> to vector<1x192xf32>
    %49 = vector.broadcast %48 : vector<1x192xf32> to vector<10x192xf32>
    %50 = arith.addf %46, %49 : vector<10x192xf32>
    %51 = vector.extract_strided_slice %50 {offsets = [0, 0], sizes = [5, 16], strides = [1, 1]} : vector<10x192xf32> to vector<5x16xf32>
    %52 = vector.extract_strided_slice %50 {offsets = [0, 64], sizes = [5, 16], strides = [1, 1]} : vector<10x192xf32> to vector<5x16xf32>
    %53 = arith.truncf %51 : vector<5x16xf32> to vector<5x16xbf16>
    %54 = arith.truncf %52 : vector<5x16xf32> to vector<5x16xbf16>
    %cst_27 = arith.constant dense<0.000000e+00> : vector<5x5xf32>
    %55 = tpu.matmul %53, %54, %cst_27 {dimension_numbers = #tpu.dot_dimension_numbers<[1], [1], [0], [0], [0, 0, 1, 0], [], []>} : vector<5x16xbf16>, vector<5x16xbf16>, vector<5x5xf32> -> vector<5x5xf32>
    %cst_28 = arith.constant 2.500000e-01 : f32
    %56 = vector.broadcast %cst_28 : f32 to vector<5x5xf32>
    %57 = arith.mulf %55, %56 : vector<5x5xf32>
    %58 = vector.extract_strided_slice %50 {offsets = [0, 16], sizes = [5, 16], strides = [1, 1]} : vector<10x192xf32> to vector<5x16xf32>
    %59 = vector.extract_strided_slice %50 {offsets = [0, 80], sizes = [5, 16], strides = [1, 1]} : vector<10x192xf32> to vector<5x16xf32>
    %60 = arith.truncf %58 : vector<5x16xf32> to vector<5x16xbf16>
    %61 = arith.truncf %59 : vector<5x16xf32> to vector<5x16xbf16>
    %cst_29 = arith.constant dense<0.000000e+00> : vector<5x5xf32>
    %62 = tpu.matmul %60, %61, %cst_29 {dimension_numbers = #tpu.dot_dimension_numbers<[1], [1], [0], [0], [0, 0, 1, 0], [], []>} : vector<5x16xbf16>, vector<5x16xbf16>, vector<5x5xf32> -> vector<5x5xf32>
    %cst_30 = arith.constant 2.500000e-01 : f32
    %63 = vector.broadcast %cst_30 : f32 to vector<5x5xf32>
    %64 = arith.mulf %62, %63 : vector<5x5xf32>
    %65 = vector.extract_strided_slice %50 {offsets = [0, 32], sizes = [5, 16], strides = [1, 1]} : vector<10x192xf32> to vector<5x16xf32>
    %66 = vector.extract_strided_slice %50 {offsets = [0, 96], sizes = [5, 16], strides = [1, 1]} : vector<10x192xf32> to vector<5x16xf32>
    %67 = arith.truncf %65 : vector<5x16xf32> to vector<5x16xbf16>
    %68 = arith.truncf %66 : vector<5x16xf32> to vector<5x16xbf16>
    %cst_31 = arith.constant dense<0.000000e+00> : vector<5x5xf32>
    %69 = tpu.matmul %67, %68, %cst_31 {dimension_numbers = #tpu.dot_dimension_numbers<[1], [1], [0], [0], [0, 0, 1, 0], [], []>} : vector<5x16xbf16>, vector<5x16xbf16>, vector<5x5xf32> -> vector<5x5xf32>
    %cst_32 = arith.constant 2.500000e-01 : f32
    %70 = vector.broadcast %cst_32 : f32 to vector<5x5xf32>
    %71 = arith.mulf %69, %70 : vector<5x5xf32>
    %72 = vector.extract_strided_slice %50 {offsets = [0, 48], sizes = [5, 16], strides = [1, 1]} : vector<10x192xf32> to vector<5x16xf32>
    %73 = vector.extract_strided_slice %50 {offsets = [0, 112], sizes = [5, 16], strides = [1, 1]} : vector<10x192xf32> to vector<5x16xf32>
    %74 = arith.truncf %72 : vector<5x16xf32> to vector<5x16xbf16>
    %75 = arith.truncf %73 : vector<5x16xf32> to vector<5x16xbf16>
    %cst_33 = arith.constant dense<0.000000e+00> : vector<5x5xf32>
    %76 = tpu.matmul %74, %75, %cst_33 {dimension_numbers = #tpu.dot_dimension_numbers<[1], [1], [0], [0], [0, 0, 1, 0], [], []>} : vector<5x16xbf16>, vector<5x16xbf16>, vector<5x5xf32> -> vector<5x5xf32>
    %cst_34 = arith.constant 2.500000e-01 : f32
    %77 = vector.broadcast %cst_34 : f32 to vector<5x5xf32>
    %78 = arith.mulf %76, %77 : vector<5x5xf32>
    %79 = vector.extract_strided_slice %50 {offsets = [5, 0], sizes = [5, 16], strides = [1, 1]} : vector<10x192xf32> to vector<5x16xf32>
    %80 = vector.extract_strided_slice %50 {offsets = [5, 64], sizes = [5, 16], strides = [1, 1]} : vector<10x192xf32> to vector<5x16xf32>
    %81 = arith.truncf %79 : vector<5x16xf32> to vector<5x16xbf16>
    %82 = arith.truncf %80 : vector<5x16xf32> to vector<5x16xbf16>
    %cst_35 = arith.constant dense<0.000000e+00> : vector<5x5xf32>
    %83 = tpu.matmul %81, %82, %cst_35 {dimension_numbers = #tpu.dot_dimension_numbers<[1], [1], [0], [0], [0, 0, 1, 0], [], []>} : vector<5x16xbf16>, vector<5x16xbf16>, vector<5x5xf32> -> vector<5x5xf32>
    %cst_36 = arith.constant 2.500000e-01 : f32
    %84 = vector.broadcast %cst_36 : f32 to vector<5x5xf32>
    %85 = arith.mulf %83, %84 : vector<5x5xf32>
    %86 = vector.extract_strided_slice %50 {offsets = [5, 16], sizes = [5, 16], strides = [1, 1]} : vector<10x192xf32> to vector<5x16xf32>
    %87 = vector.extract_strided_slice %50 {offsets = [5, 80], sizes = [5, 16], strides = [1, 1]} : vector<10x192xf32> to vector<5x16xf32>
    %88 = arith.truncf %86 : vector<5x16xf32> to vector<5x16xbf16>
    %89 = arith.truncf %87 : vector<5x16xf32> to vector<5x16xbf16>
    %cst_37 = arith.constant dense<0.000000e+00> : vector<5x5xf32>
    %90 = tpu.matmul %88, %89, %cst_37 {dimension_numbers = #tpu.dot_dimension_numbers<[1], [1], [0], [0], [0, 0, 1, 0], [], []>} : vector<5x16xbf16>, vector<5x16xbf16>, vector<5x5xf32> -> vector<5x5xf32>
    %cst_38 = arith.constant 2.500000e-01 : f32
    %91 = vector.broadcast %cst_38 : f32 to vector<5x5xf32>
    %92 = arith.mulf %90, %91 : vector<5x5xf32>
    %93 = vector.extract_strided_slice %50 {offsets = [5, 32], sizes = [5, 16], strides = [1, 1]} : vector<10x192xf32> to vector<5x16xf32>
    %94 = vector.extract_strided_slice %50 {offsets = [5, 96], sizes = [5, 16], strides = [1, 1]} : vector<10x192xf32> to vector<5x16xf32>
    %95 = arith.truncf %93 : vector<5x16xf32> to vector<5x16xbf16>
    %96 = arith.truncf %94 : vector<5x16xf32> to vector<5x16xbf16>
    %cst_39 = arith.constant dense<0.000000e+00> : vector<5x5xf32>
    %97 = tpu.matmul %95, %96, %cst_39 {dimension_numbers = #tpu.dot_dimension_numbers<[1], [1], [0], [0], [0, 0, 1, 0], [], []>} : vector<5x16xbf16>, vector<5x16xbf16>, vector<5x5xf32> -> vector<5x5xf32>
    %cst_40 = arith.constant 2.500000e-01 : f32
    %98 = vector.broadcast %cst_40 : f32 to vector<5x5xf32>
    %99 = arith.mulf %97, %98 : vector<5x5xf32>
    %100 = vector.extract_strided_slice %50 {offsets = [5, 48], sizes = [5, 16], strides = [1, 1]} : vector<10x192xf32> to vector<5x16xf32>
    %101 = vector.extract_strided_slice %50 {offsets = [5, 112], sizes = [5, 16], strides = [1, 1]} : vector<10x192xf32> to vector<5x16xf32>
    %102 = arith.truncf %100 : vector<5x16xf32> to vector<5x16xbf16>
    %103 = arith.truncf %101 : vector<5x16xf32> to vector<5x16xbf16>
    %cst_41 = arith.constant dense<0.000000e+00> : vector<5x5xf32>
    %104 = tpu.matmul %102, %103, %cst_41 {dimension_numbers = #tpu.dot_dimension_numbers<[1], [1], [0], [0], [0, 0, 1, 0], [], []>} : vector<5x16xbf16>, vector<5x16xbf16>, vector<5x5xf32> -> vector<5x5xf32>
    %cst_42 = arith.constant 2.500000e-01 : f32
    %105 = vector.broadcast %cst_42 : f32 to vector<5x5xf32>
    %106 = arith.mulf %104, %105 : vector<5x5xf32>
    %107 = tpu.concatenate %57, %64, %71, %78, %85, %92, %99, %106 in 0 : vector<5x5xf32>, vector<5x5xf32>, vector<5x5xf32>, vector<5x5xf32>, vector<5x5xf32>, vector<5x5xf32>, vector<5x5xf32>, vector<5x5xf32> -> vector<40x5xf32>
    %cst_43 = arith.constant dense<0xFF800000> : vector<40xf32>
    %108 = vector.multi_reduction <maximumf>, %107, %cst_43 [1] : vector<40x5xf32> to vector<40xf32>
    %109 = vector.shape_cast %108 : vector<40xf32> to vector<40x1xf32>
    %110 = vector.broadcast %109 : vector<40x1xf32> to vector<40x5xf32>
    %111 = arith.subf %107, %110 : vector<40x5xf32>
    %112 = math.exp %111 : vector<40x5xf32>
    %cst_44 = arith.constant dense<0.000000e+00> : vector<40xf32>
    %113 = vector.multi_reduction <add>, %112, %cst_44 [1] : vector<40x5xf32> to vector<40xf32>
    %114 = vector.shape_cast %113 : vector<40xf32> to vector<40x1xf32>
    %115 = vector.broadcast %114 : vector<40x1xf32> to vector<40x5xf32>
    %116 = arith.divf %112, %115 : vector<40x5xf32>
    %c0_45 = arith.constant 0 : index
    %c0_46 = arith.constant 0 : index
    %c0_47 = arith.constant 0 : index
    %117 = vector.load %arg9[%c0_45, %c0_46, %c0_47] : memref<2x64x64xbf16, #tpu.memory_space<vmem>>, vector<1x64x64xbf16>
    %118 = vector.shape_cast %117 : vector<1x64x64xbf16> to vector<64x64xbf16>
    %c0_48 = arith.constant 0 : index
    %c0_49 = arith.constant 0 : index
    %c0_50 = arith.constant 0 : index
    %119 = vector.load %arg10[%c0_48, %c0_49, %c0_50] : memref<2x1x64xf32, #tpu.memory_space<vmem>>, vector<1x1x64xf32>
    %120 = vector.shape_cast %119 : vector<1x1x64xf32> to vector<1x64xf32>
    %121 = vector.broadcast %120 : vector<1x64xf32> to vector<10x64xf32>
    %122 = arith.addf %16, %121 : vector<10x64xf32>
    %123 = vector.extract_strided_slice %122 {offsets = [0, 0], sizes = [5, 64], strides = [1, 1]} : vector<10x64xf32> to vector<5x64xf32>
    %124 = vector.extract_strided_slice %50 {offsets = [0, 128], sizes = [5, 16], strides = [1, 1]} : vector<10x192xf32> to vector<5x16xf32>
    %125 = vector.extract_strided_slice %116 {offsets = [0, 0], sizes = [5, 5], strides = [1, 1]} : vector<40x5xf32> to vector<5x5xf32>
    %126 = arith.truncf %125 : vector<5x5xf32> to vector<5x5xbf16>
    %127 = arith.truncf %124 : vector<5x16xf32> to vector<5x16xbf16>
    %cst_51 = arith.constant dense<0.000000e+00> : vector<5x16xf32>
    %128 = tpu.matmul %126, %127, %cst_51 {dimension_numbers = #tpu.dot_dimension_numbers<[1], [0], [0], [1], [0, 0, 1, 1], [], []>} : vector<5x5xbf16>, vector<5x16xbf16>, vector<5x16xf32> -> vector<5x16xf32>
    %129 = vector.extract_strided_slice %118 {offsets = [0, 0], sizes = [16, 64], strides = [1, 1]} : vector<64x64xbf16> to vector<16x64xbf16>
    %130 = arith.truncf %128 : vector<5x16xf32> to vector<5x16xbf16>
    %cst_52 = arith.constant dense<0.000000e+00> : vector<5x64xf32>
    %131 = tpu.matmul %130, %129, %cst_52 {dimension_numbers = #tpu.dot_dimension_numbers<[1], [0], [0], [1], [0, 0, 1, 1], [], []>} : vector<5x16xbf16>, vector<16x64xbf16>, vector<5x64xf32> -> vector<5x64xf32>
    %132 = arith.addf %123, %131 : vector<5x64xf32>
    %133 = vector.extract_strided_slice %50 {offsets = [0, 144], sizes = [5, 16], strides = [1, 1]} : vector<10x192xf32> to vector<5x16xf32>
    %134 = vector.extract_strided_slice %116 {offsets = [5, 0], sizes = [5, 5], strides = [1, 1]} : vector<40x5xf32> to vector<5x5xf32>
    %135 = arith.truncf %134 : vector<5x5xf32> to vector<5x5xbf16>
    %136 = arith.truncf %133 : vector<5x16xf32> to vector<5x16xbf16>
    %cst_53 = arith.constant dense<0.000000e+00> : vector<5x16xf32>
    %137 = tpu.matmul %135, %136, %cst_53 {dimension_numbers = #tpu.dot_dimension_numbers<[1], [0], [0], [1], [0, 0, 1, 1], [], []>} : vector<5x5xbf16>, vector<5x16xbf16>, vector<5x16xf32> -> vector<5x16xf32>
    %138 = vector.extract_strided_slice %118 {offsets = [16, 0], sizes = [16, 64], strides = [1, 1]} : vector<64x64xbf16> to vector<16x64xbf16>
    %139 = arith.truncf %137 : vector<5x16xf32> to vector<5x16xbf16>
    %cst_54 = arith.constant dense<0.000000e+00> : vector<5x64xf32>
    %140 = tpu.matmul %139, %138, %cst_54 {dimension_numbers = #tpu.dot_dimension_numbers<[1], [0], [0], [1], [0, 0, 1, 1], [], []>} : vector<5x16xbf16>, vector<16x64xbf16>, vector<5x64xf32> -> vector<5x64xf32>
    %141 = arith.addf %132, %140 : vector<5x64xf32>
    %142 = vector.extract_strided_slice %50 {offsets = [0, 160], sizes = [5, 16], strides = [1, 1]} : vector<10x192xf32> to vector<5x16xf32>
    %143 = vector.extract_strided_slice %116 {offsets = [10, 0], sizes = [5, 5], strides = [1, 1]} : vector<40x5xf32> to vector<5x5xf32>
    %144 = arith.truncf %143 : vector<5x5xf32> to vector<5x5xbf16>
    %145 = arith.truncf %142 : vector<5x16xf32> to vector<5x16xbf16>
    %cst_55 = arith.constant dense<0.000000e+00> : vector<5x16xf32>
    %146 = tpu.matmul %144, %145, %cst_55 {dimension_numbers = #tpu.dot_dimension_numbers<[1], [0], [0], [1], [0, 0, 1, 1], [], []>} : vector<5x5xbf16>, vector<5x16xbf16>, vector<5x16xf32> -> vector<5x16xf32>
    %147 = vector.extract_strided_slice %118 {offsets = [32, 0], sizes = [16, 64], strides = [1, 1]} : vector<64x64xbf16> to vector<16x64xbf16>
    %148 = arith.truncf %146 : vector<5x16xf32> to vector<5x16xbf16>
    %cst_56 = arith.constant dense<0.000000e+00> : vector<5x64xf32>
    %149 = tpu.matmul %148, %147, %cst_56 {dimension_numbers = #tpu.dot_dimension_numbers<[1], [0], [0], [1], [0, 0, 1, 1], [], []>} : vector<5x16xbf16>, vector<16x64xbf16>, vector<5x64xf32> -> vector<5x64xf32>
    %150 = arith.addf %141, %149 : vector<5x64xf32>
    %151 = vector.extract_strided_slice %50 {offsets = [0, 176], sizes = [5, 16], strides = [1, 1]} : vector<10x192xf32> to vector<5x16xf32>
    %152 = vector.extract_strided_slice %116 {offsets = [15, 0], sizes = [5, 5], strides = [1, 1]} : vector<40x5xf32> to vector<5x5xf32>
    %153 = arith.truncf %152 : vector<5x5xf32> to vector<5x5xbf16>
    %154 = arith.truncf %151 : vector<5x16xf32> to vector<5x16xbf16>
    %cst_57 = arith.constant dense<0.000000e+00> : vector<5x16xf32>
    %155 = tpu.matmul %153, %154, %cst_57 {dimension_numbers = #tpu.dot_dimension_numbers<[1], [0], [0], [1], [0, 0, 1, 1], [], []>} : vector<5x5xbf16>, vector<5x16xbf16>, vector<5x16xf32> -> vector<5x16xf32>
    %156 = vector.extract_strided_slice %118 {offsets = [48, 0], sizes = [16, 64], strides = [1, 1]} : vector<64x64xbf16> to vector<16x64xbf16>
    %157 = arith.truncf %155 : vector<5x16xf32> to vector<5x16xbf16>
    %cst_58 = arith.constant dense<0.000000e+00> : vector<5x64xf32>
    %158 = tpu.matmul %157, %156, %cst_58 {dimension_numbers = #tpu.dot_dimension_numbers<[1], [0], [0], [1], [0, 0, 1, 1], [], []>} : vector<5x16xbf16>, vector<16x64xbf16>, vector<5x64xf32> -> vector<5x64xf32>
    %159 = arith.addf %150, %158 : vector<5x64xf32>
    %160 = vector.extract_strided_slice %122 {offsets = [5, 0], sizes = [5, 64], strides = [1, 1]} : vector<10x64xf32> to vector<5x64xf32>
    %161 = vector.extract_strided_slice %50 {offsets = [5, 128], sizes = [5, 16], strides = [1, 1]} : vector<10x192xf32> to vector<5x16xf32>
    %162 = vector.extract_strided_slice %116 {offsets = [20, 0], sizes = [5, 5], strides = [1, 1]} : vector<40x5xf32> to vector<5x5xf32>
    %163 = arith.truncf %162 : vector<5x5xf32> to vector<5x5xbf16>
    %164 = arith.truncf %161 : vector<5x16xf32> to vector<5x16xbf16>
    %cst_59 = arith.constant dense<0.000000e+00> : vector<5x16xf32>
    %165 = tpu.matmul %163, %164, %cst_59 {dimension_numbers = #tpu.dot_dimension_numbers<[1], [0], [0], [1], [0, 0, 1, 1], [], []>} : vector<5x5xbf16>, vector<5x16xbf16>, vector<5x16xf32> -> vector<5x16xf32>
    %166 = vector.extract_strided_slice %118 {offsets = [0, 0], sizes = [16, 64], strides = [1, 1]} : vector<64x64xbf16> to vector<16x64xbf16>
    %167 = arith.truncf %165 : vector<5x16xf32> to vector<5x16xbf16>
    %cst_60 = arith.constant dense<0.000000e+00> : vector<5x64xf32>
    %168 = tpu.matmul %167, %166, %cst_60 {dimension_numbers = #tpu.dot_dimension_numbers<[1], [0], [0], [1], [0, 0, 1, 1], [], []>} : vector<5x16xbf16>, vector<16x64xbf16>, vector<5x64xf32> -> vector<5x64xf32>
    %169 = arith.addf %160, %168 : vector<5x64xf32>
    %170 = vector.extract_strided_slice %50 {offsets = [5, 144], sizes = [5, 16], strides = [1, 1]} : vector<10x192xf32> to vector<5x16xf32>
    %171 = vector.extract_strided_slice %116 {offsets = [25, 0], sizes = [5, 5], strides = [1, 1]} : vector<40x5xf32> to vector<5x5xf32>
    %172 = arith.truncf %171 : vector<5x5xf32> to vector<5x5xbf16>
    %173 = arith.truncf %170 : vector<5x16xf32> to vector<5x16xbf16>
    %cst_61 = arith.constant dense<0.000000e+00> : vector<5x16xf32>
    %174 = tpu.matmul %172, %173, %cst_61 {dimension_numbers = #tpu.dot_dimension_numbers<[1], [0], [0], [1], [0, 0, 1, 1], [], []>} : vector<5x5xbf16>, vector<5x16xbf16>, vector<5x16xf32> -> vector<5x16xf32>
    %175 = vector.extract_strided_slice %118 {offsets = [16, 0], sizes = [16, 64], strides = [1, 1]} : vector<64x64xbf16> to vector<16x64xbf16>
    %176 = arith.truncf %174 : vector<5x16xf32> to vector<5x16xbf16>
    %cst_62 = arith.constant dense<0.000000e+00> : vector<5x64xf32>
    %177 = tpu.matmul %176, %175, %cst_62 {dimension_numbers = #tpu.dot_dimension_numbers<[1], [0], [0], [1], [0, 0, 1, 1], [], []>} : vector<5x16xbf16>, vector<16x64xbf16>, vector<5x64xf32> -> vector<5x64xf32>
    %178 = arith.addf %169, %177 : vector<5x64xf32>
    %179 = vector.extract_strided_slice %50 {offsets = [5, 160], sizes = [5, 16], strides = [1, 1]} : vector<10x192xf32> to vector<5x16xf32>
    %180 = vector.extract_strided_slice %116 {offsets = [30, 0], sizes = [5, 5], strides = [1, 1]} : vector<40x5xf32> to vector<5x5xf32>
    %181 = arith.truncf %180 : vector<5x5xf32> to vector<5x5xbf16>
    %182 = arith.truncf %179 : vector<5x16xf32> to vector<5x16xbf16>
    %cst_63 = arith.constant dense<0.000000e+00> : vector<5x16xf32>
    %183 = tpu.matmul %181, %182, %cst_63 {dimension_numbers = #tpu.dot_dimension_numbers<[1], [0], [0], [1], [0, 0, 1, 1], [], []>} : vector<5x5xbf16>, vector<5x16xbf16>, vector<5x16xf32> -> vector<5x16xf32>
    %184 = vector.extract_strided_slice %118 {offsets = [32, 0], sizes = [16, 64], strides = [1, 1]} : vector<64x64xbf16> to vector<16x64xbf16>
    %185 = arith.truncf %183 : vector<5x16xf32> to vector<5x16xbf16>
    %cst_64 = arith.constant dense<0.000000e+00> : vector<5x64xf32>
    %186 = tpu.matmul %185, %184, %cst_64 {dimension_numbers = #tpu.dot_dimension_numbers<[1], [0], [0], [1], [0, 0, 1, 1], [], []>} : vector<5x16xbf16>, vector<16x64xbf16>, vector<5x64xf32> -> vector<5x64xf32>
    %187 = arith.addf %178, %186 : vector<5x64xf32>
    %188 = vector.extract_strided_slice %50 {offsets = [5, 176], sizes = [5, 16], strides = [1, 1]} : vector<10x192xf32> to vector<5x16xf32>
    %189 = vector.extract_strided_slice %116 {offsets = [35, 0], sizes = [5, 5], strides = [1, 1]} : vector<40x5xf32> to vector<5x5xf32>
    %190 = arith.truncf %189 : vector<5x5xf32> to vector<5x5xbf16>
    %191 = arith.truncf %188 : vector<5x16xf32> to vector<5x16xbf16>
    %cst_65 = arith.constant dense<0.000000e+00> : vector<5x16xf32>
    %192 = tpu.matmul %190, %191, %cst_65 {dimension_numbers = #tpu.dot_dimension_numbers<[1], [0], [0], [1], [0, 0, 1, 1], [], []>} : vector<5x5xbf16>, vector<5x16xbf16>, vector<5x16xf32> -> vector<5x16xf32>
    %193 = vector.extract_strided_slice %118 {offsets = [48, 0], sizes = [16, 64], strides = [1, 1]} : vector<64x64xbf16> to vector<16x64xbf16>
    %194 = arith.truncf %192 : vector<5x16xf32> to vector<5x16xbf16>
    %cst_66 = arith.constant dense<0.000000e+00> : vector<5x64xf32>
    %195 = tpu.matmul %194, %193, %cst_66 {dimension_numbers = #tpu.dot_dimension_numbers<[1], [0], [0], [1], [0, 0, 1, 1], [], []>} : vector<5x16xbf16>, vector<16x64xbf16>, vector<5x64xf32> -> vector<5x64xf32>
    %196 = arith.addf %187, %195 : vector<5x64xf32>
    %197 = tpu.concatenate %159, %196 in 0 : vector<5x64xf32>, vector<5x64xf32> -> vector<10x64xf32>
    %c0_67 = arith.constant 0 : index
    %c0_68 = arith.constant 0 : index
    %c0_69 = arith.constant 0 : index
    %198 = vector.load %arg11[%c0_67, %c0_68, %c0_69] : memref<2x1x64xf32, #tpu.memory_space<vmem>>, vector<1x1x64xf32>
    %199 = vector.shape_cast %198 : vector<1x1x64xf32> to vector<1x64xf32>
    %c0_70 = arith.constant 0 : index
    %c0_71 = arith.constant 0 : index
    %c0_72 = arith.constant 0 : index
    %200 = vector.load %arg12[%c0_70, %c0_71, %c0_72] : memref<2x1x64xf32, #tpu.memory_space<vmem>>, vector<1x1x64xf32>
    %201 = vector.shape_cast %200 : vector<1x1x64xf32> to vector<1x64xf32>
    %cst_73 = arith.constant dense<0.000000e+00> : vector<10xf32>
    %202 = vector.multi_reduction <add>, %197, %cst_73 [1] : vector<10x64xf32> to vector<10xf32>
    %203 = vector.shape_cast %202 : vector<10xf32> to vector<10x1xf32>
    %cst_74 = arith.constant 6.400000e+01 : f32
    %204 = vector.broadcast %cst_74 : f32 to vector<10x1xf32>
    %205 = arith.divf %203, %204 : vector<10x1xf32>
    %206 = vector.broadcast %205 : vector<10x1xf32> to vector<10x64xf32>
    %207 = arith.subf %197, %206 : vector<10x64xf32>
    %208 = arith.mulf %207, %207 : vector<10x64xf32>
    %cst_75 = arith.constant dense<0.000000e+00> : vector<10xf32>
    %209 = vector.multi_reduction <add>, %208, %cst_75 [1] : vector<10x64xf32> to vector<10xf32>
    %210 = vector.shape_cast %209 : vector<10xf32> to vector<10x1xf32>
    %cst_76 = arith.constant 6.400000e+01 : f32
    %211 = vector.broadcast %cst_76 : f32 to vector<10x1xf32>
    %212 = arith.divf %210, %211 : vector<10x1xf32>
    %213 = vector.broadcast %205 : vector<10x1xf32> to vector<10x64xf32>
    %214 = arith.subf %197, %213 : vector<10x64xf32>
    %cst_77 = arith.constant 9.99999997E-7 : f32
    %215 = vector.broadcast %cst_77 : f32 to vector<10x1xf32>
    %216 = arith.addf %212, %215 : vector<10x1xf32>
    %217 = math.rsqrt %216 : vector<10x1xf32>
    %218 = vector.broadcast %217 : vector<10x1xf32> to vector<10x64xf32>
    %219 = arith.mulf %214, %218 : vector<10x64xf32>
    %220 = vector.broadcast %199 : vector<1x64xf32> to vector<10x64xf32>
    %221 = arith.mulf %219, %220 : vector<10x64xf32>
    %222 = vector.broadcast %201 : vector<1x64xf32> to vector<10x64xf32>
    %223 = arith.addf %221, %222 : vector<10x64xf32>
    %c0_78 = arith.constant 0 : index
    %c0_79 = arith.constant 0 : index
    %c0_80 = arith.constant 0 : index
    %224 = vector.load %arg13[%c0_78, %c0_79, %c0_80] : memref<2x64x256xbf16, #tpu.memory_space<vmem>>, vector<1x64x256xbf16>
    %225 = vector.shape_cast %224 : vector<1x64x256xbf16> to vector<64x256xbf16>
    %226 = arith.truncf %223 : vector<10x64xf32> to vector<10x64xbf16>
    %cst_81 = arith.constant dense<0.000000e+00> : vector<10x256xf32>
    %227 = tpu.matmul %226, %225, %cst_81 {dimension_numbers = #tpu.dot_dimension_numbers<[1], [0], [0], [1], [0, 0, 1, 1], [], []>} : vector<10x64xbf16>, vector<64x256xbf16>, vector<10x256xf32> -> vector<10x256xf32>
    %c0_82 = arith.constant 0 : index
    %c0_83 = arith.constant 0 : index
    %c0_84 = arith.constant 0 : index
    %228 = vector.load %arg14[%c0_82, %c0_83, %c0_84] : memref<2x1x256xf32, #tpu.memory_space<vmem>>, vector<1x1x256xf32>
    %229 = vector.shape_cast %228 : vector<1x1x256xf32> to vector<1x256xf32>
    %230 = vector.broadcast %229 : vector<1x256xf32> to vector<10x256xf32>
    %231 = arith.addf %227, %230 : vector<10x256xf32>
    %cst_85 = arith.constant 5.000000e-01 : f32
    %232 = vector.broadcast %cst_85 : f32 to vector<10x256xf32>
    %233 = arith.mulf %232, %231 : vector<10x256xf32>
    %cst_86 = arith.constant 4.471500e-02 : f32
    %234 = vector.broadcast %cst_86 : f32 to vector<10x256xf32>
    %235 = arith.mulf %234, %231 : vector<10x256xf32>
    %236 = arith.mulf %235, %231 : vector<10x256xf32>
    %237 = arith.mulf %236, %231 : vector<10x256xf32>
    %238 = arith.addf %231, %237 : vector<10x256xf32>
    %cst_87 = arith.constant 0.797884583 : f32
    %239 = vector.broadcast %cst_87 : f32 to vector<10x256xf32>
    %240 = arith.mulf %239, %238 : vector<10x256xf32>
    %241 = math.tanh %240 : vector<10x256xf32>
    %cst_88 = arith.constant 1.000000e+00 : f32
    %242 = vector.broadcast %cst_88 : f32 to vector<10x256xf32>
    %243 = arith.addf %242, %241 : vector<10x256xf32>
    %244 = arith.mulf %233, %243 : vector<10x256xf32>
    %c0_89 = arith.constant 0 : index
    %c0_90 = arith.constant 0 : index
    %c0_91 = arith.constant 0 : index
    %245 = vector.load %arg15[%c0_89, %c0_90, %c0_91] : memref<2x256x64xbf16, #tpu.memory_space<vmem>>, vector<1x256x64xbf16>
    %246 = vector.shape_cast %245 : vector<1x256x64xbf16> to vector<256x64xbf16>
    %247 = arith.truncf %244 : vector<10x256xf32> to vector<10x256xbf16>
    %cst_92 = arith.constant dense<0.000000e+00> : vector<10x64xf32>
    %248 = tpu.matmul %247, %246, %cst_92 {dimension_numbers = #tpu.dot_dimension_numbers<[1], [0], [0], [1], [0, 0, 1, 1], [], []>} : vector<10x256xbf16>, vector<256x64xbf16>, vector<10x64xf32> -> vector<10x64xf32>
    %249 = arith.addf %197, %248 : vector<10x64xf32>
    %c0_93 = arith.constant 0 : index
    %c0_94 = arith.constant 0 : index
    %c0_95 = arith.constant 0 : index
    %250 = vector.load %arg16[%c0_93, %c0_94, %c0_95] : memref<2x1x64xf32, #tpu.memory_space<vmem>>, vector<1x1x64xf32>
    %251 = vector.shape_cast %250 : vector<1x1x64xf32> to vector<1x64xf32>
    %252 = vector.broadcast %251 : vector<1x64xf32> to vector<10x64xf32>
    %253 = arith.addf %249, %252 : vector<10x64xf32>
    %c1 = arith.constant 1 : index
    %c0_96 = arith.constant 0 : index
    %c0_97 = arith.constant 0 : index
    %254 = vector.load %arg5[%c1, %c0_96, %c0_97] : memref<2x1x64xf32, #tpu.memory_space<vmem>>, vector<1x1x64xf32>
    %255 = vector.shape_cast %254 : vector<1x1x64xf32> to vector<1x64xf32>
    %c1_98 = arith.constant 1 : index
    %c0_99 = arith.constant 0 : index
    %c0_100 = arith.constant 0 : index
    %256 = vector.load %arg6[%c1_98, %c0_99, %c0_100] : memref<2x1x64xf32, #tpu.memory_space<vmem>>, vector<1x1x64xf32>
    %257 = vector.shape_cast %256 : vector<1x1x64xf32> to vector<1x64xf32>
    %cst_101 = arith.constant dense<0.000000e+00> : vector<10xf32>
    %258 = vector.multi_reduction <add>, %253, %cst_101 [1] : vector<10x64xf32> to vector<10xf32>
    %259 = vector.shape_cast %258 : vector<10xf32> to vector<10x1xf32>
    %cst_102 = arith.constant 6.400000e+01 : f32
    %260 = vector.broadcast %cst_102 : f32 to vector<10x1xf32>
    %261 = arith.divf %259, %260 : vector<10x1xf32>
    %262 = vector.broadcast %261 : vector<10x1xf32> to vector<10x64xf32>
    %263 = arith.subf %253, %262 : vector<10x64xf32>
    %264 = arith.mulf %263, %263 : vector<10x64xf32>
    %cst_103 = arith.constant dense<0.000000e+00> : vector<10xf32>
    %265 = vector.multi_reduction <add>, %264, %cst_103 [1] : vector<10x64xf32> to vector<10xf32>
    %266 = vector.shape_cast %265 : vector<10xf32> to vector<10x1xf32>
    %cst_104 = arith.constant 6.400000e+01 : f32
    %267 = vector.broadcast %cst_104 : f32 to vector<10x1xf32>
    %268 = arith.divf %266, %267 : vector<10x1xf32>
    %269 = vector.broadcast %261 : vector<10x1xf32> to vector<10x64xf32>
    %270 = arith.subf %253, %269 : vector<10x64xf32>
    %cst_105 = arith.constant 9.99999997E-7 : f32
    %271 = vector.broadcast %cst_105 : f32 to vector<10x1xf32>
    %272 = arith.addf %268, %271 : vector<10x1xf32>
    %273 = math.rsqrt %272 : vector<10x1xf32>
    %274 = vector.broadcast %273 : vector<10x1xf32> to vector<10x64xf32>
    %275 = arith.mulf %270, %274 : vector<10x64xf32>
    %276 = vector.broadcast %255 : vector<1x64xf32> to vector<10x64xf32>
    %277 = arith.mulf %275, %276 : vector<10x64xf32>
    %278 = vector.broadcast %257 : vector<1x64xf32> to vector<10x64xf32>
    %279 = arith.addf %277, %278 : vector<10x64xf32>
    %c1_106 = arith.constant 1 : index
    %c0_107 = arith.constant 0 : index
    %c0_108 = arith.constant 0 : index
    %280 = vector.load %arg7[%c1_106, %c0_107, %c0_108] : memref<2x64x192xbf16, #tpu.memory_space<vmem>>, vector<1x64x192xbf16>
    %281 = vector.shape_cast %280 : vector<1x64x192xbf16> to vector<64x192xbf16>
    %282 = arith.truncf %279 : vector<10x64xf32> to vector<10x64xbf16>
    %cst_109 = arith.constant dense<0.000000e+00> : vector<10x192xf32>
    %283 = tpu.matmul %282, %281, %cst_109 {dimension_numbers = #tpu.dot_dimension_numbers<[1], [0], [0], [1], [0, 0, 1, 1], [], []>} : vector<10x64xbf16>, vector<64x192xbf16>, vector<10x192xf32> -> vector<10x192xf32>
    %c1_110 = arith.constant 1 : index
    %c0_111 = arith.constant 0 : index
    %c0_112 = arith.constant 0 : index
    %284 = vector.load %arg8[%c1_110, %c0_111, %c0_112] : memref<2x1x192xf32, #tpu.memory_space<vmem>>, vector<1x1x192xf32>
    %285 = vector.shape_cast %284 : vector<1x1x192xf32> to vector<1x192xf32>
    %286 = vector.broadcast %285 : vector<1x192xf32> to vector<10x192xf32>
    %287 = arith.addf %283, %286 : vector<10x192xf32>
    %288 = vector.extract_strided_slice %287 {offsets = [0, 0], sizes = [5, 16], strides = [1, 1]} : vector<10x192xf32> to vector<5x16xf32>
    %289 = vector.extract_strided_slice %287 {offsets = [0, 64], sizes = [5, 16], strides = [1, 1]} : vector<10x192xf32> to vector<5x16xf32>
    %290 = arith.truncf %288 : vector<5x16xf32> to vector<5x16xbf16>
    %291 = arith.truncf %289 : vector<5x16xf32> to vector<5x16xbf16>
    %cst_113 = arith.constant dense<0.000000e+00> : vector<5x5xf32>
    %292 = tpu.matmul %290, %291, %cst_113 {dimension_numbers = #tpu.dot_dimension_numbers<[1], [1], [0], [0], [0, 0, 1, 0], [], []>} : vector<5x16xbf16>, vector<5x16xbf16>, vector<5x5xf32> -> vector<5x5xf32>
    %cst_114 = arith.constant 2.500000e-01 : f32
    %293 = vector.broadcast %cst_114 : f32 to vector<5x5xf32>
    %294 = arith.mulf %292, %293 : vector<5x5xf32>
    %295 = vector.extract_strided_slice %287 {offsets = [0, 16], sizes = [5, 16], strides = [1, 1]} : vector<10x192xf32> to vector<5x16xf32>
    %296 = vector.extract_strided_slice %287 {offsets = [0, 80], sizes = [5, 16], strides = [1, 1]} : vector<10x192xf32> to vector<5x16xf32>
    %297 = arith.truncf %295 : vector<5x16xf32> to vector<5x16xbf16>
    %298 = arith.truncf %296 : vector<5x16xf32> to vector<5x16xbf16>
    %cst_115 = arith.constant dense<0.000000e+00> : vector<5x5xf32>
    %299 = tpu.matmul %297, %298, %cst_115 {dimension_numbers = #tpu.dot_dimension_numbers<[1], [1], [0], [0], [0, 0, 1, 0], [], []>} : vector<5x16xbf16>, vector<5x16xbf16>, vector<5x5xf32> -> vector<5x5xf32>
    %cst_116 = arith.constant 2.500000e-01 : f32
    %300 = vector.broadcast %cst_116 : f32 to vector<5x5xf32>
    %301 = arith.mulf %299, %300 : vector<5x5xf32>
    %302 = vector.extract_strided_slice %287 {offsets = [0, 32], sizes = [5, 16], strides = [1, 1]} : vector<10x192xf32> to vector<5x16xf32>
    %303 = vector.extract_strided_slice %287 {offsets = [0, 96], sizes = [5, 16], strides = [1, 1]} : vector<10x192xf32> to vector<5x16xf32>
    %304 = arith.truncf %302 : vector<5x16xf32> to vector<5x16xbf16>
    %305 = arith.truncf %303 : vector<5x16xf32> to vector<5x16xbf16>
    %cst_117 = arith.constant dense<0.000000e+00> : vector<5x5xf32>
    %306 = tpu.matmul %304, %305, %cst_117 {dimension_numbers = #tpu.dot_dimension_numbers<[1], [1], [0], [0], [0, 0, 1, 0], [], []>} : vector<5x16xbf16>, vector<5x16xbf16>, vector<5x5xf32> -> vector<5x5xf32>
    %cst_118 = arith.constant 2.500000e-01 : f32
    %307 = vector.broadcast %cst_118 : f32 to vector<5x5xf32>
    %308 = arith.mulf %306, %307 : vector<5x5xf32>
    %309 = vector.extract_strided_slice %287 {offsets = [0, 48], sizes = [5, 16], strides = [1, 1]} : vector<10x192xf32> to vector<5x16xf32>
    %310 = vector.extract_strided_slice %287 {offsets = [0, 112], sizes = [5, 16], strides = [1, 1]} : vector<10x192xf32> to vector<5x16xf32>
    %311 = arith.truncf %309 : vector<5x16xf32> to vector<5x16xbf16>
    %312 = arith.truncf %310 : vector<5x16xf32> to vector<5x16xbf16>
    %cst_119 = arith.constant dense<0.000000e+00> : vector<5x5xf32>
    %313 = tpu.matmul %311, %312, %cst_119 {dimension_numbers = #tpu.dot_dimension_numbers<[1], [1], [0], [0], [0, 0, 1, 0], [], []>} : vector<5x16xbf16>, vector<5x16xbf16>, vector<5x5xf32> -> vector<5x5xf32>
    %cst_120 = arith.constant 2.500000e-01 : f32
    %314 = vector.broadcast %cst_120 : f32 to vector<5x5xf32>
    %315 = arith.mulf %313, %314 : vector<5x5xf32>
    %316 = vector.extract_strided_slice %287 {offsets = [5, 0], sizes = [5, 16], strides = [1, 1]} : vector<10x192xf32> to vector<5x16xf32>
    %317 = vector.extract_strided_slice %287 {offsets = [5, 64], sizes = [5, 16], strides = [1, 1]} : vector<10x192xf32> to vector<5x16xf32>
    %318 = arith.truncf %316 : vector<5x16xf32> to vector<5x16xbf16>
    %319 = arith.truncf %317 : vector<5x16xf32> to vector<5x16xbf16>
    %cst_121 = arith.constant dense<0.000000e+00> : vector<5x5xf32>
    %320 = tpu.matmul %318, %319, %cst_121 {dimension_numbers = #tpu.dot_dimension_numbers<[1], [1], [0], [0], [0, 0, 1, 0], [], []>} : vector<5x16xbf16>, vector<5x16xbf16>, vector<5x5xf32> -> vector<5x5xf32>
    %cst_122 = arith.constant 2.500000e-01 : f32
    %321 = vector.broadcast %cst_122 : f32 to vector<5x5xf32>
    %322 = arith.mulf %320, %321 : vector<5x5xf32>
    %323 = vector.extract_strided_slice %287 {offsets = [5, 16], sizes = [5, 16], strides = [1, 1]} : vector<10x192xf32> to vector<5x16xf32>
    %324 = vector.extract_strided_slice %287 {offsets = [5, 80], sizes = [5, 16], strides = [1, 1]} : vector<10x192xf32> to vector<5x16xf32>
    %325 = arith.truncf %323 : vector<5x16xf32> to vector<5x16xbf16>
    %326 = arith.truncf %324 : vector<5x16xf32> to vector<5x16xbf16>
    %cst_123 = arith.constant dense<0.000000e+00> : vector<5x5xf32>
    %327 = tpu.matmul %325, %326, %cst_123 {dimension_numbers = #tpu.dot_dimension_numbers<[1], [1], [0], [0], [0, 0, 1, 0], [], []>} : vector<5x16xbf16>, vector<5x16xbf16>, vector<5x5xf32> -> vector<5x5xf32>
    %cst_124 = arith.constant 2.500000e-01 : f32
    %328 = vector.broadcast %cst_124 : f32 to vector<5x5xf32>
    %329 = arith.mulf %327, %328 : vector<5x5xf32>
    %330 = vector.extract_strided_slice %287 {offsets = [5, 32], sizes = [5, 16], strides = [1, 1]} : vector<10x192xf32> to vector<5x16xf32>
    %331 = vector.extract_strided_slice %287 {offsets = [5, 96], sizes = [5, 16], strides = [1, 1]} : vector<10x192xf32> to vector<5x16xf32>
    %332 = arith.truncf %330 : vector<5x16xf32> to vector<5x16xbf16>
    %333 = arith.truncf %331 : vector<5x16xf32> to vector<5x16xbf16>
    %cst_125 = arith.constant dense<0.000000e+00> : vector<5x5xf32>
    %334 = tpu.matmul %332, %333, %cst_125 {dimension_numbers = #tpu.dot_dimension_numbers<[1], [1], [0], [0], [0, 0, 1, 0], [], []>} : vector<5x16xbf16>, vector<5x16xbf16>, vector<5x5xf32> -> vector<5x5xf32>
    %cst_126 = arith.constant 2.500000e-01 : f32
    %335 = vector.broadcast %cst_126 : f32 to vector<5x5xf32>
    %336 = arith.mulf %334, %335 : vector<5x5xf32>
    %337 = vector.extract_strided_slice %287 {offsets = [5, 48], sizes = [5, 16], strides = [1, 1]} : vector<10x192xf32> to vector<5x16xf32>
    %338 = vector.extract_strided_slice %287 {offsets = [5, 112], sizes = [5, 16], strides = [1, 1]} : vector<10x192xf32> to vector<5x16xf32>
    %339 = arith.truncf %337 : vector<5x16xf32> to vector<5x16xbf16>
    %340 = arith.truncf %338 : vector<5x16xf32> to vector<5x16xbf16>
    %cst_127 = arith.constant dense<0.000000e+00> : vector<5x5xf32>
    %341 = tpu.matmul %339, %340, %cst_127 {dimension_numbers = #tpu.dot_dimension_numbers<[1], [1], [0], [0], [0, 0, 1, 0], [], []>} : vector<5x16xbf16>, vector<5x16xbf16>, vector<5x5xf32> -> vector<5x5xf32>
    %cst_128 = arith.constant 2.500000e-01 : f32
    %342 = vector.broadcast %cst_128 : f32 to vector<5x5xf32>
    %343 = arith.mulf %341, %342 : vector<5x5xf32>
    %344 = tpu.concatenate %294, %301, %308, %315, %322, %329, %336, %343 in 0 : vector<5x5xf32>, vector<5x5xf32>, vector<5x5xf32>, vector<5x5xf32>, vector<5x5xf32>, vector<5x5xf32>, vector<5x5xf32>, vector<5x5xf32> -> vector<40x5xf32>
    %cst_129 = arith.constant dense<0xFF800000> : vector<40xf32>
    %345 = vector.multi_reduction <maximumf>, %344, %cst_129 [1] : vector<40x5xf32> to vector<40xf32>
    %346 = vector.shape_cast %345 : vector<40xf32> to vector<40x1xf32>
    %347 = vector.broadcast %346 : vector<40x1xf32> to vector<40x5xf32>
    %348 = arith.subf %344, %347 : vector<40x5xf32>
    %349 = math.exp %348 : vector<40x5xf32>
    %cst_130 = arith.constant dense<0.000000e+00> : vector<40xf32>
    %350 = vector.multi_reduction <add>, %349, %cst_130 [1] : vector<40x5xf32> to vector<40xf32>
    %351 = vector.shape_cast %350 : vector<40xf32> to vector<40x1xf32>
    %352 = vector.broadcast %351 : vector<40x1xf32> to vector<40x5xf32>
    %353 = arith.divf %349, %352 : vector<40x5xf32>
    %c1_131 = arith.constant 1 : index
    %c0_132 = arith.constant 0 : index
    %c0_133 = arith.constant 0 : index
    %354 = vector.load %arg9[%c1_131, %c0_132, %c0_133] : memref<2x64x64xbf16, #tpu.memory_space<vmem>>, vector<1x64x64xbf16>
    %355 = vector.shape_cast %354 : vector<1x64x64xbf16> to vector<64x64xbf16>
    %c1_134 = arith.constant 1 : index
    %c0_135 = arith.constant 0 : index
    %c0_136 = arith.constant 0 : index
    %356 = vector.load %arg10[%c1_134, %c0_135, %c0_136] : memref<2x1x64xf32, #tpu.memory_space<vmem>>, vector<1x1x64xf32>
    %357 = vector.shape_cast %356 : vector<1x1x64xf32> to vector<1x64xf32>
    %358 = vector.broadcast %357 : vector<1x64xf32> to vector<10x64xf32>
    %359 = arith.addf %253, %358 : vector<10x64xf32>
    %360 = vector.extract_strided_slice %359 {offsets = [0, 0], sizes = [5, 64], strides = [1, 1]} : vector<10x64xf32> to vector<5x64xf32>
    %361 = vector.extract_strided_slice %287 {offsets = [0, 128], sizes = [5, 16], strides = [1, 1]} : vector<10x192xf32> to vector<5x16xf32>
    %362 = vector.extract_strided_slice %353 {offsets = [0, 0], sizes = [5, 5], strides = [1, 1]} : vector<40x5xf32> to vector<5x5xf32>
    %363 = arith.truncf %362 : vector<5x5xf32> to vector<5x5xbf16>
    %364 = arith.truncf %361 : vector<5x16xf32> to vector<5x16xbf16>
    %cst_137 = arith.constant dense<0.000000e+00> : vector<5x16xf32>
    %365 = tpu.matmul %363, %364, %cst_137 {dimension_numbers = #tpu.dot_dimension_numbers<[1], [0], [0], [1], [0, 0, 1, 1], [], []>} : vector<5x5xbf16>, vector<5x16xbf16>, vector<5x16xf32> -> vector<5x16xf32>
    %366 = vector.extract_strided_slice %355 {offsets = [0, 0], sizes = [16, 64], strides = [1, 1]} : vector<64x64xbf16> to vector<16x64xbf16>
    %367 = arith.truncf %365 : vector<5x16xf32> to vector<5x16xbf16>
    %cst_138 = arith.constant dense<0.000000e+00> : vector<5x64xf32>
    %368 = tpu.matmul %367, %366, %cst_138 {dimension_numbers = #tpu.dot_dimension_numbers<[1], [0], [0], [1], [0, 0, 1, 1], [], []>} : vector<5x16xbf16>, vector<16x64xbf16>, vector<5x64xf32> -> vector<5x64xf32>
    %369 = arith.addf %360, %368 : vector<5x64xf32>
    %370 = vector.extract_strided_slice %287 {offsets = [0, 144], sizes = [5, 16], strides = [1, 1]} : vector<10x192xf32> to vector<5x16xf32>
    %371 = vector.extract_strided_slice %353 {offsets = [5, 0], sizes = [5, 5], strides = [1, 1]} : vector<40x5xf32> to vector<5x5xf32>
    %372 = arith.truncf %371 : vector<5x5xf32> to vector<5x5xbf16>
    %373 = arith.truncf %370 : vector<5x16xf32> to vector<5x16xbf16>
    %cst_139 = arith.constant dense<0.000000e+00> : vector<5x16xf32>
    %374 = tpu.matmul %372, %373, %cst_139 {dimension_numbers = #tpu.dot_dimension_numbers<[1], [0], [0], [1], [0, 0, 1, 1], [], []>} : vector<5x5xbf16>, vector<5x16xbf16>, vector<5x16xf32> -> vector<5x16xf32>
    %375 = vector.extract_strided_slice %355 {offsets = [16, 0], sizes = [16, 64], strides = [1, 1]} : vector<64x64xbf16> to vector<16x64xbf16>
    %376 = arith.truncf %374 : vector<5x16xf32> to vector<5x16xbf16>
    %cst_140 = arith.constant dense<0.000000e+00> : vector<5x64xf32>
    %377 = tpu.matmul %376, %375, %cst_140 {dimension_numbers = #tpu.dot_dimension_numbers<[1], [0], [0], [1], [0, 0, 1, 1], [], []>} : vector<5x16xbf16>, vector<16x64xbf16>, vector<5x64xf32> -> vector<5x64xf32>
    %378 = arith.addf %369, %377 : vector<5x64xf32>
    %379 = vector.extract_strided_slice %287 {offsets = [0, 160], sizes = [5, 16], strides = [1, 1]} : vector<10x192xf32> to vector<5x16xf32>
    %380 = vector.extract_strided_slice %353 {offsets = [10, 0], sizes = [5, 5], strides = [1, 1]} : vector<40x5xf32> to vector<5x5xf32>
    %381 = arith.truncf %380 : vector<5x5xf32> to vector<5x5xbf16>
    %382 = arith.truncf %379 : vector<5x16xf32> to vector<5x16xbf16>
    %cst_141 = arith.constant dense<0.000000e+00> : vector<5x16xf32>
    %383 = tpu.matmul %381, %382, %cst_141 {dimension_numbers = #tpu.dot_dimension_numbers<[1], [0], [0], [1], [0, 0, 1, 1], [], []>} : vector<5x5xbf16>, vector<5x16xbf16>, vector<5x16xf32> -> vector<5x16xf32>
    %384 = vector.extract_strided_slice %355 {offsets = [32, 0], sizes = [16, 64], strides = [1, 1]} : vector<64x64xbf16> to vector<16x64xbf16>
    %385 = arith.truncf %383 : vector<5x16xf32> to vector<5x16xbf16>
    %cst_142 = arith.constant dense<0.000000e+00> : vector<5x64xf32>
    %386 = tpu.matmul %385, %384, %cst_142 {dimension_numbers = #tpu.dot_dimension_numbers<[1], [0], [0], [1], [0, 0, 1, 1], [], []>} : vector<5x16xbf16>, vector<16x64xbf16>, vector<5x64xf32> -> vector<5x64xf32>
    %387 = arith.addf %378, %386 : vector<5x64xf32>
    %388 = vector.extract_strided_slice %287 {offsets = [0, 176], sizes = [5, 16], strides = [1, 1]} : vector<10x192xf32> to vector<5x16xf32>
    %389 = vector.extract_strided_slice %353 {offsets = [15, 0], sizes = [5, 5], strides = [1, 1]} : vector<40x5xf32> to vector<5x5xf32>
    %390 = arith.truncf %389 : vector<5x5xf32> to vector<5x5xbf16>
    %391 = arith.truncf %388 : vector<5x16xf32> to vector<5x16xbf16>
    %cst_143 = arith.constant dense<0.000000e+00> : vector<5x16xf32>
    %392 = tpu.matmul %390, %391, %cst_143 {dimension_numbers = #tpu.dot_dimension_numbers<[1], [0], [0], [1], [0, 0, 1, 1], [], []>} : vector<5x5xbf16>, vector<5x16xbf16>, vector<5x16xf32> -> vector<5x16xf32>
    %393 = vector.extract_strided_slice %355 {offsets = [48, 0], sizes = [16, 64], strides = [1, 1]} : vector<64x64xbf16> to vector<16x64xbf16>
    %394 = arith.truncf %392 : vector<5x16xf32> to vector<5x16xbf16>
    %cst_144 = arith.constant dense<0.000000e+00> : vector<5x64xf32>
    %395 = tpu.matmul %394, %393, %cst_144 {dimension_numbers = #tpu.dot_dimension_numbers<[1], [0], [0], [1], [0, 0, 1, 1], [], []>} : vector<5x16xbf16>, vector<16x64xbf16>, vector<5x64xf32> -> vector<5x64xf32>
    %396 = arith.addf %387, %395 : vector<5x64xf32>
    %397 = vector.extract_strided_slice %359 {offsets = [5, 0], sizes = [5, 64], strides = [1, 1]} : vector<10x64xf32> to vector<5x64xf32>
    %398 = vector.extract_strided_slice %287 {offsets = [5, 128], sizes = [5, 16], strides = [1, 1]} : vector<10x192xf32> to vector<5x16xf32>
    %399 = vector.extract_strided_slice %353 {offsets = [20, 0], sizes = [5, 5], strides = [1, 1]} : vector<40x5xf32> to vector<5x5xf32>
    %400 = arith.truncf %399 : vector<5x5xf32> to vector<5x5xbf16>
    %401 = arith.truncf %398 : vector<5x16xf32> to vector<5x16xbf16>
    %cst_145 = arith.constant dense<0.000000e+00> : vector<5x16xf32>
    %402 = tpu.matmul %400, %401, %cst_145 {dimension_numbers = #tpu.dot_dimension_numbers<[1], [0], [0], [1], [0, 0, 1, 1], [], []>} : vector<5x5xbf16>, vector<5x16xbf16>, vector<5x16xf32> -> vector<5x16xf32>
    %403 = vector.extract_strided_slice %355 {offsets = [0, 0], sizes = [16, 64], strides = [1, 1]} : vector<64x64xbf16> to vector<16x64xbf16>
    %404 = arith.truncf %402 : vector<5x16xf32> to vector<5x16xbf16>
    %cst_146 = arith.constant dense<0.000000e+00> : vector<5x64xf32>
    %405 = tpu.matmul %404, %403, %cst_146 {dimension_numbers = #tpu.dot_dimension_numbers<[1], [0], [0], [1], [0, 0, 1, 1], [], []>} : vector<5x16xbf16>, vector<16x64xbf16>, vector<5x64xf32> -> vector<5x64xf32>
    %406 = arith.addf %397, %405 : vector<5x64xf32>
    %407 = vector.extract_strided_slice %287 {offsets = [5, 144], sizes = [5, 16], strides = [1, 1]} : vector<10x192xf32> to vector<5x16xf32>
    %408 = vector.extract_strided_slice %353 {offsets = [25, 0], sizes = [5, 5], strides = [1, 1]} : vector<40x5xf32> to vector<5x5xf32>
    %409 = arith.truncf %408 : vector<5x5xf32> to vector<5x5xbf16>
    %410 = arith.truncf %407 : vector<5x16xf32> to vector<5x16xbf16>
    %cst_147 = arith.constant dense<0.000000e+00> : vector<5x16xf32>
    %411 = tpu.matmul %409, %410, %cst_147 {dimension_numbers = #tpu.dot_dimension_numbers<[1], [0], [0], [1], [0, 0, 1, 1], [], []>} : vector<5x5xbf16>, vector<5x16xbf16>, vector<5x16xf32> -> vector<5x16xf32>
    %412 = vector.extract_strided_slice %355 {offsets = [16, 0], sizes = [16, 64], strides = [1, 1]} : vector<64x64xbf16> to vector<16x64xbf16>
    %413 = arith.truncf %411 : vector<5x16xf32> to vector<5x16xbf16>
    %cst_148 = arith.constant dense<0.000000e+00> : vector<5x64xf32>
    %414 = tpu.matmul %413, %412, %cst_148 {dimension_numbers = #tpu.dot_dimension_numbers<[1], [0], [0], [1], [0, 0, 1, 1], [], []>} : vector<5x16xbf16>, vector<16x64xbf16>, vector<5x64xf32> -> vector<5x64xf32>
    %415 = arith.addf %406, %414 : vector<5x64xf32>
    %416 = vector.extract_strided_slice %287 {offsets = [5, 160], sizes = [5, 16], strides = [1, 1]} : vector<10x192xf32> to vector<5x16xf32>
    %417 = vector.extract_strided_slice %353 {offsets = [30, 0], sizes = [5, 5], strides = [1, 1]} : vector<40x5xf32> to vector<5x5xf32>
    %418 = arith.truncf %417 : vector<5x5xf32> to vector<5x5xbf16>
    %419 = arith.truncf %416 : vector<5x16xf32> to vector<5x16xbf16>
    %cst_149 = arith.constant dense<0.000000e+00> : vector<5x16xf32>
    %420 = tpu.matmul %418, %419, %cst_149 {dimension_numbers = #tpu.dot_dimension_numbers<[1], [0], [0], [1], [0, 0, 1, 1], [], []>} : vector<5x5xbf16>, vector<5x16xbf16>, vector<5x16xf32> -> vector<5x16xf32>
    %421 = vector.extract_strided_slice %355 {offsets = [32, 0], sizes = [16, 64], strides = [1, 1]} : vector<64x64xbf16> to vector<16x64xbf16>
    %422 = arith.truncf %420 : vector<5x16xf32> to vector<5x16xbf16>
    %cst_150 = arith.constant dense<0.000000e+00> : vector<5x64xf32>
    %423 = tpu.matmul %422, %421, %cst_150 {dimension_numbers = #tpu.dot_dimension_numbers<[1], [0], [0], [1], [0, 0, 1, 1], [], []>} : vector<5x16xbf16>, vector<16x64xbf16>, vector<5x64xf32> -> vector<5x64xf32>
    %424 = arith.addf %415, %423 : vector<5x64xf32>
    %425 = vector.extract_strided_slice %287 {offsets = [5, 176], sizes = [5, 16], strides = [1, 1]} : vector<10x192xf32> to vector<5x16xf32>
    %426 = vector.extract_strided_slice %353 {offsets = [35, 0], sizes = [5, 5], strides = [1, 1]} : vector<40x5xf32> to vector<5x5xf32>
    %427 = arith.truncf %426 : vector<5x5xf32> to vector<5x5xbf16>
    %428 = arith.truncf %425 : vector<5x16xf32> to vector<5x16xbf16>
    %cst_151 = arith.constant dense<0.000000e+00> : vector<5x16xf32>
    %429 = tpu.matmul %427, %428, %cst_151 {dimension_numbers = #tpu.dot_dimension_numbers<[1], [0], [0], [1], [0, 0, 1, 1], [], []>} : vector<5x5xbf16>, vector<5x16xbf16>, vector<5x16xf32> -> vector<5x16xf32>
    %430 = vector.extract_strided_slice %355 {offsets = [48, 0], sizes = [16, 64], strides = [1, 1]} : vector<64x64xbf16> to vector<16x64xbf16>
    %431 = arith.truncf %429 : vector<5x16xf32> to vector<5x16xbf16>
    %cst_152 = arith.constant dense<0.000000e+00> : vector<5x64xf32>
    %432 = tpu.matmul %431, %430, %cst_152 {dimension_numbers = #tpu.dot_dimension_numbers<[1], [0], [0], [1], [0, 0, 1, 1], [], []>} : vector<5x16xbf16>, vector<16x64xbf16>, vector<5x64xf32> -> vector<5x64xf32>
    %433 = arith.addf %424, %432 : vector<5x64xf32>
    %434 = tpu.concatenate %396, %433 in 0 : vector<5x64xf32>, vector<5x64xf32> -> vector<10x64xf32>
    %c1_153 = arith.constant 1 : index
    %c0_154 = arith.constant 0 : index
    %c0_155 = arith.constant 0 : index
    %435 = vector.load %arg11[%c1_153, %c0_154, %c0_155] : memref<2x1x64xf32, #tpu.memory_space<vmem>>, vector<1x1x64xf32>
    %436 = vector.shape_cast %435 : vector<1x1x64xf32> to vector<1x64xf32>
    %c1_156 = arith.constant 1 : index
    %c0_157 = arith.constant 0 : index
    %c0_158 = arith.constant 0 : index
    %437 = vector.load %arg12[%c1_156, %c0_157, %c0_158] : memref<2x1x64xf32, #tpu.memory_space<vmem>>, vector<1x1x64xf32>
    %438 = vector.shape_cast %437 : vector<1x1x64xf32> to vector<1x64xf32>
    %cst_159 = arith.constant dense<0.000000e+00> : vector<10xf32>
    %439 = vector.multi_reduction <add>, %434, %cst_159 [1] : vector<10x64xf32> to vector<10xf32>
    %440 = vector.shape_cast %439 : vector<10xf32> to vector<10x1xf32>
    %cst_160 = arith.constant 6.400000e+01 : f32
    %441 = vector.broadcast %cst_160 : f32 to vector<10x1xf32>
    %442 = arith.divf %440, %441 : vector<10x1xf32>
    %443 = vector.broadcast %442 : vector<10x1xf32> to vector<10x64xf32>
    %444 = arith.subf %434, %443 : vector<10x64xf32>
    %445 = arith.mulf %444, %444 : vector<10x64xf32>
    %cst_161 = arith.constant dense<0.000000e+00> : vector<10xf32>
    %446 = vector.multi_reduction <add>, %445, %cst_161 [1] : vector<10x64xf32> to vector<10xf32>
    %447 = vector.shape_cast %446 : vector<10xf32> to vector<10x1xf32>
    %cst_162 = arith.constant 6.400000e+01 : f32
    %448 = vector.broadcast %cst_162 : f32 to vector<10x1xf32>
    %449 = arith.divf %447, %448 : vector<10x1xf32>
    %450 = vector.broadcast %442 : vector<10x1xf32> to vector<10x64xf32>
    %451 = arith.subf %434, %450 : vector<10x64xf32>
    %cst_163 = arith.constant 9.99999997E-7 : f32
    %452 = vector.broadcast %cst_163 : f32 to vector<10x1xf32>
    %453 = arith.addf %449, %452 : vector<10x1xf32>
    %454 = math.rsqrt %453 : vector<10x1xf32>
    %455 = vector.broadcast %454 : vector<10x1xf32> to vector<10x64xf32>
    %456 = arith.mulf %451, %455 : vector<10x64xf32>
    %457 = vector.broadcast %436 : vector<1x64xf32> to vector<10x64xf32>
    %458 = arith.mulf %456, %457 : vector<10x64xf32>
    %459 = vector.broadcast %438 : vector<1x64xf32> to vector<10x64xf32>
    %460 = arith.addf %458, %459 : vector<10x64xf32>
    %c1_164 = arith.constant 1 : index
    %c0_165 = arith.constant 0 : index
    %c0_166 = arith.constant 0 : index
    %461 = vector.load %arg13[%c1_164, %c0_165, %c0_166] : memref<2x64x256xbf16, #tpu.memory_space<vmem>>, vector<1x64x256xbf16>
    %462 = vector.shape_cast %461 : vector<1x64x256xbf16> to vector<64x256xbf16>
    %463 = arith.truncf %460 : vector<10x64xf32> to vector<10x64xbf16>
    %cst_167 = arith.constant dense<0.000000e+00> : vector<10x256xf32>
    %464 = tpu.matmul %463, %462, %cst_167 {dimension_numbers = #tpu.dot_dimension_numbers<[1], [0], [0], [1], [0, 0, 1, 1], [], []>} : vector<10x64xbf16>, vector<64x256xbf16>, vector<10x256xf32> -> vector<10x256xf32>
    %c1_168 = arith.constant 1 : index
    %c0_169 = arith.constant 0 : index
    %c0_170 = arith.constant 0 : index
    %465 = vector.load %arg14[%c1_168, %c0_169, %c0_170] : memref<2x1x256xf32, #tpu.memory_space<vmem>>, vector<1x1x256xf32>
    %466 = vector.shape_cast %465 : vector<1x1x256xf32> to vector<1x256xf32>
    %467 = vector.broadcast %466 : vector<1x256xf32> to vector<10x256xf32>
    %468 = arith.addf %464, %467 : vector<10x256xf32>
    %cst_171 = arith.constant 5.000000e-01 : f32
    %469 = vector.broadcast %cst_171 : f32 to vector<10x256xf32>
    %470 = arith.mulf %469, %468 : vector<10x256xf32>
    %cst_172 = arith.constant 4.471500e-02 : f32
    %471 = vector.broadcast %cst_172 : f32 to vector<10x256xf32>
    %472 = arith.mulf %471, %468 : vector<10x256xf32>
    %473 = arith.mulf %472, %468 : vector<10x256xf32>
    %474 = arith.mulf %473, %468 : vector<10x256xf32>
    %475 = arith.addf %468, %474 : vector<10x256xf32>
    %cst_173 = arith.constant 0.797884583 : f32
    %476 = vector.broadcast %cst_173 : f32 to vector<10x256xf32>
    %477 = arith.mulf %476, %475 : vector<10x256xf32>
    %478 = math.tanh %477 : vector<10x256xf32>
    %cst_174 = arith.constant 1.000000e+00 : f32
    %479 = vector.broadcast %cst_174 : f32 to vector<10x256xf32>
    %480 = arith.addf %479, %478 : vector<10x256xf32>
    %481 = arith.mulf %470, %480 : vector<10x256xf32>
    %c1_175 = arith.constant 1 : index
    %c0_176 = arith.constant 0 : index
    %c0_177 = arith.constant 0 : index
    %482 = vector.load %arg15[%c1_175, %c0_176, %c0_177] : memref<2x256x64xbf16, #tpu.memory_space<vmem>>, vector<1x256x64xbf16>
    %483 = vector.shape_cast %482 : vector<1x256x64xbf16> to vector<256x64xbf16>
    %484 = arith.truncf %481 : vector<10x256xf32> to vector<10x256xbf16>
    %cst_178 = arith.constant dense<0.000000e+00> : vector<10x64xf32>
    %485 = tpu.matmul %484, %483, %cst_178 {dimension_numbers = #tpu.dot_dimension_numbers<[1], [0], [0], [1], [0, 0, 1, 1], [], []>} : vector<10x256xbf16>, vector<256x64xbf16>, vector<10x64xf32> -> vector<10x64xf32>
    %486 = arith.addf %434, %485 : vector<10x64xf32>
    %c1_179 = arith.constant 1 : index
    %c0_180 = arith.constant 0 : index
    %c0_181 = arith.constant 0 : index
    %487 = vector.load %arg16[%c1_179, %c0_180, %c0_181] : memref<2x1x64xf32, #tpu.memory_space<vmem>>, vector<1x1x64xf32>
    %488 = vector.shape_cast %487 : vector<1x1x64xf32> to vector<1x64xf32>
    %489 = vector.broadcast %488 : vector<1x64xf32> to vector<10x64xf32>
    %490 = arith.addf %486, %489 : vector<10x64xf32>
    %491 = vector.extract_strided_slice %490 {offsets = [0, 0], sizes = [1, 64], strides = [1, 1]} : vector<10x64xf32> to vector<1x64xf32>
    %492 = vector.extract_strided_slice %490 {offsets = [5, 0], sizes = [1, 64], strides = [1, 1]} : vector<10x64xf32> to vector<1x64xf32>
    %493 = tpu.concatenate %491, %492 in 0 : vector<1x64xf32>, vector<1x64xf32> -> vector<2x64xf32>
    %c0_182 = arith.constant 0 : index
    %c0_183 = arith.constant 0 : index
    %494 = vector.load %arg17[%c0_182, %c0_183] : memref<1x64xf32, #tpu.memory_space<vmem>>, vector<1x64xf32>
    %c0_184 = arith.constant 0 : index
    %c0_185 = arith.constant 0 : index
    %495 = vector.load %arg18[%c0_184, %c0_185] : memref<1x64xf32, #tpu.memory_space<vmem>>, vector<1x64xf32>
    %cst_186 = arith.constant dense<0.000000e+00> : vector<2xf32>
    %496 = vector.multi_reduction <add>, %493, %cst_186 [1] : vector<2x64xf32> to vector<2xf32>
    %497 = vector.shape_cast %496 : vector<2xf32> to vector<2x1xf32>
    %cst_187 = arith.constant 6.400000e+01 : f32
    %498 = vector.broadcast %cst_187 : f32 to vector<2x1xf32>
    %499 = arith.divf %497, %498 : vector<2x1xf32>
    %500 = vector.broadcast %499 : vector<2x1xf32> to vector<2x64xf32>
    %501 = arith.subf %493, %500 : vector<2x64xf32>
    %502 = arith.mulf %501, %501 : vector<2x64xf32>
    %cst_188 = arith.constant dense<0.000000e+00> : vector<2xf32>
    %503 = vector.multi_reduction <add>, %502, %cst_188 [1] : vector<2x64xf32> to vector<2xf32>
    %504 = vector.shape_cast %503 : vector<2xf32> to vector<2x1xf32>
    %cst_189 = arith.constant 6.400000e+01 : f32
    %505 = vector.broadcast %cst_189 : f32 to vector<2x1xf32>
    %506 = arith.divf %504, %505 : vector<2x1xf32>
    %507 = vector.broadcast %499 : vector<2x1xf32> to vector<2x64xf32>
    %508 = arith.subf %493, %507 : vector<2x64xf32>
    %cst_190 = arith.constant 9.99999997E-7 : f32
    %509 = vector.broadcast %cst_190 : f32 to vector<2x1xf32>
    %510 = arith.addf %506, %509 : vector<2x1xf32>
    %511 = math.rsqrt %510 : vector<2x1xf32>
    %512 = vector.broadcast %511 : vector<2x1xf32> to vector<2x64xf32>
    %513 = arith.mulf %508, %512 : vector<2x64xf32>
    %514 = vector.broadcast %494 : vector<1x64xf32> to vector<2x64xf32>
    %515 = arith.mulf %513, %514 : vector<2x64xf32>
    %516 = vector.broadcast %495 : vector<1x64xf32> to vector<2x64xf32>
    %517 = arith.addf %515, %516 : vector<2x64xf32>
    %c0_191 = arith.constant 0 : index
    %c0_192 = arith.constant 0 : index
    %518 = vector.load %arg19[%c0_191, %c0_192] : memref<64x32xbf16, #tpu.memory_space<vmem>>, vector<64x32xbf16>
    %519 = arith.truncf %517 : vector<2x64xf32> to vector<2x64xbf16>
    %cst_193 = arith.constant dense<0.000000e+00> : vector<2x32xf32>
    %520 = tpu.matmul %519, %518, %cst_193 {dimension_numbers = #tpu.dot_dimension_numbers<[1], [0], [0], [1], [0, 0, 1, 1], [], []>} : vector<2x64xbf16>, vector<64x32xbf16>, vector<2x32xf32> -> vector<2x32xf32>
    %c0_194 = arith.constant 0 : index
    %c0_195 = arith.constant 0 : index
    %521 = vector.load %arg20[%c0_194, %c0_195] : memref<2x32xf32, #tpu.memory_space<vmem>>, vector<2x32xf32>
    tpu.vector_store %arg20[%c0_194, %c0_195], %520 {strides = array<i32>} : memref<2x32xf32, #tpu.memory_space<vmem>>, vector<2x32xf32>,
    return
  }
}

</mosaic_0001>

<bundles_post_ra>
// kernel: image_encoder_ulip_forward.1
= control target key start
LH: loop header
LB: loop body
LE: loop exit
PB: predicated region body
PF: predicated region fallthrough
CT: control target
= control target key end

     0   :  { %s5104_s0 = inlined_call_operand.vmem [shape: f32[8,768], index: 0, kind: input, shape index: {}]   ;;  %s5105_s1 = inlined_call_operand.vmem [shape: bf16[768,64], index: 1, kind: input, shape index: {}]   ;;  %s5106_s2 = inlined_call_operand.vmem [shape: f32[1,64], index: 2, kind: input, shape index: {}]   ;;  %s5107_s3 = inlined_call_operand.vmem [shape: f32[1,64], index: 3, kind: input, shape index: {}]   ;;  %s5108_s4 = inlined_call_operand.vmem [shape: f32[5,64], index: 4, kind: input, shape index: {}]   ;;  %s5109_s5 = inlined_call_operand.vmem [shape: f32[2,1,64], index: 5, kind: input, shape index: {}]   ;;  %s5110_s6 = inlined_call_operand.vmem [shape: f32[2,1,64], index: 6, kind: input, shape index: {}]   ;;  %s5111_s7 = inlined_call_operand.vmem [shape: bf16[2,64,192], index: 7, kind: input, shape index: {}]   ;;  %s5112_s8 = inlined_call_operand.vmem [shape: f32[2,1,192], index: 8, kind: input, shape index: {}]   ;;  %s5113_s9 = inlined_call_operand.vmem [shape: bf16[2,64,64], index: 9, kind: input, shape index: {}]   ;;  %s5114_s10 = inlined_call_operand.vmem [shape: f32[2,1,64], index: 10, kind: input, shape index: {}]   ;;  %s5115_s11 = inlined_call_operand.vmem [shape: f32[2,1,64], index: 11, kind: input, shape index: {}]   ;;  %s5116_s12 = inlined_call_operand.vmem [shape: f32[2,1,64], index: 12, kind: input, shape index: {}]   ;;  %s5117_s13 = inlined_call_operand.vmem [shape: bf16[2,64,256], index: 13, kind: input, shape index: {}]   ;;  %s5118_s14 = inlined_call_operand.vmem [shape: f32[2,1,256], index: 14, kind: input, shape index: {}]   ;;  %s5119_s15 = inlined_call_operand.vmem [shape: bf16[2,256,64], index: 15, kind: input, shape index: {}]   ;;  %s5120_s16 = inlined_call_operand.vmem [shape: f32[2,1,64], index: 16, kind: input, shape index: {}]   ;;  %s5121_s17 = inlined_call_operand.vmem [shape: f32[1,64], index: 17, kind: input, shape index: {}]   ;;  %s5122_s18 = inlined_call_operand.vmem [shape: f32[1,64], index: 18, kind: input, shape index: {}]   ;;  %s5123_s19 = inlined_call_operand.vmem [shape: bf16[64,32], index: 19, kind: input, shape index: {}]   ;;  %s5124_s20 = inlined_call_operand.hbm [shape: f32[2,32], index: 20, kind: output, shape index: {}]  }
   0x1   :  { %5134 = sst [smem:[#allocation5_spill]] %s5104_s0 }
   0x2   :  { %5135 = sst [smem:[#allocation6_spill]] %s5105_s1 }
   0x3   :  { %5136 = sst [smem:[#allocation7_spill]] %s5106_s2 }
   0x4   :  { %5137 = sst [smem:[#allocation8_spill]] %s5107_s3 }
   0x5   :  { %5138 = sst [smem:[#allocation9_spill]] %s5108_s4 }
   0x6   :  { %s5139_s23 = sld [smem:[#allocation6_spill]] }
   0xc   :  { %v3826_v0 = vld [vmem:[%s5139_s23 + $0x38] sm:$0xff]  ;;  %v3825_v2 = vld [vmem:[%s5139_s23 + $0x30] sm:$0xff]  ;;  %v3824_v8 = vld [vmem:[%s5139_s23 + $0x28] sm:$0xff] }
   0xd   :  { %v3834_v1 = vld [vmem:[%s5139_s23 + $0x78] sm:$0xff]  ;;  %467 = vmatpush.bf16.msra.mxu0 %v3826_v0  ;;  %v3833_v3 = vld [vmem:[%s5139_s23 + $0x70] sm:$0xff]  ;;  %v3832_v9 = vld [vmem:[%s5139_s23 + $0x68] sm:$0xff] }
   0xe   :  { %480 = vmatpush.bf16.msra.mxu1 %v3834_v1  ;;  %v3842_v4 = vld [vmem:[%s5139_s23 + $0xb8] sm:$0xff]  ;;  %v3841_v6 = vld [vmem:[%s5139_s23 + $0xb0] sm:$0xff]  ;;  %v3840_v10 = vld [vmem:[%s5139_s23 + $0xa8] sm:$0xff] }
   0xf   :  { %v3850_v5 = vld [vmem:[%s5139_s23 + $0xf8] sm:$0xff]  ;;  %493 = vmatpush.bf16.msra.mxu2 %v3842_v4  ;;  %v3849_v7 = vld [vmem:[%s5139_s23 + $0xf0] sm:$0xff]  ;;  %v3848_v11 = vld [vmem:[%s5139_s23 + $0xe8] sm:$0xff] }
  0x10   :  { %506 = vmatpush.bf16.msra.mxu3 %v3850_v5  ;;  %v3823_v12 = vld [vmem:[%s5139_s23 + $0x20] sm:$0xff]  ;;  %v3822_v16 = vld [vmem:[%s5139_s23 + $0x18] sm:$0xff]  ;;  %v3821_v19 = vld [vmem:[%s5139_s23 + $0x10] sm:$0xff] }
  0x11   :  { %468 = vmatpush.bf16.msra.mxu0 %v3825_v2  ;;  %v3831_v13 = vld [vmem:[%s5139_s23 + $0x60] sm:$0xff]  ;;  %v3830_v17 = vld [vmem:[%s5139_s23 + $0x58] sm:$0xff]  ;;  %v3829_v20 = vld [vmem:[%s5139_s23 + $0x50] sm:$0xff] }
  0x12   :  { %481 = vmatpush.bf16.msra.mxu1 %v3833_v3  ;;  %v3839_v14 = vld [vmem:[%s5139_s23 + $0xa0] sm:$0xff]  ;;  %v3838_v18 = vld [vmem:[%s5139_s23 + $0x98] sm:$0xff]  ;;  %v3837_v22 = vld [vmem:[%s5139_s23 + $0x90] sm:$0xff] }
  0x13   :  { %494 = vmatpush.bf16.msra.mxu2 %v3841_v6  ;;  %v3847_v15 = vld [vmem:[%s5139_s23 + $0xe0] sm:$0xff]  ;;  %v3846_v21 = vld [vmem:[%s5139_s23 + $0xd8] sm:$0xff]  ;;  %v3845_v23 = vld [vmem:[%s5139_s23 + $0xd0] sm:$0xff] }
  0x14   :  { %507 = vmatpush.bf16.msra.mxu3 %v3849_v7 }
  0x15   :  { %469 = vmatpush.bf16.msra.mxu0 %v3824_v8 }
  0x16   :  { %482 = vmatpush.bf16.msra.mxu1 %v3832_v9 }
  0x17   :  { %495 = vmatpush.bf16.msra.mxu2 %v3840_v10 }
  0x18   :  { %508 = vmatpush.bf16.msra.mxu3 %v3848_v11 }
  0x19   :  { %470 = vmatpush.bf16.msra.mxu0 %v3823_v12 }
  0x1a   :  { %483 = vmatpush.bf16.msra.mxu1 %v3831_v13 }
  0x1b   :  { %496 = vmatpush.bf16.msra.mxu2 %v3839_v14 }
  0x1c   :  { %509 = vmatpush.bf16.msra.mxu3 %v3847_v15 }
  0x1d   :  { %471 = vmatpush.bf16.msra.mxu0 %v3822_v16 }
  0x1e   :  { %484 = vmatpush.bf16.msra.mxu1 %v3830_v17 }
  0x1f   :  { %497 = vmatpush.bf16.msra.mxu2 %v3838_v18 }
  0x20   :  { %510 = vmatpush.bf16.msra.mxu3 %v3846_v21 }
  0x21   :  { %25 = vsyncpa [#allocation3], 0  ;;  %472 = vmatpush.bf16.msra.mxu0 %v3821_v19  ;;  %v3820_v24 = vld [vmem:[%s5139_s23 + $0x8] sm:$0xff]  ;;  %v3819_v27 = vld [vmem:[%s5139_s23] sm:$0xff]  ;;  %s5140_s26 = sld [smem:[#allocation5_spill]]  ;;  %vm5129_vm0 = vcmask 1040384  }
  0x22   :  { %485 = vmatpush.bf16.msra.mxu1 %v3829_v20  ;;  %v3828_v25 = vld [vmem:[%s5139_s23 + $0x48] sm:$0xff]  ;;  %v3827_v29 = vld [vmem:[%s5139_s23 + $0x40] sm:$0xff]  ;;  %v3858_v32 = vld [vmem:[%s5139_s23 + $0x138] sm:$0xff]  ;;  %s5141_s22 = sld [smem:[#allocation7_spill]]  ;;  %vm566_vm1 = vcmask 1044480   ;;  %vm5128_vm2 = vcmask 1045504  }
  0x23   :  { %498 = vmatpush.bf16.msra.mxu2 %v3837_v22  ;;  %v3836_v26 = vld [vmem:[%s5139_s23 + $0x88] sm:$0xff]  ;;  %v3866_v33 = vld [vmem:[%s5139_s23 + $0x178] sm:$0xff]  ;;  %v3835_v34 = vld [vmem:[%s5139_s23 + $0x80] sm:$0xff]  ;;  %s5142_s2 = sld [smem:[#allocation9_spill]]  ;;  %vm572_vm3 = vcmask 523264   ;;  %vm576_vm4 = vcmask 517120  }
  0x24   :  { %511 = vmatpush.bf16.msra.mxu3 %v3845_v23  ;;  %v3844_v28 = vld [vmem:[%s5139_s23 + $0xc8] sm:$0xff]  ;;  %v3843_v38 = vld [vmem:[%s5139_s23 + $0xc0] sm:$0xff]  ;;  %v3857_v40 = vld [vmem:[%s5139_s23 + $0x130] sm:$0xff]  ;;  %s5143_s27 = sld [smem:[#allocation8_spill]]  ;;  %s4073_s24 = smov 48   ;;  %vm725_vm12 = vcmask 130048  }
  0x25   :  { %473 = vmatpush.bf16.msra.mxu0 %v3820_v24  ;;  %v3865_v41 = vld [vmem:[%s5139_s23 + $0x170] sm:$0xff]  ;;  %v3856_v44 = vld [vmem:[%s5139_s23 + $0x128] sm:$0xff]  ;;  %v3855_v46 = vld [vmem:[%s5139_s23 + $0x120] sm:$0xff]  ;;  %s5132_s25 = smov 16   ;;  %s4076_s3 = smov 96   ;;  %vm943_vm13 = vcmask 1041408  }
  0x26   :  { %486 = vmatpush.bf16.msra.mxu1 %v3828_v25  ;;  %v3864_v45 = vld [vmem:[%s5139_s23 + $0x168] sm:$0xff]  ;;  %v3863_v47 = vld [vmem:[%s5139_s23 + $0x160] sm:$0xff]  ;;  %v3854_v48 = vld [vmem:[%s5139_s23 + $0x118] sm:$0xff]  ;;  %vm5127_vm14 = vcmask 1042432   ;;  %vm953_vm15 = vcmask 39936  }
  0x27   :  { %v67_v30 = vld [vmem:[%s5140_s26] sm:$0xff]  ;;  %v68_v31 = vld [vmem:[%s5140_s26 + $0x8] sm:$0xff]  ;;  %499 = vmatpush.bf16.msra.mxu2 %v3836_v26  ;;  %v69_v37 = vld [vmem:[%s5140_s26 + $0x10] sm:$0xff] }
  0x28   :  { %v169_v35 = vpack.c.bf16 %v67_v30, %v67_v30  ;;  %512 = vmatpush.bf16.msra.mxu3 %v3844_v28  ;;  %v170_v36 = vpack.c.bf16 %v68_v31, %v68_v31  ;;  %v70_v39 = vld [vmem:[%s5140_s26 + $0x18] sm:$0xff]  ;;  %v171_v42 = vpack.c.bf16 %v69_v37, %v69_v37  ;;  %v3853_v50 = vld [vmem:[%s5139_s23 + $0x110] sm:$0xff]  ;;  %v3852_v52 = vld [vmem:[%s5139_s23 + $0x108] sm:$0xff]  ;;  %v4070_v30 = vmov 64.0  }
  0x29   :  { %474 = vmatpush.bf16.msra.mxu0 %v3819_v27  ;;  %v172_v43 = vpack.c.bf16 %v70_v39, %v70_v39  ;;  %v3862_v49 = vld [vmem:[%s5139_s23 + $0x158] sm:$0xff]  ;;  %v3861_v51 = vld [vmem:[%s5139_s23 + $0x150] sm:$0xff]  ;;  %v3860_v53 = vld [vmem:[%s5139_s23 + $0x148] sm:$0xff]  ;;  %3968 = vrcp.f32 %v4070_v30 }
  0x2a   :  { %487 = vmatpush.bf16.msra.mxu1 %v3827_v29  ;;  %v3851_v54 = vld [vmem:[%s5139_s23 + $0x100] sm:$0xff]  ;;  %v72_v57 = vld [vmem:[%s5140_s26 + $0x28] sm:$0xff] }
  0x2b   :  { %500 = vmatpush.bf16.msra.mxu2 %v3835_v34  ;;  %v3859_v55 = vld [vmem:[%s5139_s23 + $0x140] sm:$0xff]  ;;  %v174_v59 = vpack.c.bf16 %v72_v57, %v72_v57  ;;  %v3414_v57 = vld [vmem:[%s5111_s7 + $0x28] sm:$0xf0] }
  0x2c   :  { %475 = vmatmul.bf16.vlgmr.msra.gmra.mxu0 %v169_v35  ;;  %513 = vmatpush.bf16.msra.mxu3 %v3843_v38  ;;  %v71_v56 = vld [vmem:[%s5140_s26 + $0x20] sm:$0xff]  ;;  %s4072_s26 = smov 64  }
  0x2d   :  { %519 = vmatpush.bf16.msrb.mxu0 %v3858_v32  ;;  %488 = vmatmul.bf16.vlgmr.msra.gmra.mxu1 %v170_v36  ;;  %v173_v58 = vpack.c.bf16 %v71_v56, %v71_v56  ;;  %v3953_v2 = vld [vmem:[%s5141_s22] ss:$0 sm:$0xff]  ;;  %s4071_s22 = smov 32  }
  0x2e   :  { %532 = vmatpush.bf16.msrb.mxu1 %v3866_v33  ;;  %501 = vmatmul.bf16.vlgmr.msra.gmra.mxu2 %v171_v42  ;;  %v545_v8 = vld [vmem:[%s5142_s2] sm:$0x1f]  ;;  %s4074_s2 = smov 112  }
  0x2f   :  { %514 = vmatmul.bf16.vlgmr.msra.gmra.mxu3 %v172_v43  ;;  %v546_v10 = vld [vmem:[%s5143_s27] sm:$0x1]  ;;  %v549_v14 = vrot.slane %v545_v8, 1  ;;  %v552_v15 = vrot.slane %v545_v8, 5  ;;  %v3969_v31 = vpop.eup %3968  ;;  %s5130_s27 = smov 80  }
  0x30   :  { %v547_v16 = vadd.f32 %v546_v10, %v545_v8  ;;  %v581_v32 = vmul.f32 64.0, %v3969_v31  ;;  %vm585_vm5 = vweird.f32 %v3969_v31 }
  0x31   :  { %520 = vmatpush.bf16.msrb.mxu0 %v3857_v40 }
  0x32   :  { %533 = vmatpush.bf16.msrb.mxu1 %v3865_v41  ;;  %v559_v20 = vperm.slane %v547_v16, 0  ;;  %v582_v33 = vsub.f32 1.0, %v581_v32 }
  0x34   :  { %v583_v34 = vmul.f32 %v3969_v31, %v582_v33  ;;  %v3955_v33 = vld [vmem:[%s5110_s6] ss:$0 sm:$0xff] }
  0x35   :  { %521 = vmatpush.bf16.msrb.mxu0 %v3856_v44 }
  0x36   :  { %534 = vmatpush.bf16.msrb.mxu1 %v3864_v45  ;;  %v584_v35 = vadd.f32 %v3969_v31, %v583_v34 }
  0x38   :  { %v4368_v36 = vsel %vm585_vm5, %v3969_v31, %v584_v35  ;;  %vm945_vm5 = vcmask 1046528  }
  0x39   :  { %522 = vmatpush.bf16.msrb.mxu0 %v3855_v46 }
  0x3a   :  { %535 = vmatpush.bf16.msrb.mxu1 %v3863_v47  ;;  %v3420_v47 = vld [vmem:[%s5111_s7 + $0x30] sm:$0xf] }
  0x3d   :  { %523 = vmatpush.bf16.msrb.mxu0 %v3854_v48  ;;  %v3874_v48 = vld [vmem:[%s5111_s7 + $0x34] sm:$0xf0] }
  0x3e   :  { %536 = vmatpush.bf16.msrb.mxu1 %v3862_v49  ;;  %v3873_v49 = vld [vmem:[%s5111_s7 + $0x34] sm:$0xf] }
  0x41   :  { %524 = vmatpush.bf16.msrb.mxu0 %v3853_v50  ;;  %v3421_v50 = vor.u32 %v3874_v48, %v3420_v47 }
  0x42   :  { %537 = vmatpush.bf16.msrb.mxu1 %v3861_v51  ;;  %v3422_v51 = vld [vmem:[%s5111_s7 + $0x38] sm:$0xf0] }
  0x43   :  { %697 = vmatpush.bf16.msrb.mxu2 %v3421_v50 }
  0x45   :  { %525 = vmatpush.bf16.msrb.mxu0 %v3852_v52  ;;  %v3425_v52 = vor.u32 %v3873_v49, %v3422_v51 }
  0x46   :  { %538 = vmatpush.bf16.msrb.mxu1 %v3860_v53  ;;  %v3412_v53 = vld [vmem:[%s5111_s7 + $0x20] sm:$0xf] }
  0x47   :  { %711 = vmatpush.bf16.msrb.mxu3 %v3425_v52 }
  0x49   :  { %526 = vmatpush.bf16.msrb.mxu0 %v3851_v54  ;;  %v3872_v54 = vld [vmem:[%s5111_s7 + $0x24] sm:$0xf0] }
  0x4a   :  { %539 = vmatpush.bf16.msrb.mxu1 %v3859_v55  ;;  %v3871_v55 = vld [vmem:[%s5111_s7 + $0x24] sm:$0xf]  ;;  %v3413_v56 = vor.u32 %v3872_v54, %v3412_v53 }
  0x4c   :  { %527 = vmatmul.bf16.vlgmr.msrb.gmra.mxu0 %v173_v58  ;;  %v3417_v58 = vor.u32 %v3871_v55, %v3414_v57  ;;  %698 = vmatpush.bf16.msrb.mxu2 %v3413_v56 }
  0x4d   :  { %540 = vmatmul.bf16.vlgmr.msrb.gmra.mxu1 %v174_v59  ;;  %v3404_v59 = vld [vmem:[%s5111_s7 + $0x10] sm:$0xf] }
  0x4e   :  { %712 = vmatpush.bf16.msrb.mxu3 %v3417_v58 }
  0xa9   :  { %v476_v60 = vpop.f32.mrf.mxu0 }
  0xaa   :  { %v489_v61 = vpop.f32.mrf.mxu1  ;;  %v477_v3 = vadd.f32 %v3953_v2, %v476_v60  ;;  %v3870_v60 = vld [vmem:[%s5111_s7 + $0x14] sm:$0xf0]  ;;  %v3868_v2 = vld [vmem:[%s5111_s7 + $0x4] sm:$0xf0] }
  0xac   :  { %v490_v6 = vadd.f32 %v489_v61, %v477_v3  ;;  %v3869_v61 = vld [vmem:[%s5111_s7 + $0x14] sm:$0xf]  ;;  %v3867_v3 = vld [vmem:[%s5111_s7 + $0x4] sm:$0xf] }
  0xb1   :  { %v478_v62 = vpop.f32.mrf.mxu0  ;;  %v502_v0 = vpop.f32.mrf.mxu2 }
  0xb2   :  { %v491_v63 = vpop.f32.mrf.mxu1  ;;  %v515_v1 = vpop.f32.mrf.mxu3  ;;  %v503_v7 = vadd.f32 %v502_v0, %v490_v6  ;;  %v3405_v62 = vor.u32 %v3870_v60, %v3404_v59  ;;  %v3398_v6 = vld [vmem:[%s5111_s7 + $0x8] sm:$0xf0] }
  0xb3   :  { %v3406_v63 = vld [vmem:[%s5111_s7 + $0x18] sm:$0xf0]  ;;  %v3401_v8 = vor.u32 %v3867_v3, %v3398_v6 }
  0xb4   :  { %v516_v9 = vadd.f32 %v515_v1, %v503_v7  ;;  %v3409_v0 = vor.u32 %v3869_v61, %v3406_v63  ;;  %v3396_v1 = vld [vmem:[%s5111_s7] sm:$0xf]  ;;  %699 = vmatpush.bf16.msrb.mxu2 %v3405_v62 }
  0xb6   :  { %713 = vmatpush.bf16.msrb.mxu3 %v3409_v0 }
  0xb9   :  { %v504_v4 = vpop.f32.mrf.mxu2 }
  0xba   :  { %v517_v5 = vpop.f32.mrf.mxu3  ;;  %714 = vmatpush.bf16.msrb.mxu3 %v3401_v8 }
  0xbb   :  { %v3397_v5 = vor.u32 %v3868_v2, %v3396_v1 }
  0xbd   :  { %700 = vmatpush.bf16.msrb.mxu2 %v3397_v5  ;;  %v4078_v5 = vmov 65535  }
  0xbe   :  { %v1093_v6 = vsel %vm943_vm13, 4294967295, %v4078_v5 }
  0xbf   :  { %v4475_v8 = vsel %vm5127_vm14, %v1093_v6, 0 }
  0xc9   :  { %v528_v11 = vpop.f32.mrf.mxu0 }
  0xca   :  { %v541_v12 = vpop.f32.mrf.mxu1  ;;  %v529_v13 = vadd.f32 %v528_v11, %v516_v9 }
  0xcc   :  { %v542_v17 = vadd.f32 %v541_v12, %v529_v13 }
  0xce   :  { %v551_v18 = vadd.f32 %v549_v14, %v542_v17  ;;  %v554_v19 = vadd.f32 %v552_v15, %v542_v17 }
  0xd0   :  { %v556_v21 = vrot.slane %v551_v18, 7  ;;  %v4356_v24 = vrot.slane %v554_v19, 6 }
  0xd1   :  { %v530_v22 = vpop.f32.mrf.mxu0 }
  0xd2   :  { %v543_v23 = vpop.f32.mrf.mxu1  ;;  %v565_v25 = vsel %vm5129_vm0, %v547_v16, %v556_v21  ;;  %v577_v29 = vsel %vm576_vm4, %v4356_v24, 0.0 }
  0xd3   :  { %v567_v26 = vsel %vm566_vm1, %v565_v25, %v559_v20 }
  0xd4   :  { %v4362_v27 = vsel %vm5128_vm2, %v567_v26, %v4356_v24 }
  0xd5   :  { %v573_v28 = vsel %vm572_vm3, %v4362_v27, 0.0 }
  0xd6   :  { %574 = vadd.xlane.f32.xlu0 %v573_v28  ;;  %v3954_v28 = vld [vmem:[%s5109_s5] ss:$0 sm:$0xff] }
  0xde   :  { %578 = vadd.xlane.f32.xlu0 %v577_v29 }
 0x149   :  { %v575_v37 = vpop.xlane.xlu0 %574 }
 0x14a   :  { %v587_v38 = vmul.f32 %v4368_v36, %v575_v37 }
 0x14c   :  { %v4372_v39 = vsub.f32 %v4362_v27, %v587_v38 }
 0x14e   :  { %v591_v40 = vmul.f32 %v4372_v39, %v4372_v39 }
 0x150   :  { %v593_v41 = vsel %vm572_vm3, %v591_v40, 0.0 }
 0x151   :  { %594 = vadd.xlane.f32.xlu1 %v593_v41  ;;  %v579_v42 = vpop.xlane.xlu0 %578 }
 0x152   :  { %v588_v43 = vmul.f32 %v4368_v36, %v579_v42 }
 0x154   :  { %v4379_v44 = vsub.f32 %v4356_v24, %v588_v43 }
 0x156   :  { %v592_v45 = vmul.f32 %v4379_v44, %v4379_v44 }
 0x158   :  { %v596_v46 = vsel %vm576_vm4, %v592_v45, 0.0 }
 0x159   :  { %597 = vadd.xlane.f32.xlu1 %v596_v46 }
 0x1c4   :  { %v595_v4 = vpop.xlane.xlu1 %594 }
 0x1c5   :  { %v599_v7 = vmul.f32 %v595_v4, %v4368_v36 }
 0x1c7   :  { %v601_v9 = vadd.f32 1e-06, %v599_v7 }
 0x1c9   :  { %3970 = vrsqrt.f32 %v601_v9  ;;  %vm609_vm7 = vweird.f32 %v601_v9 }
 0x1cc   :  { %v598_v10 = vpop.xlane.xlu1 %597 }
 0x1cd   :  { %v600_v11 = vmul.f32 %v598_v10, %v4368_v36 }
 0x1cf   :  { %v3971_v12 = vpop.eup %3970  ;;  %v602_v13 = vadd.f32 1e-06, %v600_v11 }
 0x1d0   :  { %v604_v14 = vmul.f32 %v3971_v12, %v601_v9  ;;  %vm610_vm6 = vweird.f32 %v3971_v12 }
 0x1d1   :  { %3972 = vrsqrt.f32 %v602_v13  ;;  %vm611_vm8 = vmor %vm609_vm7, %vm610_vm6  ;;  %vm619_vm10 = vweird.f32 %v602_v13  ;;  %vm947_vm6 = vcmask 1043456  }
 0x1d2   :  { %v605_v15 = vmul.f32 %v3971_v12, %v604_v14 }
 0x1d4   :  { %v606_v16 = vmul.f32 0.5, %v605_v15 }
 0x1d6   :  { %v607_v17 = vsub.f32 1.5, %v606_v16 }
 0x1d7   :  { %v3973_v18 = vpop.eup %3972 }
 0x1d8   :  { %v608_v19 = vmul.f32 %v3971_v12, %v607_v17  ;;  %v614_v20 = vmul.f32 %v3973_v18, %v602_v13  ;;  %vm620_vm9 = vweird.f32 %v3973_v18 }
 0x1d9   :  { %vm621_vm11 = vmor %vm619_vm10, %vm620_vm9 }
 0x1da   :  { %v615_v21 = vmul.f32 %v3973_v18, %v614_v20  ;;  %v612_v22 = vsel %vm611_vm8, %v3971_v12, %v608_v19 }
 0x1db   :  { %v623_v26 = vmul.f32 %v612_v22, %v4372_v39  ;;  %v644_v39 = vld [vmem:[%s5112_s8] sm:$0x3] }
 0x1dc   :  { %v616_v23 = vmul.f32 0.5, %v615_v21  ;;  %v646_v40 = vperm.slane %v644_v39, 0  ;;  %v647_v45 = vperm.slane %v644_v39, 1 }
 0x1dd   :  { %v628_v32 = vmul.f32 %v3954_v28, %v623_v26 }
 0x1de   :  { %v617_v25 = vsub.f32 1.5, %v616_v23 }
 0x1df   :  { %v633_v35 = vadd.f32 %v3955_v33, %v628_v32 }
 0x1e0   :  { %v618_v29 = vmul.f32 %v3973_v18, %v617_v25 }
 0x1e2   :  { %v622_v30 = vsel %vm621_vm11, %v3973_v18, %v618_v29 }
 0x1e3   :  { %v624_v31 = vmul.f32 %v622_v30, %v4379_v44 }
 0x1e5   :  { %v629_v34 = vmul.f32 %v3954_v28, %v624_v31 }
 0x1e7   :  { %v634_v37 = vadd.f32 %v3955_v33, %v629_v34 }
 0x1e9   :  { %v643_v38 = vpack.c.bf16 %v634_v37, %v633_v35 }
 0x1eb   :  { %3426 = vmatmul.msk.bf16.vlgmr.msrb.gmra.mxu2 %vm572_vm3, %v643_v38  ;;  %3427 = vmatmul.msk.bf16.vlgmr.msrb.gmra.mxu3 %vm572_vm3, %v643_v38 }
 0x26e   :  { %v702_v41 = vpop.f32.mrf.mxu2  ;;  %v716_v42 = vpop.f32.mrf.mxu3 }
 0x26f   :  { %v703_v43 = vadd.f32 %v702_v41, %v646_v40  ;;  %v717_v48 = vadd.f32 %v716_v42, %v647_v45 }
 0x271   :  { %v721_v44 = vpack.c.bf16 %v703_v43, %v703_v43  ;;  %v4472_v7 = vpack.c.bf16 %v717_v48, %v717_v48 }
 0x273   :  { %772 = vrot.lane.b32.xlu1 %v721_v44, %s4071_s22  ;;  %723 = vrot.lane.b32.xlu0 %v721_v44, %s4072_s26  ;;  %v1096_v13 = vand.u32 %v4475_v8, %v4472_v7 }
 0x274   :  { %748 = vrot.lane.b32.xlu2 %v721_v44, %s4073_s24 }
 0x276   :  { %v704_v46 = vpop.f32.mrf.mxu2  ;;  %v718_v47 = vpop.f32.mrf.mxu3 }
 0x277   :  { %v705_v49 = vadd.f32 %v704_v46, %v646_v40  ;;  %v719_v50 = vadd.f32 %v718_v47, %v647_v45 }
 0x279   :  { %v818_v51 = vpack.c.bf16 %v705_v49, %v703_v43  ;;  %v4450_v52 = vpack.c.bf16 %v719_v50, %v717_v48 }
 0x27b   :  { %v820_v53 = vshrl.u32 %v818_v51, 16  ;;  %v823_v54 = vshll.u32 %v818_v51, 16 }
 0x27c   :  { %746 = vrot.lane.b32.xlu2 %v721_v44, %s4074_s2 }
 0x27d   :  { %v822_v55 = vrot.slane %v820_v53, 2  ;;  %v825_v56 = vrot.slane %v823_v54, 3 }
 0x27f   :  { %v826_v57 = vor.u32 %v825_v56, %v822_v55 }
 0x281   :  { %875 = vrot.lane.b32.xlu1 %v826_v57, %s4071_s22  ;;  %827 = vrot.lane.b32.xlu0 %v826_v57, %s4072_s26 }
 0x284   :  { %796 = vrot.lane.b32.xlu2 %v721_v44, %s5132_s25 }
 0x289   :  { %899 = vrot.lane.b32.xlu1 %v826_v57, %s5132_s25  ;;  %849 = vrot.lane.b32.xlu0 %v826_v57, %s4074_s2 }
 0x28c   :  { %770 = vrot.lane.b32.xlu2 %v721_v44, %s4076_s3 }
 0x291   :  { %897 = vrot.lane.b32.xlu0 %v826_v57, %s5130_s27 }
 0x294   :  { %794 = vrot.lane.b32.xlu2 %v721_v44, %s5130_s27 }
 0x29c   :  { %851 = vrot.lane.b32.xlu2 %v826_v57, %s4073_s24 }
 0x2a4   :  { %873 = vrot.lane.b32.xlu2 %v826_v57, %s4076_s3 }
 0x2ce   :  { %v749_v58 = vpop.permute.xlu2 %748 }
 0x2cf   :  { %v754_v59 = vsel %vm725_vm12, %v749_v58, 0 }
 0x2d0   :  { %763 = vmatpush.bf16.xpose.msra.mxu3 %v754_v59 }
 0x2d6   :  { %v747_v60 = vpop.permute.xlu2 %746 }
 0x2d7   :  { %3429 = vmatmul.msk.bf16.vlgmr.msra.gmra.mxu3 %vm725_vm12, %v747_v60 }
 0x2de   :  { %v797_v61 = vpop.permute.xlu2 %796 }
 0x2df   :  { %v802_v62 = vsel %vm725_vm12, %v797_v61, 0 }
 0x2e0   :  { %811 = vmatpush.bf16.xpose.msra.mxu1 %v802_v62 }
 0x2e5   :  { %v773_v63 = vpop.permute.xlu1 %772  ;;  %v724_v0 = vpop.permute.xlu0 %723 }
 0x2e6   :  { %v778_v1 = vsel %vm725_vm12, %v773_v63, 0  ;;  %v730_v2 = vsel %vm725_vm12, %v724_v0, 0  ;;  %v771_v3 = vpop.permute.xlu2 %770 }
 0x2e7   :  { %739 = vmatpush.bf16.xpose.msra.mxu2 %v730_v2  ;;  %787 = vmatpush.bf16.xpose.msrb.mxu3 %v778_v1 }
 0x2ee   :  { %v795_v4 = vpop.permute.xlu2 %794  ;;  %3428 = vmatmul.msk.bf16.vlgmr.msra.gmra.mxu2 %vm725_vm12, %v721_v44  ;;  %3430 = vmatmul.msk.bf16.vlgmr.msrb.gmra.mxu3 %vm725_vm12, %v771_v3 }
 0x2ef   :  { %3431 = vmatmul.msk.bf16.vlgmr.msra.gmra.mxu1 %vm725_vm12, %v795_v4 }
 0x2f3   :  { %v876_v9 = vpop.permute.xlu1 %875  ;;  %v828_v10 = vpop.permute.xlu0 %827 }
 0x2f4   :  { %v881_v11 = vsel %vm725_vm12, %v876_v9, 0  ;;  %v833_v12 = vsel %vm725_vm12, %v828_v10, 0 }
 0x2f5   :  { %842 = vmatpush.bf16.xpose.msrb.mxu2 %v833_v12  ;;  %890 = vmatpush.bf16.xpose.msra.mxu0 %v881_v11 }
 0x2f6   :  { %v852_v14 = vpop.permute.xlu2 %851 }
 0x2f7   :  { %v857_v15 = vsel %vm725_vm12, %v852_v14, 0 }
 0x2f8   :  { %866 = vmatpush.bf16.xpose.msra.mxu3 %v857_v15 }
 0x2fb   :  { %v900_v16 = vpop.permute.xlu1 %899  ;;  %v850_v17 = vpop.permute.xlu0 %849 }
 0x2fc   :  { %v905_v18 = vsel %vm725_vm12, %v900_v16, 0 }
 0x2fd   :  { %1105 = vmatpush.bf16.msra.mxu2 %v1096_v13  ;;  %914 = vmatpush.bf16.xpose.msrb.mxu1 %v905_v18 }
 0x2fe   :  { %v874_v19 = vpop.permute.xlu2 %873  ;;  %3432 = vmatmul.msk.bf16.vlgmr.msrb.gmra.mxu2 %vm725_vm12, %v826_v57 }
 0x2ff   :  { %3433 = vmatmul.msk.bf16.vlgmr.msra.gmra.mxu3 %vm725_vm12, %v850_v17  ;;  %3434 = vmatmul.msk.bf16.vlgmr.msra.gmra.mxu0 %vm725_vm12, %v874_v19 }
 0x303   :  { %v898_v20 = vpop.permute.xlu0 %897 }
 0x304   :  { %3435 = vmatmul.msk.bf16.vlgmr.msrb.gmra.mxu1 %vm725_vm12, %v898_v20 }
 0x35a   :  { %v765_v21 = vpop.f32.mrf.mxu3 }
 0x35b   :  { %v769_v25 = vmul.f32 0.25, %v765_v21 }
 0x35d   :  { %v922_v30 = vrot.slane %v769_v25, 3 }
 0x362   :  { %v767_v22 = vpop.f32.mrf.mxu3 }
 0x36c   :  { %v813_v23 = vpop.f32.mrf.mxu1 }
 0x36d   :  { %v817_v26 = vmul.f32 0.25, %v813_v23 }
 0x36f   :  { %v928_v37 = vrot.slane %v817_v26, 1 }
 0x371   :  { %v741_v28 = vpop.f32.mrf.mxu2  ;;  %v789_v29 = vpop.f32.mrf.mxu3 }
 0x372   :  { %v745_v31 = vmul.f32 0.25, %v741_v28  ;;  %v793_v32 = vmul.f32 0.25, %v789_v29 }
 0x374   :  { %v925_v33 = vrot.slane %v793_v32, 6  ;;  %v815_v34 = vpop.f32.mrf.mxu1  ;;  %v942_v35 = vsel %vm566_vm1, %v745_v31, %v922_v30  ;;  %v1297_v32 = vshrl.u32 %v4450_v52, 16 }
 0x375   :  { %v954_v38 = vsel %vm953_vm15, %v942_v35, -inf }
 0x376   :  { %955 = vmax.xlane.f32.xlu2 %v954_v38  ;;  %v944_v39 = vsel %vm943_vm13, %v922_v30, %v925_v33  ;;  %v1300_v33 = vshll.u32 %v4450_v52, 16 }
 0x377   :  { %v946_v40 = vsel %vm945_vm5, %v944_v39, %v928_v37 }
 0x378   :  { %v957_v41 = vsel %vm953_vm15, %v946_v40, -inf }
 0x379   :  { %v743_v42 = vpop.f32.mrf.mxu2  ;;  %v791_v43 = vpop.f32.mrf.mxu3  ;;  %958 = vmax.xlane.f32.xlu1 %v957_v41 }
 0x37c   :  { %v892_v44 = vpop.f32.mrf.mxu0 }
 0x37d   :  { %v896_v45 = vmul.f32 0.25, %v892_v44 }
 0x37f   :  { %v937_v53 = vrot.slane %v896_v45, 2 }
 0x381   :  { %v844_v46 = vpop.f32.mrf.mxu2  ;;  %v916_v47 = vpop.f32.mrf.mxu1 }
 0x382   :  { %v848_v48 = vmul.f32 0.25, %v844_v46  ;;  %v868_v49 = vpop.f32.mrf.mxu3  ;;  %v920_v50 = vmul.f32 0.25, %v916_v47 }
 0x383   :  { %v872_v51 = vmul.f32 0.25, %v868_v49 }
 0x384   :  { %v931_v54 = vrot.slane %v848_v48, 4  ;;  %v940_v55 = vrot.slane %v920_v50, 5  ;;  %v894_v56 = vpop.f32.mrf.mxu0 }
 0x385   :  { %v934_v57 = vrot.slane %v872_v51, 7 }
 0x386   :  { %v948_v58 = vsel %vm947_vm6, %v928_v37, %v931_v54  ;;  %v952_v59 = vsel %vm5127_vm14, %v937_v53, %v940_v55  ;;  %v1302_v37 = vrot.slane %v1300_v33, 3 }
 0x387   :  { %v960_v60 = vsel %vm953_vm15, %v948_v58, -inf  ;;  %v966_v61 = vsel %vm953_vm15, %v952_v59, -inf  ;;  %v949_v62 = vsel %vm5129_vm0, %v931_v54, %v934_v57 }
 0x388   :  { %961 = vmax.xlane.f32.xlu0 %v960_v60  ;;  %967 = vmax.xlane.f32.xlu1 %v966_v61  ;;  %v950_v63 = vsel %vm5128_vm2, %v949_v62, %v937_v53 }
 0x389   :  { %v846_v0 = vpop.f32.mrf.mxu2  ;;  %v918_v1 = vpop.f32.mrf.mxu1  ;;  %v963_v2 = vsel %vm953_vm15, %v950_v63, -inf }
 0x38a   :  { %v870_v3 = vpop.f32.mrf.mxu3  ;;  %964 = vmax.xlane.f32.xlu2 %v963_v2 }
 0x3e9   :  { %v956_v4 = vpop.xlane.xlu2 %955 }
 0x3ea   :  { %v969_v5 = vsub.f32 %v942_v35, %v956_v4  ;;  %v1299_v35 = vrot.slane %v1297_v32, 2 }
 0x3ec   :  { %v974_v6 = vmul.f32 1.442695, %v969_v5  ;;  %v959_v9 = vpop.xlane.xlu1 %958  ;;  %v4523_v38 = vor.u32 %v1302_v37, %v1299_v35 }
 0x3ed   :  { %v970_v10 = vsub.f32 %v946_v40, %v959_v9 }
 0x3ee   :  { %3974 = vpow2.f32 %v974_v6 }
 0x3ef   :  { %v976_v11 = vmul.f32 1.442695, %v970_v10 }
 0x3f1   :  { %3976 = vpow2.f32 %v976_v11 }
 0x3f4   :  { %v4499_v12 = vpop.eup %3974 }
 0x3f5   :  { %v984_v13 = vsel %vm953_vm15, %v4499_v12, 0.0 }
 0x3f6   :  { %985 = vadd.xlane.f32.xlu0 %v984_v13 }
 0x3f7   :  { %v4503_v14 = vpop.eup %3976 }
 0x3f8   :  { %v987_v15 = vsel %vm953_vm15, %v4503_v14, 0.0 }
 0x3f9   :  { %988 = vadd.xlane.f32.xlu2 %v987_v15 }
 0x3fb   :  { %v962_v16 = vpop.xlane.xlu0 %961  ;;  %v968_v17 = vpop.xlane.xlu1 %967 }
 0x3fc   :  { %v971_v18 = vsub.f32 %v948_v58, %v962_v16  ;;  %v973_v19 = vsub.f32 %v952_v59, %v968_v17 }
 0x3fd   :  { %v965_v20 = vpop.xlane.xlu2 %964 }
 0x3fe   :  { %v978_v21 = vmul.f32 1.442695, %v971_v18  ;;  %v982_v22 = vmul.f32 1.442695, %v973_v19  ;;  %v972_v23 = vsub.f32 %v950_v63, %v965_v20 }
 0x400   :  { %3978 = vpow2.f32 %v978_v21  ;;  %v980_v25 = vmul.f32 1.442695, %v972_v23 }
 0x401   :  { %3980 = vpow2.f32 %v982_v22 }
 0x402   :  { %3982 = vpow2.f32 %v980_v25 }
 0x406   :  { %v4507_v26 = vpop.eup %3978 }
 0x407   :  { %v4509_v28 = vpop.eup %3980  ;;  %v990_v29 = vsel %vm953_vm15, %v4507_v26, 0.0 }
 0x408   :  { %991 = vadd.xlane.f32.xlu1 %v990_v29  ;;  %v996_v30 = vsel %vm953_vm15, %v4509_v28, 0.0  ;;  %v4515_v31 = vpop.eup %3982 }
 0x409   :  { %997 = vadd.xlane.f32.xlu0 %v996_v30  ;;  %v993_v34 = vsel %vm953_vm15, %v4515_v31, 0.0 }
 0x411   :  { %994 = vadd.xlane.f32.xlu0 %v993_v34  ;;  %1145 = vrot.lane.b32.xlu2 %v4472_v7, %s4074_s2 }
 0x419   :  { %1353 = vrot.lane.b32.xlu2 %v4523_v38, %s4074_s2 }
 0x421   :  { %1193 = vrot.lane.b32.xlu1 %v4472_v7, %s4076_s3  ;;  %1451 = vrot.lane.b32.xlu2 %v4523_v38, %s5130_s27 }
 0x425   :  { %1247 = vrot.lane.b32.xlu0 %v4472_v7, %s5130_s27 }
 0x429   :  { %1399 = vrot.lane.b32.xlu1 %v4523_v38, %s4076_s3 }
 0x469   :  { %v986_v52 = vpop.xlane.xlu0 %985 }
 0x46a   :  { %3984 = vrcp.f32 %v986_v52  ;;  %v1010_v44 = vand.u32 2147483648, %v986_v52  ;;  %v1008_v48 = vand.u32 2147483647, %v986_v52  ;;  %vm1004_vm8 = vweird.f32 %v986_v52 }
 0x46c   :  { %v989_v39 = vpop.xlane.xlu2 %988  ;;  %v1011_v53 = vor.u32 1.1754944e-38, %v1010_v44  ;;  %vm1009_vm11 = vcmp.eq.f32.partialorder %v1008_v48, 8.507059e+37 }
 0x46d   :  { %3986 = vrcp.f32 %v989_v39  ;;  %v1025_v51 = vand.u32 2147483648, %v989_v39  ;;  %v1023_v55 = vand.u32 2147483647, %v989_v39  ;;  %vm1019_vm14 = vweird.f32 %v989_v39 }
 0x46f   :  { %v1026_v60 = vor.u32 1.1754944e-38, %v1025_v51  ;;  %vm1024_vm0 = vcmp.eq.f32.partialorder %v1023_v55, 8.507059e+37 }
 0x470   :  { %v3985_v40 = vpop.eup %3984 }
 0x471   :  { %v1000_v41 = vmul.f32 %v3985_v40, %v986_v52  ;;  %vm1005_vm7 = vweird.f32 %v3985_v40 }
 0x472   :  { %vm1006_vm9 = vmor %vm1004_vm8, %vm1005_vm7 }
 0x473   :  { %v3987_v42 = vpop.eup %3986  ;;  %v1001_v43 = vsub.f32 1.0, %v1000_v41 }
 0x474   :  { %v1015_v45 = vmul.f32 %v3987_v42, %v989_v39  ;;  %v1146_v46 = vpop.permute.xlu2 %1145  ;;  %vm1020_vm10 = vweird.f32 %v3987_v42 }
 0x475   :  { %v1002_v47 = vmul.f32 %v3985_v40, %v1001_v43  ;;  %v1151_v49 = vand.u32 %v1146_v46, %v4475_v8  ;;  %vm1021_vm2 = vmor %vm1019_vm14, %vm1020_vm10 }
 0x476   :  { %v1016_v7 = vsub.f32 1.0, %v1015_v45  ;;  %v1308_v45 = vand.u32 %v4523_v38, %v4475_v8 }
 0x477   :  { %v1003_v50 = vadd.f32 %v3985_v40, %v1002_v47  ;;  %1160 = vmatpush.bf16.msrb.mxu0 %v1151_v49 }
 0x478   :  { %v1017_v54 = vmul.f32 %v3987_v42, %v1016_v7 }
 0x479   :  { %v1007_v56 = vsel %vm1006_vm9, %v3985_v40, %v1003_v50 }
 0x47a   :  { %v1012_v57 = vsel %vm1009_vm11, %v1011_v53, %v1007_v56  ;;  %v1018_v58 = vadd.f32 %v3987_v42, %v1017_v54 }
 0x47b   :  { %v1013_v59 = vmul.f32 %v4499_v12, %v1012_v57  ;;  %v992_v61 = vpop.xlane.xlu1 %991 }
 0x47c   :  { %v1022_v62 = vsel %vm1021_vm2, %v3987_v42, %v1018_v58  ;;  %3988 = vrcp.f32 %v992_v61  ;;  %v4537_v63 = vpop.xlane.xlu0 %997  ;;  %v1040_v15 = vand.u32 2147483648, %v992_v61  ;;  %v1038_v18 = vand.u32 2147483647, %v992_v61  ;;  %v1354_v32 = vpop.permute.xlu2 %1353 }
 0x47d   :  { %v1027_v0 = vsel %vm1024_vm0, %v1026_v60, %v1022_v62  ;;  %v1088_v2 = vpack.c.bf16 %v1013_v59, %v1013_v59  ;;  %vm1034_vm0 = vweird.f32 %v992_v61  ;;  %v1359_v54 = vand.u32 %v1354_v32, %v4475_v8 }
 0x47e   :  { %v1028_v1 = vmul.f32 %v4503_v14, %v1027_v0  ;;  %v1041_v19 = vor.u32 1.1754944e-38, %v1040_v15  ;;  %vm1039_vm7 = vcmp.eq.f32.partialorder %v1038_v18, 8.507059e+37  ;;  %v1070_v0 = vand.u32 2147483648, %v4537_v63 }
 0x47f   :  { %3436 = vmatmul.msk.bf16.vlgmr.msra.gmra.mxu2 %vm953_vm15, %v1088_v2 }
 0x480   :  { %v1135_v3 = vpack.c.bf16 %v1028_v1, %v1013_v59  ;;  %v1190_v52 = vpack.c.bf16 %v1028_v1, %v1028_v1 }
 0x482   :  { %v3989_v4 = vpop.eup %3988  ;;  %v1137_v5 = vshrl.u32 %v1135_v3, 16  ;;  %v1140_v6 = vshll.u32 %v1135_v3, 16  ;;  %v1192_v48 = vrot.slane %v1190_v52, 1 }
 0x483   :  { %v1030_v9 = vmul.f32 %v3989_v4, %v992_v61  ;;  %vm1035_vm2 = vweird.f32 %v3989_v4 }
 0x484   :  { %v995_v10 = vpop.xlane.xlu0 %994  ;;  %v1139_v11 = vrot.slane %v1137_v5, 2  ;;  %v1142_v12 = vrot.slane %v1140_v6, 3  ;;  %vm1036_vm14 = vmor %vm1034_vm0, %vm1035_vm2  ;;  %v1452_v55 = vpop.permute.xlu2 %1451  ;;  %vm1064_vm0 = vweird.f32 %v4537_v63 }
 0x485   :  { %v1031_v13 = vsub.f32 1.0, %v1030_v9  ;;  %3990 = vrcp.f32 %v995_v10  ;;  %v1055_v37 = vand.u32 2147483648, %v995_v10  ;;  %vm1049_vm9 = vweird.f32 %v995_v10 }
 0x486   :  { %v1143_v16 = vor.u32 %v1142_v12, %v1139_v11  ;;  %3992 = vrcp.f32 %v4537_v63  ;;  %v1053_v39 = vand.u32 2147483647, %v995_v10  ;;  %v1457_v58 = vand.u32 %v1452_v55, %v4475_v8 }
 0x487   :  { %v1032_v17 = vmul.f32 %v3989_v4, %v1031_v13  ;;  %v1056_v46 = vor.u32 1.1754944e-38, %v1055_v37 }
 0x488   :  { %3442 = vmatmul.msk.bf16.vlgmr.msrb.gmra.mxu0 %vm953_vm15, %v1143_v16  ;;  %vm1054_vm11 = vcmp.eq.f32.partialorder %v1053_v39, 8.507059e+37 }
 0x489   :  { %v1033_v14 = vadd.f32 %v3989_v4, %v1032_v17 }
 0x48b   :  { %v3991_v20 = vpop.eup %3990  ;;  %v1037_v21 = vsel %vm1036_vm14, %v3989_v4, %v1033_v14  ;;  %v1071_v4 = vor.u32 1.1754944e-38, %v1070_v0 }
 0x48c   :  { %v1042_v22 = vsel %vm1039_vm7, %v1041_v19, %v1037_v21  ;;  %v1045_v23 = vmul.f32 %v3991_v20, %v995_v10  ;;  %vm1050_vm8 = vweird.f32 %v3991_v20  ;;  %v3993_v34 = vpop.eup %3992  ;;  %v3878_v21 = vld [vmem:[%s5113_s9 + $0x18] sm:$0xff] }
 0x48d   :  { %v1043_v25 = vmul.f32 %v4507_v26, %v1042_v22  ;;  %vm1051_vm10 = vmor %vm1049_vm9, %vm1050_vm8  ;;  %v1060_v44 = vmul.f32 %v3993_v34, %v4537_v63  ;;  %vm1065_vm2 = vweird.f32 %v3993_v34  ;;  %v3877_v22 = vld [vmem:[%s5113_s9 + $0x10] sm:$0xff] }
 0x48e   :  { %v1046_v29 = vsub.f32 1.0, %v1045_v23  ;;  %vm1066_vm14 = vmor %vm1064_vm0, %vm1065_vm2 }
 0x48f   :  { %v1238_v30 = vpack.c.bf16 %v1043_v25, %v1028_v1  ;;  %v1061_v53 = vsub.f32 1.0, %v1060_v44 }
 0x490   :  { %v1047_v33 = vmul.f32 %v3991_v20, %v1046_v29 }
 0x491   :  { %v1240_v41 = vshrl.u32 %v1238_v30, 16  ;;  %v1243_v42 = vshll.u32 %v1238_v30, 16  ;;  %v1062_v60 = vmul.f32 %v3993_v34, %v1061_v53 }
 0x492   :  { %v1048_v35 = vadd.f32 %v3991_v20, %v1047_v33 }
 0x493   :  { %v1194_v40 = vpop.permute.xlu1 %1193  ;;  %v1242_v49 = vrot.slane %v1240_v41, 3  ;;  %v1245_v7 = vrot.slane %v1243_v42, 4  ;;  %v1063_v62 = vadd.f32 %v3993_v34, %v1062_v60 }
 0x494   :  { %v1199_v43 = vand.u32 %v1194_v40, %v4475_v8  ;;  %v1052_v26 = vsel %vm1051_vm10, %v3991_v20, %v1048_v35  ;;  %v3875_v20 = vld [vmem:[%s5113_s9] sm:$0xff] }
 0x495   :  { %v1057_v50 = vsel %vm1054_vm11, %v1056_v46, %v1052_v26  ;;  %v1246_v57 = vor.u32 %v1245_v7, %v1242_v49  ;;  %v1067_v3 = vsel %vm1066_vm14, %v3993_v34, %v1063_v62  ;;  %1128 = vmatpush.bf16.msrb.mxu3 %v3875_v20  ;;  %v3956_v62 = vld [vmem:[%s5114_s10] ss:$0 sm:$0xff] }
 0x496   :  { %1208 = vmatpush.bf16.msrb.mxu2 %v1199_v43  ;;  %v1058_v38 = vmul.f32 %v4515_v31, %v1057_v50  ;;  %v1068_v31 = vand.u32 2147483647, %v4537_v63 }
 0x497   :  { %v1248_v47 = vpop.permute.xlu0 %1247 }
 0x498   :  { %v1253_v51 = vand.u32 %v1248_v47, %v4475_v8  ;;  %v1345_v61 = vpack.c.bf16 %v1058_v38, %v1058_v38  ;;  %v1292_v1 = vpack.c.bf16 %v1058_v38, %v1043_v25  ;;  %vm1069_vm7 = vcmp.eq.f32.partialorder %v1068_v31, 8.507059e+37 }
 0x499   :  { %3448 = vmatmul.msk.bf16.vlgmr.msrb.gmra.mxu2 %vm953_vm15, %v1192_v48  ;;  %v1072_v9 = vsel %vm1069_vm7, %v1071_v4, %v1067_v3  ;;  %1231 = vmatpush.bf16.msra.mxu3 %v3877_v22  ;;  %v1087_v4 = vadd.f32 %v3956_v62, %v4356_v24 }
 0x49a   :  { %1317 = vmatpush.bf16.msra.mxu2 %v1308_v45  ;;  %1262 = vmatpush.bf16.msra.mxu0 %v1253_v51  ;;  %v1349_v2 = vshll.u32 %v1345_v61, 16  ;;  %v1295_v5 = vrot.slane %v1292_v1, 2  ;;  %v1347_v10 = vshrl.u32 %v1345_v61, 16  ;;  %v1073_v11 = vmul.f32 %v4509_v28, %v1072_v9  ;;  %v3876_v28 = vld [vmem:[%s5113_s9 + $0x8] sm:$0xff] }
 0x49b   :  { %v1400_v56 = vpop.permute.xlu1 %1399  ;;  %1183 = vmatpush.bf16.msra.mxu1 %v3876_v28  ;;  %v1086_v1 = vadd.f32 %v3956_v62, %v4362_v27 }
 0x49c   :  { %v1405_v59 = vand.u32 %v1400_v56, %v4475_v8  ;;  %v1351_v6 = vrot.slane %v1349_v2, 1  ;;  %v1442_v13 = vpack.c.bf16 %v1073_v11, %v1073_v11  ;;  %v1396_v15 = vpack.c.bf16 %v1073_v11, %v1058_v38 }
 0x49d   :  { %3454 = vmatmul.msk.bf16.vlgmr.msra.gmra.mxu0 %vm953_vm15, %v1246_v57 }
 0x49e   :  { %1368 = vmatpush.bf16.msrb.mxu0 %v1359_v54  ;;  %1414 = vmatpush.bf16.msrb.mxu2 %v1405_v59  ;;  %v1352_v12 = vor.u32 %v1351_v6, %v1347_v10  ;;  %v1444_v63 = vshrl.u32 %v1442_v13, 16  ;;  %v1447_v16 = vshll.u32 %v1442_v13, 16  ;;  %v1398_v17 = vrot.slane %v1396_v15, 3 }
 0x49f   :  { %1285 = vmatpush.bf16.msrb.mxu1 %v3878_v21 }
 0x4a0   :  { %v1446_v18 = vrot.slane %v1444_v63, 1  ;;  %v1449_v14 = vrot.slane %v1447_v16, 2 }
 0x4a2   :  { %1466 = vmatpush.bf16.msra.mxu0 %v1457_v58  ;;  %v1450_v19 = vor.u32 %v1449_v14, %v1446_v18 }
 0x4a9   :  { %3460 = vmatmul.msk.bf16.vlgmr.msra.gmra.mxu2 %vm953_vm15, %v1295_v5 }
 0x4ad   :  { %3462 = vmatmul.msk.bf16.vlgmr.msrb.gmra.mxu0 %vm953_vm15, %v1352_v12 }
 0x4b9   :  { %3464 = vmatmul.msk.bf16.vlgmr.msrb.gmra.mxu2 %vm953_vm15, %v1398_v17 }
 0x4bd   :  { %3466 = vmatmul.msk.bf16.vlgmr.msra.gmra.mxu0 %vm953_vm15, %v1450_v19 }
 0x502   :  { %v1107_v23 = vpop.f32.mrf.mxu2 }
 0x503   :  { %v1111_v25 = vpack.c.bf16 %v1107_v23, %v1107_v23 }
 0x505   :  { %v1162_v29 = vpop.f32.mrf.mxu0  ;;  %3441 = vmatmul.msk.bf16.vlgmr.msrb.gmra.mxu3 %vm725_vm12, %v1111_v25 }
 0x506   :  { %v1166_v30 = vpack.c.bf16 %v1162_v29, %v1162_v29  ;;  %1334 = vmatpush.bf16.msrb.mxu3 %v3875_v20 }
 0x508   :  { %3447 = vmatmul.msk.bf16.vlgmr.msra.gmra.mxu1 %vm725_vm12, %v1166_v30 }
 0x509   :  { %1385 = vmatpush.bf16.msra.mxu1 %v3876_v28 }
 0x50a   :  { %v1109_v32 = vpop.f32.mrf.mxu2 }
 0x50d   :  { %v1164_v33 = vpop.f32.mrf.mxu0 }
 0x51a   :  { %v1264_v34 = vpop.f32.mrf.mxu0 }
 0x51b   :  { %v1268_v35 = vpack.c.bf16 %v1264_v34, %v1264_v34 }
 0x51c   :  { %v1210_v37 = vpop.f32.mrf.mxu2 }
 0x51d   :  { %v1214_v52 = vpack.c.bf16 %v1210_v37, %v1210_v37  ;;  %3459 = vmatmul.msk.bf16.vlgmr.msrb.gmra.mxu1 %vm725_vm12, %v1268_v35 }
 0x51e   :  { %1483 = vmatpush.bf16.msrb.mxu1 %v3878_v21 }
 0x51f   :  { %3453 = vmatmul.msk.bf16.vlgmr.msra.gmra.mxu3 %vm725_vm12, %v1214_v52 }
 0x520   :  { %1431 = vmatpush.bf16.msra.mxu3 %v3877_v22 }
 0x522   :  { %v1266_v39 = vpop.f32.mrf.mxu0 }
 0x523   :  { %v3494_v39 = vld [vmem:[%s5117_s13 + $0x30] sm:$0xf] }
 0x524   :  { %v1212_v40 = vpop.f32.mrf.mxu2 }
 0x525   :  { %v3886_v40 = vld [vmem:[%s5117_s13 + $0x34] sm:$0xf0] }
 0x52a   :  { %v1370_v41 = vpop.f32.mrf.mxu0 }
 0x52b   :  { %v1374_v42 = vpack.c.bf16 %v1370_v41, %v1370_v41  ;;  %v3885_v41 = vld [vmem:[%s5117_s13 + $0x34] sm:$0xf] }
 0x52c   :  { %v1319_v43 = vpop.f32.mrf.mxu2 }
 0x52d   :  { %v1323_v44 = vpack.c.bf16 %v1319_v43, %v1319_v43  ;;  %3463 = vmatmul.msk.bf16.vlgmr.msra.gmra.mxu1 %vm725_vm12, %v1374_v42  ;;  %v3495_v42 = vor.u32 %v3886_v40, %v3494_v39  ;;  %v3496_v43 = vld [vmem:[%s5117_s13 + $0x38] sm:$0xf0]  ;;  %v3899_v39 = vld [vmem:[%s5119_s15 + $0x60] sm:$0xff] }
 0x52e   :  { %v3890_v40 = vld [vmem:[%s5119_s15 + $0x18] sm:$0xff] }
 0x52f   :  { %3461 = vmatmul.msk.bf16.vlgmr.msrb.gmra.mxu3 %vm725_vm12, %v1323_v44  ;;  %v3499_v44 = vor.u32 %v3885_v41, %v3496_v43  ;;  %1613 = vmatpush.bf16.msra.mxu2 %v3495_v42  ;;  %v3898_v41 = vld [vmem:[%s5119_s15 + $0x58] sm:$0xff]  ;;  %v3889_v42 = vld [vmem:[%s5119_s15 + $0x10] sm:$0xff] }
 0x530   :  { %v3897_v43 = vld [vmem:[%s5119_s15 + $0x50] sm:$0xff] }
 0x531   :  { %1627 = vmatpush.bf16.msrb.mxu3 %v3499_v44  ;;  %v3888_v44 = vld [vmem:[%s5119_s15 + $0x8] sm:$0xff] }
 0x532   :  { %v1372_v26 = vpop.f32.mrf.mxu0 }
 0x533   :  { %v3486_v26 = vld [vmem:[%s5117_s13 + $0x20] sm:$0xf] }
 0x534   :  { %v1321_v45 = vpop.f32.mrf.mxu2 }
 0x535   :  { %v3884_v45 = vld [vmem:[%s5117_s13 + $0x24] sm:$0xf0] }
 0x53a   :  { %v1468_v46 = vpop.f32.mrf.mxu0 }
 0x53b   :  { %v1472_v47 = vpack.c.bf16 %v1468_v46, %v1468_v46  ;;  %v3883_v46 = vld [vmem:[%s5117_s13 + $0x24] sm:$0xf] }
 0x53c   :  { %v1416_v48 = vpop.f32.mrf.mxu2 }
 0x53d   :  { %v1420_v49 = vpack.c.bf16 %v1416_v48, %v1416_v48  ;;  %3467 = vmatmul.msk.bf16.vlgmr.msrb.gmra.mxu1 %vm725_vm12, %v1472_v47  ;;  %v3487_v47 = vor.u32 %v3884_v45, %v3486_v26  ;;  %v3488_v48 = vld [vmem:[%s5117_s13 + $0x28] sm:$0xf0]  ;;  %v1560_v45 = vld [vmem:[%s5118_s14] sm:$0x3] }
 0x53e   :  { %v3896_v26 = vld [vmem:[%s5119_s15 + $0x48] sm:$0xff] }
 0x53f   :  { %3465 = vmatmul.msk.bf16.vlgmr.msra.gmra.mxu3 %vm725_vm12, %v1420_v49  ;;  %v3491_v49 = vor.u32 %v3883_v46, %v3488_v48  ;;  %1614 = vmatpush.bf16.msra.mxu2 %v3487_v47  ;;  %v1562_v46 = vperm.slane %v1560_v45, 0  ;;  %v1563_v47 = vperm.slane %v1560_v45, 1  ;;  %v3887_v48 = vld [vmem:[%s5119_s15] sm:$0xff] }
 0x541   :  { %1628 = vmatpush.bf16.msrb.mxu3 %v3491_v49  ;;  %v3895_v49 = vld [vmem:[%s5119_s15 + $0x40] sm:$0xff] }
 0x542   :  { %v1470_v7 = vpop.f32.mrf.mxu0 }
 0x543   :  { %v3478_v7 = vld [vmem:[%s5117_s13 + $0x10] sm:$0xf] }
 0x544   :  { %v1418_v50 = vpop.f32.mrf.mxu2 }
 0x545   :  { %v3882_v50 = vld [vmem:[%s5117_s13 + $0x14] sm:$0xf0] }
 0x585   :  { %v1185_v51 = vpop.f32.mrf.mxu1 }
 0x588   :  { %v1130_v53 = vpop.f32.mrf.mxu3 }
 0x589   :  { %v1134_v3 = vadd.f32 %v1130_v53, %v1086_v1  ;;  %v3479_v53 = vor.u32 %v3882_v50, %v3478_v7 }
 0x58b   :  { %v1189_v9 = vadd.f32 %v1185_v51, %v1134_v3  ;;  %v3881_v51 = vld [vmem:[%s5117_s13 + $0x14] sm:$0xf]  ;;  %1615 = vmatpush.bf16.msra.mxu2 %v3479_v53 }
 0x58d   :  { %v1187_v54 = vpop.f32.mrf.mxu1 }
 0x58e   :  { %v3480_v54 = vld [vmem:[%s5117_s13 + $0x18] sm:$0xf0] }
 0x590   :  { %v1132_v55 = vpop.f32.mrf.mxu3 }
 0x591   :  { %v3483_v55 = vor.u32 %v3881_v51, %v3480_v54 }
 0x593   :  { %1629 = vmatpush.bf16.msrb.mxu3 %v3483_v55 }
 0x59a   :  { %v1287_v38 = vpop.f32.mrf.mxu1 }
 0x5a2   :  { %v1289_v56 = vpop.f32.mrf.mxu1  ;;  %v1233_v57 = vpop.f32.mrf.mxu3 }
 0x5a3   :  { %v1237_v13 = vadd.f32 %v1233_v57, %v1189_v9  ;;  %v3880_v56 = vld [vmem:[%s5117_s13 + $0x4] sm:$0xf0]  ;;  %v3879_v57 = vld [vmem:[%s5117_s13 + $0x4] sm:$0xf] }
 0x5a5   :  { %v1291_v19 = vadd.f32 %v1287_v38, %v1237_v13  ;;  %v3470_v38 = vld [vmem:[%s5117_s13] sm:$0xf] }
 0x5aa   :  { %v1387_v58 = vpop.f32.mrf.mxu1  ;;  %v1235_v59 = vpop.f32.mrf.mxu3 }
 0x5ab   :  { %v1392_v10 = vrot.slane %v1387_v58, 3  ;;  %v3471_v58 = vor.u32 %v3880_v56, %v3470_v38  ;;  %v3472_v59 = vld [vmem:[%s5117_s13 + $0x8] sm:$0xf0] }
 0x5ad   :  { %1616 = vmatpush.bf16.msra.mxu2 %v3471_v58 }
 0x5b2   :  { %v1389_v60 = vpop.f32.mrf.mxu1  ;;  %v1336_v61 = vpop.f32.mrf.mxu3 }
 0x5b3   :  { %v1341_v2 = vrot.slane %v1336_v61, 3  ;;  %v3475_v60 = vor.u32 %v3879_v57, %v3472_v59 }
 0x5b5   :  { %v1343_v5 = vadd.f32 %v1341_v2, %v1086_v1  ;;  %v1344_v6 = vadd.f32 %v1341_v2, %v1087_v4  ;;  %1630 = vmatpush.bf16.msrb.mxu3 %v3475_v60 }
 0x5b7   :  { %v1394_v15 = vadd.f32 %v1392_v10, %v1343_v5  ;;  %v1395_v63 = vadd.f32 %v1392_v10, %v1344_v6 }
 0x5ba   :  { %v1485_v0 = vpop.f32.mrf.mxu1  ;;  %v1338_v31 = vpop.f32.mrf.mxu3 }
 0x5bb   :  { %v1490_v17 = vrot.slane %v1485_v0, 3 }
 0x5c2   :  { %v1487_v11 = vpop.f32.mrf.mxu1  ;;  %v1433_v12 = vpop.f32.mrf.mxu3 }
 0x5c3   :  { %v1438_v16 = vrot.slane %v1433_v12, 3 }
 0x5c5   :  { %v1440_v18 = vadd.f32 %v1438_v16, %v1394_v15  ;;  %v1441_v14 = vadd.f32 %v1438_v16, %v1395_v63  ;;  %v3957_v16 = vld [vmem:[%s5115_s11] ss:$0 sm:$0xff] }
 0x5c7   :  { %v1492_v20 = vadd.f32 %v1490_v17, %v1440_v18  ;;  %v4588_v27 = vadd.f32 %v1490_v17, %v1441_v14  ;;  %v3958_v14 = vld [vmem:[%s5116_s12] ss:$0 sm:$0xff] }
 0x5c9   :  { %v1500_v24 = vsel %vm576_vm4, %v4588_v27, 0.0  ;;  %v4593_v28 = vsel %vm566_vm1, %v1291_v19, %v1492_v20 }
 0x5ca   :  { %v1435_v21 = vpop.f32.mrf.mxu3  ;;  %1501 = vadd.xlane.f32.xlu1 %v1500_v24  ;;  %v1497_v22 = vsel %vm572_vm3, %v4593_v28, 0.0 }
 0x5cb   :  { %1498 = vadd.xlane.f32.xlu0 %v1497_v22 }
 0x63d   :  { %v1502_v23 = vpop.xlane.xlu1 %1501 }
 0x63e   :  { %v1504_v25 = vmul.f32 %v1502_v23, %v4368_v36  ;;  %v1499_v29 = vpop.xlane.xlu0 %1498 }
 0x63f   :  { %v1503_v30 = vmul.f32 %v1499_v29, %v4368_v36 }
 0x640   :  { %v4600_v32 = vsub.f32 %v4588_v27, %v1504_v25 }
 0x641   :  { %v4603_v33 = vsub.f32 %v4593_v28, %v1503_v30  ;;  %v3894_v30 = vld [vmem:[%s5119_s15 + $0x38] sm:$0xff] }
 0x642   :  { %v1508_v34 = vmul.f32 %v4600_v32, %v4600_v32  ;;  %1803 = vmatpush.bf16.msrb.mxu0 %v3894_v30 }
 0x643   :  { %v1507_v35 = vmul.f32 %v4603_v33, %v4603_v33 }
 0x644   :  { %v1512_v37 = vsel %vm576_vm4, %v1508_v34, 0.0  ;;  %v3901_v34 = vld [vmem:[%s5119_s15 + $0x70] sm:$0xff] }
 0x645   :  { %1513 = vadd.xlane.f32.xlu0 %v1512_v37  ;;  %v1509_v52 = vsel %vm572_vm3, %v1507_v35, 0.0  ;;  %v3892_v35 = vld [vmem:[%s5119_s15 + $0x28] sm:$0xff] }
 0x646   :  { %1510 = vadd.xlane.f32.xlu2 %v1509_v52  ;;  %v3900_v37 = vld [vmem:[%s5119_s15 + $0x68] sm:$0xff]  ;;  %v3891_v52 = vld [vmem:[%s5119_s15 + $0x20] sm:$0xff] }
 0x6b8   :  { %v1514_v61 = vpop.xlane.xlu0 %1513 }
 0x6b9   :  { %v1516_v62 = vmul.f32 %v1514_v61, %v4368_v36  ;;  %v1511_v0 = vpop.xlane.xlu2 %1510 }
 0x6ba   :  { %v1515_v31 = vmul.f32 %v1511_v0, %v4368_v36 }
 0x6bb   :  { %v1518_v1 = vadd.f32 1e-06, %v1516_v62 }
 0x6bc   :  { %v1517_v2 = vadd.f32 1e-06, %v1515_v31 }
 0x6bd   :  { %3994 = vrsqrt.f32 %v1518_v1  ;;  %vm1535_vm10 = vweird.f32 %v1518_v1 }
 0x6be   :  { %3996 = vrsqrt.f32 %v1517_v2  ;;  %vm1525_vm2 = vweird.f32 %v1517_v2 }
 0x6c3   :  { %v3995_v3 = vpop.eup %3994 }
 0x6c4   :  { %v3997_v4 = vpop.eup %3996  ;;  %v1530_v5 = vmul.f32 %v3995_v3, %v1518_v1  ;;  %vm1536_vm8 = vweird.f32 %v3995_v3 }
 0x6c5   :  { %v1520_v6 = vmul.f32 %v3997_v4, %v1517_v2  ;;  %vm1526_vm9 = vweird.f32 %v3997_v4  ;;  %vm1537_vm11 = vmor %vm1535_vm10, %vm1536_vm8 }
 0x6c6   :  { %v1531_v9 = vmul.f32 %v3995_v3, %v1530_v5  ;;  %vm1527_vm0 = vmor %vm1525_vm2, %vm1526_vm9  ;;  %vm5148_vm2 = vcmask 1042432  }
 0x6c7   :  { %v1521_v10 = vmul.f32 %v3997_v4, %v1520_v6 }
 0x6c8   :  { %v1532_v11 = vmul.f32 0.5, %v1531_v9 }
 0x6c9   :  { %v1522_v12 = vmul.f32 0.5, %v1521_v10 }
 0x6ca   :  { %v1533_v13 = vsub.f32 1.5, %v1532_v11 }
 0x6cb   :  { %v1523_v15 = vsub.f32 1.5, %v1522_v12 }
 0x6cc   :  { %v1534_v63 = vmul.f32 %v3995_v3, %v1533_v13 }
 0x6cd   :  { %v1524_v17 = vmul.f32 %v3997_v4, %v1523_v15 }
 0x6ce   :  { %v1538_v18 = vsel %vm1537_vm11, %v3995_v3, %v1534_v63 }
 0x6cf   :  { %v1540_v19 = vmul.f32 %v1538_v18, %v4600_v32  ;;  %v1528_v20 = vsel %vm1527_vm0, %v3997_v4, %v1524_v17  ;;  %v3902_v32 = vld [vmem:[%s5119_s15 + $0x78] sm:$0xff] }
 0x6d0   :  { %v1539_v24 = vmul.f32 %v1528_v20, %v4603_v33  ;;  %1817 = vmatpush.bf16.msra.mxu1 %v3902_v32  ;;  %v3893_v33 = vld [vmem:[%s5119_s15 + $0x30] sm:$0xff] }
 0x6d1   :  { %v1545_v21 = vmul.f32 %v3957_v16, %v1540_v19  ;;  %1804 = vmatpush.bf16.msrb.mxu0 %v3893_v33 }
 0x6d2   :  { %v1544_v22 = vmul.f32 %v3957_v16, %v1539_v24 }
 0x6d3   :  { %v1550_v23 = vadd.f32 %v3958_v14, %v1545_v21 }
 0x6d4   :  { %v1549_v25 = vadd.f32 %v3958_v14, %v1544_v22  ;;  %1818 = vmatpush.bf16.msra.mxu1 %v3901_v34 }
 0x6d5   :  { %1805 = vmatpush.bf16.msrb.mxu0 %v3892_v35 }
 0x6d6   :  { %v1559_v29 = vpack.c.bf16 %v1550_v23, %v1549_v25 }
 0x6d8   :  { %3500 = vmatmul.msk.bf16.vlgmr.msra.gmra.mxu2 %vm572_vm3, %v1559_v29  ;;  %3501 = vmatmul.msk.bf16.vlgmr.msrb.gmra.mxu3 %vm572_vm3, %v1559_v29 }
 0x6d9   :  { %1819 = vmatpush.bf16.msra.mxu1 %v3900_v37  ;;  %1806 = vmatpush.bf16.msrb.mxu0 %v3891_v52 }
 0x6dd   :  { %1820 = vmatpush.bf16.msra.mxu1 %v3899_v39  ;;  %1807 = vmatpush.bf16.msrb.mxu0 %v3890_v40  ;;  %v3959_v40 = vld [vmem:[%s5120_s16] ss:$0 sm:$0xff] }
 0x6e1   :  { %1821 = vmatpush.bf16.msra.mxu1 %v3898_v41  ;;  %1808 = vmatpush.bf16.msrb.mxu0 %v3889_v42 }
 0x6e5   :  { %1822 = vmatpush.bf16.msra.mxu1 %v3897_v43  ;;  %1809 = vmatpush.bf16.msrb.mxu0 %v3888_v44 }
 0x6e9   :  { %1823 = vmatpush.bf16.msra.mxu1 %v3896_v26  ;;  %1810 = vmatpush.bf16.msrb.mxu0 %v3887_v48 }
 0x6ed   :  { %1824 = vmatpush.bf16.msra.mxu1 %v3895_v49 }
 0x75b   :  { %v1618_v7 = vpop.f32.mrf.mxu2  ;;  %v1632_v50 = vpop.f32.mrf.mxu3 }
 0x75c   :  { %v1619_v51 = vadd.f32 %v1618_v7, %v1562_v46  ;;  %v1633_v53 = vadd.f32 %v1632_v50, %v1563_v47 }
 0x75e   :  { %v1641_v54 = vmul.f32 0.044715, %v1619_v51  ;;  %v1642_v55 = vmul.f32 0.044715, %v1633_v53  ;;  %v1637_v20 = vmul.f32 0.5, %v1619_v51  ;;  %v1638_v22 = vmul.f32 0.5, %v1633_v53 }
 0x760   :  { %v1645_v38 = vmul.f32 %v1641_v54, %v1619_v51  ;;  %v1646_v56 = vmul.f32 %v1642_v55, %v1633_v53 }
 0x762   :  { %v1649_v57 = vmul.f32 %v1645_v38, %v1619_v51  ;;  %v1650_v58 = vmul.f32 %v1646_v56, %v1633_v53  ;;  %v3603_v56 = vld [vmem:[%s5111_s7 + $0x70] sm:$0xf] }
 0x763   :  { %v1620_v59 = vpop.f32.mrf.mxu2  ;;  %v1634_v60 = vpop.f32.mrf.mxu3 }
 0x764   :  { %v1653_v61 = vadd.f32 %v1649_v57, %v1619_v51  ;;  %v1621_v62 = vadd.f32 %v1620_v59, %v1562_v46  ;;  %v1635_v0 = vadd.f32 %v1634_v60, %v1563_v47  ;;  %v1654_v31 = vadd.f32 %v1650_v58, %v1633_v53  ;;  %v3910_v57 = vld [vmem:[%s5111_s7 + $0x74] sm:$0xf0]  ;;  %v3909_v58 = vld [vmem:[%s5111_s7 + $0x74] sm:$0xf]  ;;  %v3605_v60 = vld [vmem:[%s5111_s7 + $0x78] sm:$0xf0] }
 0x765   :  { %v3604_v59 = vor.u32 %v3910_v57, %v3603_v56 }
 0x766   :  { %v1643_v1 = vmul.f32 0.044715, %v1621_v62  ;;  %v1644_v2 = vmul.f32 0.044715, %v1635_v0  ;;  %v1657_v3 = vmul.f32 0.7978846, %v1653_v61  ;;  %v3608_v61 = vor.u32 %v3909_v58, %v3605_v60 }
 0x767   :  { %v1658_v5 = vmul.f32 0.7978846, %v1654_v31  ;;  %v1639_v24 = vmul.f32 0.5, %v1621_v62  ;;  %v1640_v23 = vmul.f32 0.5, %v1635_v0  ;;  %1961 = vmatpush.bf16.msrb.mxu2 %v3604_v59  ;;  %v3907_v31 = vld [vmem:[%s5111_s7 + $0x64] sm:$0xf] }
 0x768   :  { %v1647_v4 = vmul.f32 %v1643_v1, %v1621_v62  ;;  %v1648_v6 = vmul.f32 %v1644_v2, %v1635_v0  ;;  %3998 = vtanh.f32 %v1657_v3  ;;  %1975 = vmatpush.bf16.msra.mxu3 %v3608_v61  ;;  %v3597_v2 = vld [vmem:[%s5111_s7 + $0x68] sm:$0xf0] }
 0x769   :  { %4000 = vtanh.f32 %v1658_v5  ;;  %v3600_v3 = vor.u32 %v3907_v31, %v3597_v2  ;;  %v3906_v5 = vld [vmem:[%s5111_s7 + $0x54] sm:$0xf0] }
 0x76a   :  { %v1651_v9 = vmul.f32 %v1647_v4, %v1621_v62  ;;  %v1652_v10 = vmul.f32 %v1648_v6, %v1635_v0  ;;  %v3587_v4 = vld [vmem:[%s5111_s7 + $0x50] sm:$0xf]  ;;  %v3905_v6 = vld [vmem:[%s5111_s7 + $0x54] sm:$0xf] }
 0x76c   :  { %v1655_v11 = vadd.f32 %v1651_v9, %v1621_v62  ;;  %v1656_v12 = vadd.f32 %v1652_v10, %v1635_v0  ;;  %v3595_v62 = vld [vmem:[%s5111_s7 + $0x60] sm:$0xf]  ;;  %v3908_v0 = vld [vmem:[%s5111_s7 + $0x64] sm:$0xf0]  ;;  %1976 = vmatpush.bf16.msra.mxu3 %v3600_v3  ;;  %v3588_v9 = vor.u32 %v3906_v5, %v3587_v4  ;;  %v3589_v10 = vld [vmem:[%s5111_s7 + $0x58] sm:$0xf0] }
 0x76d   :  { %v3596_v1 = vor.u32 %v3908_v0, %v3595_v62 }
 0x76e   :  { %v1659_v13 = vmul.f32 0.7978846, %v1655_v11  ;;  %v1660_v15 = vmul.f32 0.7978846, %v1656_v12  ;;  %v3999_v63 = vpop.eup %3998  ;;  %v3592_v12 = vor.u32 %v3905_v6, %v3589_v10 }
 0x76f   :  { %v4001_v16 = vpop.eup %4000  ;;  %v1665_v17 = vadd.f32 1.0, %v3999_v63  ;;  %1962 = vmatpush.bf16.msrb.mxu2 %v3596_v1  ;;  %v3904_v63 = vld [vmem:[%s5111_s7 + $0x44] sm:$0xf0] }
 0x770   :  { %4002 = vtanh.f32 %v1659_v13  ;;  %v1666_v14 = vadd.f32 1.0, %v4001_v16  ;;  %1977 = vmatpush.bf16.msra.mxu3 %v3592_v12  ;;  %v3903_v16 = vld [vmem:[%s5111_s7 + $0x44] sm:$0xf] }
 0x771   :  { %4004 = vtanh.f32 %v1660_v15  ;;  %v1669_v29 = vmul.f32 %v1665_v17, %v1637_v20  ;;  %v3579_v15 = vld [vmem:[%s5111_s7 + $0x40] sm:$0xf] }
 0x772   :  { %v1670_v32 = vmul.f32 %v1666_v14, %v1638_v22  ;;  %v3581_v14 = vld [vmem:[%s5111_s7 + $0x48] sm:$0xf0] }
 0x773   :  { %1963 = vmatpush.bf16.msrb.mxu2 %v3588_v9 }
 0x776   :  { %v4003_v18 = vpop.eup %4002 }
 0x777   :  { %v4005_v19 = vpop.eup %4004  ;;  %v1667_v21 = vadd.f32 1.0, %v4003_v18  ;;  %v3580_v18 = vor.u32 %v3904_v63, %v3579_v15 }
 0x778   :  { %v1668_v25 = vadd.f32 1.0, %v4005_v19  ;;  %v3584_v19 = vor.u32 %v3903_v16, %v3581_v14 }
 0x779   :  { %v1671_v30 = vmul.f32 %v1667_v21, %v1639_v24  ;;  %1964 = vmatpush.bf16.msrb.mxu2 %v3580_v18 }
 0x77a   :  { %v1672_v33 = vmul.f32 %v1668_v25, %v1640_v23  ;;  %1978 = vmatpush.bf16.msra.mxu3 %v3584_v19 }
 0x77b   :  { %v1705_v34 = vpack.c.bf16 %v1671_v30, %v1669_v29 }
 0x77c   :  { %v1706_v35 = vpack.c.bf16 %v1672_v33, %v1670_v32 }
 0x77d   :  { %1811 = vmatmul.bf16.vlgmr.msrb.gmra.mxu0 %v1705_v34 }
 0x77e   :  { %1825 = vmatmul.bf16.vlgmr.msra.gmra.mxu1 %v1706_v35 }
 0x7fa   :  { %v1812_v37 = vpop.f32.mrf.mxu0 }
 0x7fb   :  { %v1826_v52 = vpop.f32.mrf.mxu1 }
 0x7fc   :  { %v1827_v39 = vadd.f32 %v1826_v52, %v1812_v37 }
 0x7fe   :  { %v1831_v41 = vadd.f32 %v1827_v39, %v4593_v28 }
 0x800   :  { %v4726_v42 = vadd.f32 %v3959_v40, %v1831_v41 }
 0x802   :  { %v1843_v43 = vsel %vm572_vm3, %v4726_v42, 0.0  ;;  %v1814_v44 = vpop.f32.mrf.mxu0 }
 0x803   :  { %v1828_v26 = vpop.f32.mrf.mxu1  ;;  %1844 = vadd.xlane.f32.xlu1 %v1843_v43 }
 0x804   :  { %v1829_v45 = vadd.f32 %v1828_v26, %v1814_v44  ;;  %v3961_v26 = vld [vmem:[%s5110_s6 + $0x1] ss:$0 sm:$0xff]  ;;  %s5144_s6 = smov 16  }
 0x806   :  { %v1832_v46 = vadd.f32 %v1829_v45, %v4588_v27 }
 0x808   :  { %v4731_v47 = vadd.f32 %v3959_v40, %v1832_v46  ;;  %v3960_v40 = vld [vmem:[%s5109_s5 + $0x1] ss:$0 sm:$0xff] }
 0x80a   :  { %v1846_v48 = vsel %vm576_vm4, %v4731_v47, 0.0 }
 0x80b   :  { %1847 = vadd.xlane.f32.xlu2 %v1846_v48 }
 0x876   :  { %v1845_v49 = vpop.xlane.xlu1 %1844 }
 0x877   :  { %v1849_v28 = vmul.f32 %v1845_v49, %v4368_v36 }
 0x879   :  { %v4737_v7 = vsub.f32 %v4726_v42, %v1849_v28 }
 0x87b   :  { %v1853_v50 = vmul.f32 %v4737_v7, %v4737_v7 }
 0x87d   :  { %v1855_v51 = vsel %vm572_vm3, %v1853_v50, 0.0 }
 0x87e   :  { %1856 = vadd.xlane.f32.xlu0 %v1855_v51  ;;  %v1848_v53 = vpop.xlane.xlu2 %1847 }
 0x87f   :  { %v1850_v27 = vmul.f32 %v1848_v53, %v4368_v36 }
 0x881   :  { %v4744_v54 = vsub.f32 %v4731_v47, %v1850_v27 }
 0x883   :  { %v1854_v55 = vmul.f32 %v4744_v54, %v4744_v54 }
 0x885   :  { %v1858_v38 = vsel %vm576_vm4, %v1854_v55, 0.0 }
 0x886   :  { %1859 = vadd.xlane.f32.xlu1 %v1858_v38 }
 0x8f1   :  { %v1857_v11 = vpop.xlane.xlu0 %1856 }
 0x8f2   :  { %v1861_v13 = vmul.f32 %v1857_v11, %v4368_v36 }
 0x8f4   :  { %v1863_v17 = vadd.f32 1e-06, %v1861_v13 }
 0x8f6   :  { %4006 = vrsqrt.f32 %v1863_v17  ;;  %vm1871_vm7 = vweird.f32 %v1863_v17 }
 0x8f9   :  { %v1860_v20 = vpop.xlane.xlu1 %1859 }
 0x8fa   :  { %v1862_v24 = vmul.f32 %v1860_v20, %v4368_v36 }
 0x8fc   :  { %v4007_v21 = vpop.eup %4006  ;;  %v1864_v22 = vadd.f32 1e-06, %v1862_v24 }
 0x8fd   :  { %v1866_v23 = vmul.f32 %v4007_v21, %v1863_v17  ;;  %vm1872_vm14 = vweird.f32 %v4007_v21 }
 0x8fe   :  { %4008 = vrsqrt.f32 %v1864_v22  ;;  %vm1873_vm8 = vmor %vm1871_vm7, %vm1872_vm14  ;;  %vm1881_vm10 = vweird.f32 %v1864_v22 }
 0x8ff   :  { %v1867_v25 = vmul.f32 %v4007_v21, %v1866_v23 }
 0x901   :  { %v1868_v29 = vmul.f32 0.5, %v1867_v25 }
 0x903   :  { %v1869_v30 = vsub.f32 1.5, %v1868_v29 }
 0x904   :  { %v4009_v32 = vpop.eup %4008 }
 0x905   :  { %v1870_v33 = vmul.f32 %v4007_v21, %v1869_v30  ;;  %v1876_v34 = vmul.f32 %v4009_v32, %v1864_v22  ;;  %vm1882_vm9 = vweird.f32 %v4009_v32 }
 0x906   :  { %vm1883_vm11 = vmor %vm1881_vm10, %vm1882_vm9 }
 0x907   :  { %v1877_v35 = vmul.f32 %v4009_v32, %v1876_v34  ;;  %v1874_v37 = vsel %vm1873_vm8, %v4007_v21, %v1870_v33 }
 0x908   :  { %v1885_v41 = vmul.f32 %v1874_v37, %v4737_v7  ;;  %v3576_v7 = vld [vmem:[%s5112_s8 + $0x2] sm:$0x3]  ;;  %s5145_s8 = smov 80  }
 0x909   :  { %v1878_v52 = vmul.f32 0.5, %v1877_v35  ;;  %v1910_v51 = vperm.slane %v3576_v7, 0  ;;  %v1911_v56 = vperm.slane %v3576_v7, 1 }
 0x90a   :  { %v1890_v45 = vmul.f32 %v3960_v40, %v1885_v41 }
 0x90b   :  { %v1879_v39 = vsub.f32 1.5, %v1878_v52 }
 0x90c   :  { %v1895_v49 = vadd.f32 %v3961_v26, %v1890_v45 }
 0x90d   :  { %v1880_v43 = vmul.f32 %v4009_v32, %v1879_v39 }
 0x90f   :  { %v1884_v44 = vsel %vm1883_vm11, %v4009_v32, %v1880_v43 }
 0x910   :  { %v1886_v46 = vmul.f32 %v1884_v44, %v4744_v54 }
 0x912   :  { %v1891_v48 = vmul.f32 %v3960_v40, %v1886_v46 }
 0x914   :  { %v1896_v28 = vadd.f32 %v3961_v26, %v1891_v48 }
 0x916   :  { %v1906_v50 = vpack.c.bf16 %v1896_v28, %v1895_v49 }
 0x918   :  { %3609 = vmatmul.msk.bf16.vlgmr.msrb.gmra.mxu2 %vm572_vm3, %v1906_v50  ;;  %3610 = vmatmul.msk.bf16.vlgmr.msra.gmra.mxu3 %vm572_vm3, %v1906_v50 }
 0x99b   :  { %v1966_v53 = vpop.f32.mrf.mxu2  ;;  %v1980_v27 = vpop.f32.mrf.mxu3 }
 0x99c   :  { %v1967_v55 = vadd.f32 %v1966_v53, %v1910_v51  ;;  %v1981_v58 = vadd.f32 %v1980_v27, %v1911_v56 }
 0x99e   :  { %v1985_v38 = vpack.c.bf16 %v1967_v55, %v1967_v55  ;;  %v4833_v63 = vpack.c.bf16 %v1981_v58, %v1981_v58 }
 0x9a0   :  { %2009 = vrot.lane.b32.xlu1 %v1985_v38, %s4074_s2  ;;  %1987 = vrot.lane.b32.xlu0 %v1985_v38, %s4072_s26  ;;  %v2354_v18 = vand.u32 %v4833_v63, %v4475_v8 }
 0x9a1   :  { %2011 = vrot.lane.b32.xlu2 %v1985_v38, %s4073_s24 }
 0x9a3   :  { %v1968_v54 = vpop.f32.mrf.mxu2  ;;  %v1982_v57 = vpop.f32.mrf.mxu3 }
 0x9a4   :  { %v1969_v59 = vadd.f32 %v1968_v54, %v1910_v51  ;;  %v1983_v60 = vadd.f32 %v1982_v57, %v1911_v56 }
 0x9a6   :  { %v2081_v61 = vpack.c.bf16 %v1969_v59, %v1967_v55  ;;  %v4815_v62 = vpack.c.bf16 %v1983_v60, %v1981_v58 }
 0x9a8   :  { %v2083_v0 = vshrl.u32 %v2081_v61, 16  ;;  %v2086_v31 = vshll.u32 %v2081_v61, 16  ;;  %2033 = vrot.lane.b32.xlu1 %v1985_v38, %s4076_s3  ;;  %2035 = vrot.lane.b32.xlu0 %v1985_v38, %s4071_s22 }
 0x9a9   :  { %2059 = vrot.lane.b32.xlu2 %v1985_v38, %s5144_s6 }
 0x9aa   :  { %v2085_v1 = vrot.slane %v2083_v0, 2  ;;  %v2088_v2 = vrot.slane %v2086_v31, 3 }
 0x9ac   :  { %v2089_v3 = vor.u32 %v2088_v2, %v2085_v1 }
 0x9b0   :  { %2114 = vrot.lane.b32.xlu1 %v2089_v3, %s4073_s24  ;;  %2057 = vrot.lane.b32.xlu0 %v1985_v38, %s5145_s8 }
 0x9b1   :  { %2090 = vrot.lane.b32.xlu2 %v2089_v3, %s4072_s26 }
 0x9b8   :  { %2136 = vrot.lane.b32.xlu1 %v2089_v3, %s4076_s3  ;;  %2138 = vrot.lane.b32.xlu0 %v2089_v3, %s4071_s22 }
 0x9b9   :  { %2112 = vrot.lane.b32.xlu2 %v2089_v3, %s4074_s2 }
 0x9c0   :  { %2162 = vrot.lane.b32.xlu0 %v2089_v3, %s5144_s6 }
 0x9c1   :  { %2160 = vrot.lane.b32.xlu2 %v2089_v3, %s5145_s8 }
 0x9fb   :  { %v2012_v4 = vpop.permute.xlu2 %2011 }
 0x9fc   :  { %v2017_v5 = vsel %vm725_vm12, %v2012_v4, 0 }
 0x9fd   :  { %2026 = vmatpush.bf16.xpose.msrb.mxu3 %v2017_v5 }
 0xa03   :  { %v2060_v6 = vpop.permute.xlu2 %2059 }
 0xa04   :  { %v2065_v9 = vsel %vm725_vm12, %v2060_v6, 0 }
 0xa05   :  { %2074 = vmatpush.bf16.xpose.msrb.mxu1 %v2065_v9 }
 0xa0b   :  { %v2091_v10 = vpop.permute.xlu2 %2090 }
 0xa0c   :  { %v2096_v15 = vsel %vm725_vm12, %v2091_v10, 0 }
 0xa12   :  { %v2010_v11 = vpop.permute.xlu1 %2009  ;;  %v1988_v12 = vpop.permute.xlu0 %1987 }
 0xa13   :  { %v1993_v13 = vsel %vm725_vm12, %v1988_v12, 0  ;;  %3612 = vmatmul.msk.bf16.vlgmr.msrb.gmra.mxu3 %vm725_vm12, %v2010_v11  ;;  %v2113_v21 = vpop.permute.xlu2 %2112 }
 0xa14   :  { %2002 = vmatpush.bf16.xpose.msra.mxu2 %v1993_v13 }
 0xa1a   :  { %v2034_v16 = vpop.permute.xlu1 %2033  ;;  %v2036_v17 = vpop.permute.xlu0 %2035 }
 0xa1b   :  { %v2041_v14 = vsel %vm725_vm12, %v2036_v17, 0  ;;  %3611 = vmatmul.msk.bf16.vlgmr.msra.gmra.mxu2 %vm725_vm12, %v1985_v38  ;;  %v2161_v32 = vpop.permute.xlu2 %2160 }
 0xa1c   :  { %2105 = vmatpush.bf16.xpose.msrb.mxu2 %v2096_v15  ;;  %2050 = vmatpush.bf16.xpose.msra.mxu0 %v2041_v14 }
 0xa22   :  { %v2115_v19 = vpop.permute.xlu1 %2114  ;;  %v2058_v20 = vpop.permute.xlu0 %2057 }
 0xa23   :  { %v2120_v24 = vsel %vm725_vm12, %v2115_v19, 0  ;;  %3613 = vmatmul.msk.bf16.vlgmr.msra.gmra.mxu0 %vm725_vm12, %v2034_v16  ;;  %3614 = vmatmul.msk.bf16.vlgmr.msrb.gmra.mxu1 %vm725_vm12, %v2058_v20 }
 0xa24   :  { %2363 = vmatpush.bf16.msra.mxu2 %v2354_v18  ;;  %2129 = vmatpush.bf16.xpose.msra.mxu3 %v2120_v24 }
 0xa2a   :  { %v2139_v22 = vpop.permute.xlu0 %2138  ;;  %v2137_v25 = vpop.permute.xlu1 %2136 }
 0xa2b   :  { %v2144_v23 = vsel %vm725_vm12, %v2139_v22, 0  ;;  %3615 = vmatmul.msk.bf16.vlgmr.msrb.gmra.mxu2 %vm725_vm12, %v2089_v3  ;;  %3616 = vmatmul.msk.bf16.vlgmr.msra.gmra.mxu3 %vm725_vm12, %v2113_v21 }
 0xa2c   :  { %2153 = vmatpush.bf16.xpose.msrb.mxu0 %v2144_v23 }
 0xa32   :  { %v2163_v29 = vpop.permute.xlu0 %2162 }
 0xa33   :  { %v2168_v30 = vsel %vm725_vm12, %v2163_v29, 0  ;;  %3617 = vmatmul.msk.bf16.vlgmr.msrb.gmra.mxu0 %vm725_vm12, %v2137_v25 }
 0xa34   :  { %2177 = vmatpush.bf16.xpose.msra.mxu1 %v2168_v30 }
 0xa3b   :  { %3618 = vmatmul.msk.bf16.vlgmr.msra.gmra.mxu1 %vm725_vm12, %v2161_v32 }
 0xa96   :  { %v2028_v33 = vpop.f32.mrf.mxu3 }
 0xa97   :  { %v2032_v34 = vmul.f32 0.25, %v2028_v33 }
 0xa99   :  { %v2185_v52 = vrot.slane %v2032_v34, 3 }
 0xa9e   :  { %v2004_v35 = vpop.f32.mrf.mxu2  ;;  %v2030_v37 = vpop.f32.mrf.mxu3 }
 0xa9f   :  { %v2008_v39 = vmul.f32 0.25, %v2004_v35 }
 0xaa0   :  { %v2052_v40 = vpop.f32.mrf.mxu0  ;;  %v2076_v41 = vpop.f32.mrf.mxu1 }
 0xaa1   :  { %v2056_v43 = vmul.f32 0.25, %v2052_v40  ;;  %v2080_v44 = vmul.f32 0.25, %v2076_v41  ;;  %v2205_v26 = vsel %vm566_vm1, %v2008_v39, %v2185_v52 }
 0xaa2   :  { %v2212_v45 = vsel %vm953_vm15, %v2205_v26, -inf }
 0xaa3   :  { %v2188_v46 = vrot.slane %v2056_v43, 6  ;;  %v2191_v48 = vrot.slane %v2080_v44, 1  ;;  %2213 = vmax.xlane.f32.xlu1 %v2212_v45  ;;  %v2555_v43 = vshrl.u32 %v4815_v62, 16  ;;  %v2558_v44 = vshll.u32 %v4815_v62, 16 }
 0xaa5   :  { %v2206_v49 = vsel %vm943_vm13, %v2185_v52, %v2188_v46  ;;  %vm5146_vm13 = vcmask 1040384   ;;  %v2557_v45 = vrot.slane %v2555_v43, 2  ;;  %v2560_v46 = vrot.slane %v2558_v44, 3 }
 0xaa6   :  { %v2006_v28 = vpop.f32.mrf.mxu2  ;;  %v2207_v50 = vsel %vm945_vm5, %v2206_v49, %v2191_v48  ;;  %vm5147_vm5 = vcmask 1045504  }
 0xaa7   :  { %v2215_v7 = vsel %vm953_vm15, %v2207_v50, -inf }
 0xaa8   :  { %v2054_v51 = vpop.f32.mrf.mxu0  ;;  %2216 = vmax.xlane.f32.xlu0 %v2215_v7  ;;  %v2078_v53 = vpop.f32.mrf.mxu1 }
 0xaae   :  { %v2107_v27 = vpop.f32.mrf.mxu2  ;;  %v2131_v55 = vpop.f32.mrf.mxu3 }
 0xaaf   :  { %v2111_v38 = vmul.f32 0.25, %v2107_v27  ;;  %v2135_v56 = vmul.f32 0.25, %v2131_v55 }
 0xab0   :  { %v2155_v54 = vpop.f32.mrf.mxu0 }
 0xab1   :  { %v2194_v57 = vrot.slane %v2111_v38, 4  ;;  %v2197_v58 = vrot.slane %v2135_v56, 7  ;;  %v2159_v59 = vmul.f32 0.25, %v2155_v54 }
 0xab3   :  { %v2200_v60 = vrot.slane %v2159_v59, 2  ;;  %v2208_v61 = vsel %vm947_vm6, %v2191_v48, %v2194_v57  ;;  %v2209_v0 = vsel %vm5146_vm13, %v2194_v57, %v2197_v58 }
 0xab4   :  { %v2218_v31 = vsel %vm953_vm15, %v2208_v61, -inf }
 0xab5   :  { %2219 = vmax.xlane.f32.xlu2 %v2218_v31  ;;  %v2210_v1 = vsel %vm5147_vm5, %v2209_v0, %v2200_v60 }
 0xab6   :  { %v2109_v2 = vpop.f32.mrf.mxu2  ;;  %v2133_v3 = vpop.f32.mrf.mxu3  ;;  %v2221_v4 = vsel %vm953_vm15, %v2210_v1, -inf }
 0xab7   :  { %2222 = vmax.xlane.f32.xlu1 %v2221_v4 }
 0xab8   :  { %v2157_v5 = vpop.f32.mrf.mxu0  ;;  %v2179_v6 = vpop.f32.mrf.mxu1 }
 0xab9   :  { %v2183_v9 = vmul.f32 0.25, %v2179_v6 }
 0xabb   :  { %v2203_v10 = vrot.slane %v2183_v9, 5 }
 0xabd   :  { %v2211_v11 = vsel %vm5148_vm2, %v2200_v60, %v2203_v10 }
 0xabe   :  { %v2224_v12 = vsel %vm953_vm15, %v2211_v11, -inf }
 0xabf   :  { %2225 = vmax.xlane.f32.xlu0 %v2224_v12 }
 0xac0   :  { %v2181_v13 = vpop.f32.mrf.mxu1 }
 0xad3   :  { %2451 = vrot.lane.b32.xlu0 %v4833_v63, %s4076_s3 }
 0xb16   :  { %v2214_v15 = vpop.xlane.xlu1 %2213 }
 0xb17   :  { %v2227_v16 = vsub.f32 %v2205_v26, %v2214_v15 }
 0xb19   :  { %v2232_v17 = vmul.f32 1.442695, %v2227_v16 }
 0xb1b   :  { %4010 = vpow2.f32 %v2232_v17  ;;  %v2217_v18 = vpop.xlane.xlu0 %2216 }
 0xb1c   :  { %v2228_v14 = vsub.f32 %v2207_v50, %v2217_v18  ;;  %v2561_v50 = vor.u32 %v2560_v46, %v2557_v45 }
 0xb1e   :  { %v2234_v19 = vmul.f32 1.442695, %v2228_v14  ;;  %v2566_v10 = vand.u32 %v2561_v50, %v4475_v8 }
 0xb20   :  { %4012 = vpow2.f32 %v2234_v19 }
 0xb21   :  { %v4862_v20 = vpop.eup %4010 }
 0xb22   :  { %v2242_v24 = vsel %vm953_vm15, %v4862_v20, 0.0 }
 0xb23   :  { %2243 = vadd.xlane.f32.xlu2 %v2242_v24 }
 0xb26   :  { %v4866_v21 = vpop.eup %4012 }
 0xb27   :  { %v2245_v22 = vsel %vm953_vm15, %v4866_v21, 0.0 }
 0xb28   :  { %2246 = vadd.xlane.f32.xlu1 %v2245_v22  ;;  %v2220_v23 = vpop.xlane.xlu2 %2219 }
 0xb29   :  { %v2229_v25 = vsub.f32 %v2208_v61, %v2220_v23 }
 0xb2a   :  { %v2223_v30 = vpop.xlane.xlu1 %2222 }
 0xb2b   :  { %v2236_v29 = vmul.f32 1.442695, %v2229_v25  ;;  %v2230_v37 = vsub.f32 %v2210_v1, %v2223_v30 }
 0xb2d   :  { %4014 = vpow2.f32 %v2236_v29  ;;  %v2238_v39 = vmul.f32 1.442695, %v2230_v37 }
 0xb32   :  { %v2226_v32 = vpop.xlane.xlu0 %2225 }
 0xb33   :  { %v4870_v33 = vpop.eup %4014  ;;  %v2231_v34 = vsub.f32 %v2211_v11, %v2226_v32 }
 0xb34   :  { %v2248_v35 = vsel %vm953_vm15, %v4870_v33, 0.0 }
 0xb35   :  { %v2240_v52 = vmul.f32 1.442695, %v2231_v34  ;;  %2249 = vadd.xlane.f32.xlu0 %v2248_v35 }
 0xb37   :  { %4016 = vpow2.f32 %v2240_v52 }
 0xb38   :  { %4018 = vpow2.f32 %v2238_v39 }
 0xb3d   :  { %v4874_v40 = vpop.eup %4016 }
 0xb3e   :  { %v2254_v41 = vsel %vm953_vm15, %v4874_v40, 0.0  ;;  %v4882_v26 = vpop.eup %4018 }
 0xb3f   :  { %2255 = vadd.xlane.f32.xlu2 %v2254_v41  ;;  %v2251_v28 = vsel %vm953_vm15, %v4882_v26, 0.0 }
 0xb41   :  { %2403 = vrot.lane.b32.xlu1 %v4833_v63, %s4074_s2 }
 0xb45   :  { %v2452_v48 = vpop.permute.xlu0 %2451 }
 0xb46   :  { %v2457_v49 = vand.u32 %v2452_v48, %v4475_v8 }
 0xb47   :  { %2252 = vadd.xlane.f32.xlu2 %v2251_v28 }
 0xb48   :  { %2466 = vmatpush.bf16.msrb.mxu2 %v2457_v49 }
 0xb49   :  { %2657 = vrot.lane.b32.xlu1 %v2561_v50, %s4076_s3  ;;  %2611 = vrot.lane.b32.xlu0 %v2561_v50, %s4074_s2 }
 0xb51   :  { %2709 = vrot.lane.b32.xlu0 %v2561_v50, %s5145_s8 }
 0xb5f   :  { %2505 = vrot.lane.b32.xlu2 %v4833_v63, %s5145_s8 }
 0xb96   :  { %v2244_v62 = vpop.xlane.xlu2 %2243 }
 0xb97   :  { %4020 = vrcp.f32 %v2244_v62  ;;  %v2268_v55 = vand.u32 2147483648, %v2244_v62  ;;  %v2266_v54 = vand.u32 2147483647, %v2244_v62  ;;  %vm2262_vm0 = vweird.f32 %v2244_v62 }
 0xb99   :  { %v2269_v59 = vor.u32 1.1754944e-38, %v2268_v55  ;;  %vm2267_vm7 = vcmp.eq.f32.partialorder %v2266_v54, 8.507059e+37 }
 0xb9b   :  { %v2247_v7 = vpop.xlane.xlu1 %2246 }
 0xb9c   :  { %4022 = vrcp.f32 %v2247_v7  ;;  %v2283_v63 = vand.u32 2147483648, %v2247_v7  ;;  %v2281_v1 = vand.u32 2147483647, %v2247_v7  ;;  %vm2277_vm9 = vweird.f32 %v2247_v7 }
 0xb9d   :  { %v4021_v51 = vpop.eup %4020 }
 0xb9e   :  { %v2258_v53 = vmul.f32 %v4021_v51, %v2244_v62  ;;  %vm2263_vm6 = vweird.f32 %v4021_v51  ;;  %v2284_v6 = vor.u32 1.1754944e-38, %v2283_v63  ;;  %vm2282_vm11 = vcmp.eq.f32.partialorder %v2281_v1, 8.507059e+37 }
 0xb9f   :  { %vm2264_vm14 = vmor %vm2262_vm0, %vm2263_vm6 }
 0xba0   :  { %v2259_v27 = vsub.f32 1.0, %v2258_v53 }
 0xba2   :  { %v4023_v38 = vpop.eup %4022  ;;  %v2260_v56 = vmul.f32 %v4021_v51, %v2259_v27 }
 0xba3   :  { %v2273_v57 = vmul.f32 %v4023_v38, %v2247_v7  ;;  %vm2278_vm8 = vweird.f32 %v4023_v38 }
 0xba4   :  { %v2261_v58 = vadd.f32 %v4021_v51, %v2260_v56  ;;  %vm2279_vm10 = vmor %vm2277_vm9, %vm2278_vm8 }
 0xba5   :  { %v2274_v60 = vsub.f32 1.0, %v2273_v57 }
 0xba6   :  { %v2265_v61 = vsel %vm2264_vm14, %v4021_v51, %v2261_v58 }
 0xba7   :  { %v2270_v0 = vsel %vm2267_vm7, %v2269_v59, %v2265_v61  ;;  %v2275_v31 = vmul.f32 %v4023_v38, %v2274_v60 }
 0xba8   :  { %v2271_v2 = vmul.f32 %v4862_v20, %v2270_v0  ;;  %v2250_v3 = vpop.xlane.xlu0 %2249 }
 0xba9   :  { %v2276_v4 = vadd.f32 %v4023_v38, %v2275_v31  ;;  %4024 = vrcp.f32 %v2250_v3  ;;  %v2296_v20 = vand.u32 2147483647, %v2250_v3  ;;  %v2298_v24 = vand.u32 2147483648, %v2250_v3 }
 0xbaa   :  { %v2348_v5 = vpack.c.bf16 %v2271_v2, %v2271_v2  ;;  %vm2292_vm5 = vweird.f32 %v2250_v3 }
 0xbab   :  { %v2280_v9 = vsel %vm2279_vm10, %v4023_v38, %v2276_v4  ;;  %v2299_v34 = vor.u32 1.1754944e-38, %v2298_v24  ;;  %vm2297_vm6 = vcmp.eq.f32.partialorder %v2296_v20, 8.507059e+37 }
 0xbac   :  { %v2285_v11 = vsel %vm2282_vm11, %v2284_v6, %v2280_v9  ;;  %3628 = vmatmul.msk.bf16.vlgmr.msra.gmra.mxu2 %vm953_vm15, %v2348_v5 }
 0xbad   :  { %v2286_v12 = vmul.f32 %v4866_v21, %v2285_v11  ;;  %2575 = vmatpush.bf16.msra.mxu2 %v2566_v10 }
 0xbaf   :  { %v4025_v13 = vpop.eup %4024  ;;  %v2393_v15 = vpack.c.bf16 %v2286_v12, %v2271_v2  ;;  %v2448_v32 = vpack.c.bf16 %v2286_v12, %v2286_v12 }
 0xbb0   :  { %v2288_v16 = vmul.f32 %v4025_v13, %v2250_v3  ;;  %vm2293_vm13 = vweird.f32 %v4025_v13 }
 0xbb1   :  { %v2395_v17 = vshrl.u32 %v2393_v15, 16  ;;  %v2398_v18 = vshll.u32 %v2393_v15, 16  ;;  %vm2294_vm2 = vmor %vm2292_vm5, %vm2293_vm13  ;;  %v2450_v39 = vrot.slane %v2448_v32, 1  ;;  %v3911_v32 = vld [vmem:[%s5113_s9 + $0x20] sm:$0xff] }
 0xbb2   :  { %v2289_v14 = vsub.f32 1.0, %v2288_v16  ;;  %v4896_v19 = vpop.xlane.xlu2 %2255  ;;  %2386 = vmatpush.bf16.msrb.mxu3 %v3911_v32 }
 0xbb3   :  { %v2404_v22 = vpop.permute.xlu1 %2403  ;;  %v2397_v29 = vrot.slane %v2395_v17, 2  ;;  %v2400_v30 = vrot.slane %v2398_v18, 3  ;;  %4026 = vrcp.f32 %v4896_v19  ;;  %v2328_v6 = vand.u32 2147483648, %v4896_v19 }
 0xbb4   :  { %v2290_v23 = vmul.f32 %v4025_v13, %v2289_v14  ;;  %v2409_v25 = vand.u32 %v2404_v22, %v4475_v8  ;;  %vm2322_vm10 = vweird.f32 %v4896_v19 }
 0xbb5   :  { %v2401_v35 = vor.u32 %v2400_v30, %v2397_v29  ;;  %v2329_v15 = vor.u32 1.1754944e-38, %v2328_v6 }
 0xbb6   :  { %v2291_v21 = vadd.f32 %v4025_v13, %v2290_v23  ;;  %2418 = vmatpush.bf16.msra.mxu0 %v2409_v25 }
 0xbb8   :  { %v2295_v37 = vsel %vm2294_vm2, %v4025_v13, %v2291_v21  ;;  %v3913_v21 = vld [vmem:[%s5113_s9 + $0x30] sm:$0xff] }
 0xbb9   :  { %v2300_v52 = vsel %vm2297_vm6, %v2299_v34, %v2295_v37  ;;  %3634 = vmatmul.msk.bf16.vlgmr.msra.gmra.mxu0 %vm953_vm15, %v2401_v35  ;;  %v4027_v49 = vpop.eup %4026  ;;  %2489 = vmatpush.bf16.msra.mxu3 %v3913_v21  ;;  %v3914_v34 = vld [vmem:[%s5113_s9 + $0x38] sm:$0xff] }
 0xbba   :  { %v2301_v41 = vmul.f32 %v4870_v33, %v2300_v52  ;;  %v2253_v43 = vpop.xlane.xlu2 %2252  ;;  %v2318_v7 = vmul.f32 %v4027_v49, %v4896_v19  ;;  %vm2323_vm9 = vweird.f32 %v4027_v49 }
 0xbbb   :  { %4028 = vrcp.f32 %v2253_v43  ;;  %v2658_v44 = vpop.permute.xlu1 %2657  ;;  %v2612_v45 = vpop.permute.xlu0 %2611  ;;  %v2313_v57 = vand.u32 2147483648, %v2253_v43  ;;  %v2311_v60 = vand.u32 2147483647, %v2253_v43  ;;  %vm2307_vm14 = vweird.f32 %v2253_v43  ;;  %vm2324_vm11 = vmor %vm2322_vm10, %vm2323_vm9 }
 0xbbc   :  { %v2496_v46 = vpack.c.bf16 %v2301_v41, %v2286_v12  ;;  %v2663_v48 = vand.u32 %v2658_v44, %v4475_v8  ;;  %3640 = vmatmul.msk.bf16.vlgmr.msrb.gmra.mxu2 %vm953_vm15, %v2450_v39  ;;  %v2617_v56 = vand.u32 %v2612_v45, %v4475_v8  ;;  %v2319_v54 = vsub.f32 1.0, %v2318_v7 }
 0xbbd   :  { %v2314_v1 = vor.u32 1.1754944e-38, %v2313_v57  ;;  %vm2312_vm8 = vcmp.eq.f32.partialorder %v2311_v60, 8.507059e+37 }
 0xbbe   :  { %2672 = vmatpush.bf16.msrb.mxu2 %v2663_v48  ;;  %v2498_v28 = vshrl.u32 %v2496_v46, 16  ;;  %v2501_v50 = vshll.u32 %v2496_v46, 16  ;;  %v2320_v31 = vmul.f32 %v4027_v49, %v2319_v54 }
 0xbc0   :  { %v2500_v27 = vrot.slane %v2498_v28, 3  ;;  %v2503_v55 = vrot.slane %v2501_v50, 4  ;;  %v2321_v5 = vadd.f32 %v4027_v49, %v2320_v31 }
 0xbc1   :  { %v4029_v62 = vpop.eup %4028 }
 0xbc2   :  { %v2303_v51 = vmul.f32 %v4029_v62, %v2253_v43  ;;  %v2506_v53 = vpop.permute.xlu2 %2505  ;;  %vm2308_vm0 = vweird.f32 %v4029_v62  ;;  %v2504_v61 = vor.u32 %v2503_v55, %v2500_v27  ;;  %v2325_v13 = vsel %vm2324_vm11, %v4027_v49, %v2321_v5  ;;  %v3962_v5 = vld [vmem:[%s5114_s10 + $0x1] ss:$0 sm:$0xff] }
 0xbc3   :  { %v2511_v33 = vand.u32 %v2506_v53, %v4475_v8  ;;  %v2710_v58 = vpop.permute.xlu0 %2709  ;;  %vm2309_vm7 = vmor %vm2307_vm14, %vm2308_vm0  ;;  %vm5149_vm0 = vcmask 1040384  }
 0xbc4   :  { %v2304_v38 = vsub.f32 1.0, %v2303_v51  ;;  %v2715_v0 = vand.u32 %v2710_v58, %v4475_v8  ;;  %v2326_v8 = vand.u32 2147483647, %v4896_v19 }
 0xbc5   :  { %2520 = vmatpush.bf16.msrb.mxu0 %v2511_v33 }
 0xbc6   :  { %v2305_v59 = vmul.f32 %v4029_v62, %v2304_v38  ;;  %vm2327_vm13 = vcmp.eq.f32.partialorder %v2326_v8, 8.507059e+37 }
 0xbc8   :  { %v2306_v63 = vadd.f32 %v4029_v62, %v2305_v59 }
 0xbc9   :  { %2626 = vmatpush.bf16.msra.mxu0 %v2617_v56 }
 0xbca   :  { %3646 = vmatmul.msk.bf16.vlgmr.msrb.gmra.mxu0 %vm953_vm15, %v2504_v61  ;;  %v2310_v2 = vsel %vm2309_vm7, %v4029_v62, %v2306_v63 }
 0xbcb   :  { %v2315_v3 = vsel %vm2312_vm8, %v2314_v1, %v2310_v2  ;;  %vm3184_vm8 = vcmask 254976  }
 0xbcc   :  { %v2316_v4 = vmul.f32 %v4882_v26, %v2315_v3  ;;  %v2330_v26 = vsel %vm2327_vm13, %v2329_v15, %v2325_v13 }
 0xbcd   :  { %2724 = vmatpush.bf16.msrb.mxu0 %v2715_v0  ;;  %v2331_v18 = vmul.f32 %v4874_v40, %v2330_v26  ;;  %v3912_v40 = vld [vmem:[%s5113_s9 + $0x28] sm:$0xff] }
 0xbce   :  { %v2550_v9 = vpack.c.bf16 %v2316_v4, %v2301_v41  ;;  %v2603_v10 = vpack.c.bf16 %v2316_v4, %v2316_v4  ;;  %2441 = vmatpush.bf16.msrb.mxu1 %v3912_v40 }
 0xbcf   :  { %v2700_v20 = vpack.c.bf16 %v2331_v18, %v2331_v18  ;;  %v2654_v24 = vpack.c.bf16 %v2331_v18, %v2316_v4 }
 0xbd0   :  { %v2553_v11 = vrot.slane %v2550_v9, 2  ;;  %v2607_v12 = vshll.u32 %v2603_v10, 16  ;;  %v2605_v17 = vshrl.u32 %v2603_v10, 16  ;;  %v2346_v9 = vadd.f32 %v3962_v5, %v4726_v42 }
 0xbd1   :  { %v2702_v22 = vshrl.u32 %v2700_v20, 16  ;;  %v2705_v19 = vshll.u32 %v2700_v20, 16  ;;  %v2656_v23 = vrot.slane %v2654_v24, 3 }
 0xbd2   :  { %3652 = vmatmul.msk.bf16.vlgmr.msra.gmra.mxu2 %vm953_vm15, %v2553_v11  ;;  %v2609_v16 = vrot.slane %v2607_v12, 1  ;;  %2543 = vmatpush.bf16.msra.mxu1 %v3914_v34  ;;  %v2347_v11 = vadd.f32 %v3962_v5, %v4731_v47 }
 0xbd3   :  { %v2704_v25 = vrot.slane %v2702_v22, 1  ;;  %v2707_v29 = vrot.slane %v2705_v19, 2 }
 0xbd4   :  { %v2610_v14 = vor.u32 %v2609_v16, %v2605_v17 }
 0xbd5   :  { %v2708_v30 = vor.u32 %v2707_v29, %v2704_v25 }
 0xbda   :  { %3654 = vmatmul.msk.bf16.vlgmr.msra.gmra.mxu0 %vm953_vm15, %v2610_v14 }
 0xbe2   :  { %3656 = vmatmul.msk.bf16.vlgmr.msrb.gmra.mxu2 %vm953_vm15, %v2656_v23 }
 0xbea   :  { %3658 = vmatmul.msk.bf16.vlgmr.msrb.gmra.mxu0 %vm953_vm15, %v2708_v30 }
 0xc2f   :  { %v2365_v35 = vpop.f32.mrf.mxu2 }
 0xc30   :  { %v2369_v37 = vpack.c.bf16 %v2365_v35, %v2365_v35 }
 0xc32   :  { %3633 = vmatmul.msk.bf16.vlgmr.msrb.gmra.mxu3 %vm725_vm12, %v2369_v37 }
 0xc33   :  { %2592 = vmatpush.bf16.msrb.mxu3 %v3911_v32 }
 0xc36   :  { %v2420_v52 = vpop.f32.mrf.mxu0 }
 0xc37   :  { %v2424_v39 = vpack.c.bf16 %v2420_v52, %v2420_v52  ;;  %v2367_v41 = vpop.f32.mrf.mxu2 }
 0xc39   :  { %3639 = vmatmul.msk.bf16.vlgmr.msrb.gmra.mxu1 %vm725_vm12, %v2424_v39 }
 0xc3a   :  { %2643 = vmatpush.bf16.msrb.mxu1 %v3912_v40 }
 0xc3e   :  { %v2422_v43 = vpop.f32.mrf.mxu0 }
 0xc3f   :  { %v2468_v44 = vpop.f32.mrf.mxu2 }
 0xc40   :  { %v2472_v45 = vpack.c.bf16 %v2468_v44, %v2468_v44 }
 0xc42   :  { %3645 = vmatmul.msk.bf16.vlgmr.msra.gmra.mxu3 %vm725_vm12, %v2472_v45 }
 0xc43   :  { %2689 = vmatpush.bf16.msra.mxu3 %v3913_v21 }
 0xc47   :  { %v2522_v46 = vpop.f32.mrf.mxu0  ;;  %v2470_v49 = vpop.f32.mrf.mxu2 }
 0xc48   :  { %v2526_v48 = vpack.c.bf16 %v2522_v46, %v2522_v46  ;;  %v3922_v49 = vld [vmem:[%s5117_s13 + $0x74] sm:$0xf0] }
 0xc4a   :  { %3651 = vmatmul.msk.bf16.vlgmr.msra.gmra.mxu1 %vm725_vm12, %v2526_v48  ;;  %v3697_v48 = vld [vmem:[%s5117_s13 + $0x70] sm:$0xf] }
 0xc4b   :  { %2741 = vmatpush.bf16.msra.mxu1 %v3914_v34 }
 0xc4f   :  { %v2524_v28 = vpop.f32.mrf.mxu0 }
 0xc50   :  { %v3921_v28 = vld [vmem:[%s5117_s13 + $0x74] sm:$0xf] }
 0xc55   :  { %v2577_v50 = vpop.f32.mrf.mxu2 }
 0xc56   :  { %v2581_v62 = vpack.c.bf16 %v2577_v50, %v2577_v50  ;;  %v3698_v50 = vor.u32 %v3922_v49, %v3697_v48  ;;  %v3934_v48 = vld [vmem:[%s5119_s15 + $0xd8] sm:$0xff]  ;;  %v3925_v49 = vld [vmem:[%s5119_s15 + $0x90] sm:$0xff] }
 0xc57   :  { %v2628_v7 = vpop.f32.mrf.mxu0 }
 0xc58   :  { %v2632_v51 = vpack.c.bf16 %v2628_v7, %v2628_v7  ;;  %3653 = vmatmul.msk.bf16.vlgmr.msrb.gmra.mxu3 %vm725_vm12, %v2581_v62  ;;  %v3699_v62 = vld [vmem:[%s5117_s13 + $0x78] sm:$0xf0]  ;;  %2875 = vmatpush.bf16.msra.mxu2 %v3698_v50  ;;  %v3670_v50 = vld [vmem:[%s5118_s14 + $0x2] sm:$0x3] }
 0xc59   :  { %v3702_v7 = vor.u32 %v3921_v28, %v3699_v62  ;;  %v3933_v28 = vld [vmem:[%s5119_s15 + $0xd0] sm:$0xff]  ;;  %v3924_v62 = vld [vmem:[%s5119_s15 + $0x88] sm:$0xff] }
 0xc5a   :  { %3655 = vmatmul.msk.bf16.vlgmr.msrb.gmra.mxu1 %vm725_vm12, %v2632_v51  ;;  %v3689_v51 = vld [vmem:[%s5117_s13 + $0x60] sm:$0xf] }
 0xc5b   :  { %2889 = vmatpush.bf16.msrb.mxu3 %v3702_v7  ;;  %v3932_v7 = vld [vmem:[%s5119_s15 + $0xc8] sm:$0xff] }
 0xc5d   :  { %v2579_v53 = vpop.f32.mrf.mxu2 }
 0xc5e   :  { %v3920_v53 = vld [vmem:[%s5117_s13 + $0x64] sm:$0xf0] }
 0xc5f   :  { %v2630_v33 = vpop.f32.mrf.mxu0 }
 0xc60   :  { %v3919_v33 = vld [vmem:[%s5117_s13 + $0x64] sm:$0xf] }
 0xc65   :  { %v2674_v27 = vpop.f32.mrf.mxu2 }
 0xc66   :  { %v2678_v55 = vpack.c.bf16 %v2674_v27, %v2674_v27  ;;  %v3690_v27 = vor.u32 %v3920_v53, %v3689_v51  ;;  %v2824_v51 = vperm.slane %v3670_v50, 0  ;;  %v2825_v53 = vperm.slane %v3670_v50, 1 }
 0xc67   :  { %v2726_v38 = vpop.f32.mrf.mxu0 }
 0xc68   :  { %v2730_v56 = vpack.c.bf16 %v2726_v38, %v2726_v38  ;;  %3657 = vmatmul.msk.bf16.vlgmr.msra.gmra.mxu3 %vm725_vm12, %v2678_v55  ;;  %v3691_v55 = vld [vmem:[%s5117_s13 + $0x68] sm:$0xf0]  ;;  %2876 = vmatpush.bf16.msra.mxu2 %v3690_v27  ;;  %v3931_v27 = vld [vmem:[%s5119_s15 + $0xc0] sm:$0xff] }
 0xc69   :  { %v3694_v38 = vor.u32 %v3919_v33, %v3691_v55  ;;  %v3923_v33 = vld [vmem:[%s5119_s15 + $0x80] sm:$0xff] }
 0xc6a   :  { %3659 = vmatmul.msk.bf16.vlgmr.msra.gmra.mxu1 %vm725_vm12, %v2730_v56  ;;  %v3681_v56 = vld [vmem:[%s5117_s13 + $0x50] sm:$0xf] }
 0xc6b   :  { %2890 = vmatpush.bf16.msrb.mxu3 %v3694_v38 }
 0xc6d   :  { %v2676_v54 = vpop.f32.mrf.mxu2 }
 0xc6e   :  { %v3918_v54 = vld [vmem:[%s5117_s13 + $0x54] sm:$0xf0] }
 0xc6f   :  { %v2728_v57 = vpop.f32.mrf.mxu0 }
 0xc70   :  { %v3917_v57 = vld [vmem:[%s5117_s13 + $0x54] sm:$0xf] }
 0xcb5   :  { %v2388_v58 = vpop.f32.mrf.mxu3 }
 0xcb6   :  { %v2443_v59 = vpop.f32.mrf.mxu1  ;;  %v2392_v8 = vadd.f32 %v2388_v58, %v2346_v9  ;;  %v3682_v58 = vor.u32 %v3918_v54, %v3681_v56 }
 0xcb8   :  { %v2447_v16 = vadd.f32 %v2443_v59, %v2392_v8  ;;  %v3683_v59 = vld [vmem:[%s5117_s13 + $0x58] sm:$0xf0]  ;;  %2877 = vmatpush.bf16.msra.mxu2 %v3682_v58 }
 0xcbd   :  { %v2390_v60 = vpop.f32.mrf.mxu3 }
 0xcbe   :  { %v2445_v61 = vpop.f32.mrf.mxu1  ;;  %v3686_v60 = vor.u32 %v3917_v57, %v3683_v59 }
 0xcbf   :  { %v3673_v61 = vld [vmem:[%s5117_s13 + $0x40] sm:$0xf] }
 0xcc0   :  { %2891 = vmatpush.bf16.msrb.mxu3 %v3686_v60 }
 0xcc5   :  { %v2491_v63 = vpop.f32.mrf.mxu3 }
 0xcc6   :  { %v2495_v18 = vadd.f32 %v2491_v63, %v2447_v16  ;;  %v3916_v63 = vld [vmem:[%s5117_s13 + $0x44] sm:$0xf0] }
 0xcc7   :  { %v2545_v0 = vpop.f32.mrf.mxu1 }
 0xcc8   :  { %v2549_v29 = vadd.f32 %v2545_v0, %v2495_v18  ;;  %v3915_v0 = vld [vmem:[%s5117_s13 + $0x44] sm:$0xf] }
 0xccd   :  { %v2493_v31 = vpop.f32.mrf.mxu3 }
 0xcce   :  { %v3674_v31 = vor.u32 %v3916_v63, %v3673_v61 }
 0xccf   :  { %v2547_v1 = vpop.f32.mrf.mxu1 }
 0xcd0   :  { %v3675_v1 = vld [vmem:[%s5117_s13 + $0x48] sm:$0xf0]  ;;  %2878 = vmatpush.bf16.msra.mxu2 %v3674_v31  ;;  %s4079_s13 = smov [#allocation2]  }
 0xcd1   :  { %s3191_s22 = sshll.u32 %s4079_s13, 4  ;;  %s3192_s22 = int_to_ptr.vmem [resolvable:$true] %s3191_s22 }
 0xcd7   :  { %v2645_v2 = vpop.f32.mrf.mxu1 }
 0xcd8   :  { %v2650_v26 = vrot.slane %v2645_v2, 3  ;;  %v3678_v2 = vor.u32 %v3915_v0, %v3675_v1 }
 0xcda   :  { %2892 = vmatpush.bf16.msrb.mxu3 %v3678_v2 }
 0xcdb   :  { %v2594_v3 = vpop.f32.mrf.mxu3 }
 0xcdc   :  { %v2599_v10 = vrot.slane %v2594_v3, 3 }
 0xcde   :  { %v2601_v13 = vadd.f32 %v2599_v10, %v2346_v9  ;;  %v2602_v15 = vadd.f32 %v2599_v10, %v2347_v11 }
 0xcdf   :  { %v2647_v4 = vpop.f32.mrf.mxu1 }
 0xce0   :  { %v2652_v14 = vadd.f32 %v2650_v26, %v2601_v13  ;;  %v2653_v20 = vadd.f32 %v2650_v26, %v2602_v15 }
 0xce3   :  { %v2596_v6 = vpop.f32.mrf.mxu3 }
 0xce7   :  { %v2743_v12 = vpop.f32.mrf.mxu1 }
 0xce8   :  { %v2748_v22 = vrot.slane %v2743_v12, 3 }
 0xceb   :  { %v2691_v17 = vpop.f32.mrf.mxu3 }
 0xcec   :  { %v2696_v24 = vrot.slane %v2691_v17, 3 }
 0xcee   :  { %v2698_v19 = vadd.f32 %v2696_v24, %v2652_v14  ;;  %v2699_v23 = vadd.f32 %v2696_v24, %v2653_v20  ;;  %v3963_v24 = vld [vmem:[%s5115_s11 + $0x1] ss:$0 sm:$0xff]  ;;  %s3193_s11 = sshll.u32 %s5124_s20, 4  ;;  %s3194_s11 = int_to_ptr.hbm [resolvable:$true] %s3193_s11 }
 0xcef   :  { %v2745_v25 = vpop.f32.mrf.mxu1 }
 0xcf0   :  { %v2750_v42 = vadd.f32 %v2748_v22, %v2698_v19  ;;  %v2751_v30 = vadd.f32 %v2748_v22, %v2699_v23  ;;  %v3964_v23 = vld [vmem:[%s5116_s12 + $0x1] ss:$0 sm:$0xff] }
 0xcf2   :  { %v2760_v32 = vsel %vm576_vm4, %v2751_v30, 0.0  ;;  %v4945_v47 = vsel %vm566_vm1, %v2549_v29, %v2750_v42 }
 0xcf3   :  { %v2693_v40 = vpop.f32.mrf.mxu3  ;;  %2761 = vadd.xlane.f32.xlu2 %v2760_v32  ;;  %v2757_v21 = vsel %vm572_vm3, %v4945_v47, 0.0 }
 0xcf4   :  { %2758 = vadd.xlane.f32.xlu1 %v2757_v21 }
 0xd66   :  { %v2762_v34 = vpop.xlane.xlu2 %2761 }
 0xd67   :  { %v2764_v35 = vmul.f32 %v2762_v34, %v4368_v36  ;;  %v2759_v37 = vpop.xlane.xlu1 %2758 }
 0xd68   :  { %v2763_v52 = vmul.f32 %v2759_v37, %v4368_v36  ;;  %v3938_v37 = vld [vmem:[%s5119_s15 + $0xf8] sm:$0xff] }
 0xd69   :  { %v4951_v39 = vsub.f32 %v2751_v30, %v2764_v35  ;;  %v3930_v35 = vld [vmem:[%s5119_s15 + $0xb8] sm:$0xff]  ;;  %3079 = vmatpush.bf16.msrb.mxu1 %v3938_v37 }
 0xd6a   :  { %v4954_v41 = vsub.f32 %v4945_v47, %v2763_v52  ;;  %3066 = vmatpush.bf16.msra.mxu0 %v3930_v35  ;;  %v3929_v52 = vld [vmem:[%s5119_s15 + $0xb0] sm:$0xff] }
 0xd6b   :  { %v2768_v43 = vmul.f32 %v4951_v39, %v4951_v39 }
 0xd6c   :  { %v2767_v44 = vmul.f32 %v4954_v41, %v4954_v41 }
 0xd6d   :  { %v2772_v45 = vsel %vm576_vm4, %v2768_v43, 0.0  ;;  %v3936_v43 = vld [vmem:[%s5119_s15 + $0xe8] sm:$0xff] }
 0xd6e   :  { %2773 = vadd.xlane.f32.xlu1 %v2772_v45  ;;  %v2769_v46 = vsel %vm572_vm3, %v2767_v44, 0.0  ;;  %3067 = vmatpush.bf16.msra.mxu0 %v3929_v52  ;;  %v3927_v44 = vld [vmem:[%s5119_s15 + $0xa0] sm:$0xff] }
 0xd6f   :  { %2770 = vadd.xlane.f32.xlu0 %v2769_v46  ;;  %v3935_v45 = vld [vmem:[%s5119_s15 + $0xe0] sm:$0xff]  ;;  %v3926_v46 = vld [vmem:[%s5119_s15 + $0x98] sm:$0xff] }
 0xde1   :  { %v2774_v3 = vpop.xlane.xlu1 %2773 }
 0xde2   :  { %v2776_v4 = vmul.f32 %v2774_v3, %v4368_v36  ;;  %v2771_v5 = vpop.xlane.xlu0 %2770 }
 0xde3   :  { %v2775_v6 = vmul.f32 %v2771_v5, %v4368_v36 }
 0xde4   :  { %v2778_v9 = vadd.f32 1e-06, %v2776_v4 }
 0xde5   :  { %v2777_v10 = vadd.f32 1e-06, %v2775_v6 }
 0xde6   :  { %4030 = vrsqrt.f32 %v2778_v9  ;;  %vm2795_vm15 = vweird.f32 %v2778_v9 }
 0xde7   :  { %4032 = vrsqrt.f32 %v2777_v10  ;;  %vm2785_vm2 = vweird.f32 %v2777_v10 }
 0xdec   :  { %v4031_v8 = vpop.eup %4030 }
 0xded   :  { %v4033_v11 = vpop.eup %4032  ;;  %v2790_v12 = vmul.f32 %v4031_v8, %v2778_v9  ;;  %vm2796_vm1 = vweird.f32 %v4031_v8 }
 0xdee   :  { %v2780_v13 = vmul.f32 %v4033_v11, %v2777_v10  ;;  %vm2786_vm12 = vweird.f32 %v4033_v11  ;;  %vm2797_vm5 = vmor %vm2795_vm15, %vm2796_vm1 }
 0xdef   :  { %v2791_v15 = vmul.f32 %v4031_v8, %v2790_v12  ;;  %vm2787_vm6 = vmor %vm2785_vm2, %vm2786_vm12 }
 0xdf0   :  { %v2781_v16 = vmul.f32 %v4033_v11, %v2780_v13 }
 0xdf1   :  { %v2792_v26 = vmul.f32 0.5, %v2791_v15 }
 0xdf2   :  { %v2782_v17 = vmul.f32 0.5, %v2781_v16 }
 0xdf3   :  { %v2793_v18 = vsub.f32 1.5, %v2792_v26 }
 0xdf4   :  { %v2783_v14 = vsub.f32 1.5, %v2782_v17 }
 0xdf5   :  { %v2794_v20 = vmul.f32 %v4031_v8, %v2793_v18 }
 0xdf6   :  { %v2784_v22 = vmul.f32 %v4033_v11, %v2783_v14 }
 0xdf7   :  { %v2798_v19 = vsel %vm2797_vm5, %v4031_v8, %v2794_v20 }
 0xdf8   :  { %v2800_v25 = vmul.f32 %v2798_v19, %v4951_v39  ;;  %v2788_v29 = vsel %vm2787_vm6, %v4033_v11, %v2784_v22  ;;  %v3937_v39 = vld [vmem:[%s5119_s15 + $0xf0] sm:$0xff] }
 0xdf9   :  { %v2799_v42 = vmul.f32 %v2788_v29, %v4954_v41  ;;  %3080 = vmatpush.bf16.msrb.mxu1 %v3937_v39  ;;  %v3928_v41 = vld [vmem:[%s5119_s15 + $0xa8] sm:$0xff] }
 0xdfa   :  { %v2805_v30 = vmul.f32 %v3963_v24, %v2800_v25  ;;  %3068 = vmatpush.bf16.msra.mxu0 %v3928_v41 }
 0xdfb   :  { %v2804_v32 = vmul.f32 %v3963_v24, %v2799_v42 }
 0xdfc   :  { %v2810_v40 = vadd.f32 %v3964_v23, %v2805_v30 }
 0xdfd   :  { %v2809_v21 = vadd.f32 %v3964_v23, %v2804_v32  ;;  %3081 = vmatpush.bf16.msrb.mxu1 %v3936_v43 }
 0xdfe   :  { %3069 = vmatpush.bf16.msra.mxu0 %v3927_v44  ;;  %v3965_v44 = vld [vmem:[%s5120_s16 + $0x1] ss:$0 sm:$0xff] }
 0xdff   :  { %v2820_v34 = vpack.c.bf16 %v2810_v40, %v2809_v21 }
 0xe01   :  { %3703 = vmatmul.msk.bf16.vlgmr.msra.gmra.mxu2 %vm572_vm3, %v2820_v34  ;;  %3704 = vmatmul.msk.bf16.vlgmr.msrb.gmra.mxu3 %vm572_vm3, %v2820_v34 }
 0xe02   :  { %3082 = vmatpush.bf16.msrb.mxu1 %v3935_v45  ;;  %3070 = vmatpush.bf16.msra.mxu0 %v3926_v46 }
 0xe06   :  { %3083 = vmatpush.bf16.msrb.mxu1 %v3934_v48  ;;  %3071 = vmatpush.bf16.msra.mxu0 %v3925_v49 }
 0xe0a   :  { %3084 = vmatpush.bf16.msrb.mxu1 %v3933_v28  ;;  %3072 = vmatpush.bf16.msra.mxu0 %v3924_v62 }
 0xe0e   :  { %3085 = vmatpush.bf16.msrb.mxu1 %v3932_v7  ;;  %3073 = vmatpush.bf16.msra.mxu0 %v3923_v33 }
 0xe12   :  { %3086 = vmatpush.bf16.msrb.mxu1 %v3931_v27 }
 0xe84   :  { %v2880_v55 = vpop.f32.mrf.mxu2  ;;  %v2894_v38 = vpop.f32.mrf.mxu3 }
 0xe85   :  { %v2881_v56 = vadd.f32 %v2880_v55, %v2824_v51  ;;  %v2895_v54 = vadd.f32 %v2894_v38, %v2825_v53  ;;  %v3941_v55 = vld [vmem:[%s5123_s19 + $0x10] sm:$0xff]  ;;  %v3940_v38 = vld [vmem:[%s5123_s19 + $0x8] sm:$0xff] }
 0xe87   :  { %v2903_v57 = vmul.f32 0.044715, %v2881_v56  ;;  %v2904_v58 = vmul.f32 0.044715, %v2895_v54  ;;  %v2899_v23 = vmul.f32 0.5, %v2881_v56  ;;  %v2900_v42 = vmul.f32 0.5, %v2895_v54 }
 0xe89   :  { %v2907_v59 = vmul.f32 %v2903_v57, %v2881_v56  ;;  %v2908_v60 = vmul.f32 %v2904_v58, %v2895_v54 }
 0xe8b   :  { %v2911_v61 = vmul.f32 %v2907_v59, %v2881_v56  ;;  %v2912_v63 = vmul.f32 %v2908_v60, %v2895_v54 }
 0xe8c   :  { %v2882_v0 = vpop.f32.mrf.mxu2  ;;  %v2896_v31 = vpop.f32.mrf.mxu3 }
 0xe8d   :  { %v2883_v1 = vadd.f32 %v2882_v0, %v2824_v51  ;;  %v2897_v2 = vadd.f32 %v2896_v31, %v2825_v53  ;;  %v2915_v3 = vadd.f32 %v2911_v61, %v2881_v56  ;;  %v2916_v4 = vadd.f32 %v2912_v63, %v2895_v54  ;;  %v3939_v56 = vld [vmem:[%s5123_s19] sm:$0xff] }
 0xe8f   :  { %v2905_v5 = vmul.f32 0.044715, %v2883_v1  ;;  %v2906_v6 = vmul.f32 0.044715, %v2897_v2  ;;  %v2919_v9 = vmul.f32 0.7978846, %v2915_v3 }
 0xe90   :  { %v2920_v11 = vmul.f32 0.7978846, %v2916_v4  ;;  %v2901_v25 = vmul.f32 0.5, %v2883_v1  ;;  %v2902_v30 = vmul.f32 0.5, %v2897_v2 }
 0xe91   :  { %v2909_v10 = vmul.f32 %v2905_v5, %v2883_v1  ;;  %v2910_v8 = vmul.f32 %v2906_v6, %v2897_v2  ;;  %4034 = vtanh.f32 %v2919_v9 }
 0xe92   :  { %4036 = vtanh.f32 %v2920_v11 }
 0xe93   :  { %v2913_v12 = vmul.f32 %v2909_v10, %v2883_v1  ;;  %v2914_v13 = vmul.f32 %v2910_v8, %v2897_v2 }
 0xe95   :  { %v2917_v15 = vadd.f32 %v2913_v12, %v2883_v1  ;;  %v2918_v16 = vadd.f32 %v2914_v13, %v2897_v2  ;;  %v3966_v1 = vld [vmem:[%s5121_s17] ss:$0 sm:$0xff] }
 0xe97   :  { %v2921_v26 = vmul.f32 0.7978846, %v2917_v15  ;;  %v2922_v17 = vmul.f32 0.7978846, %v2918_v16  ;;  %v4035_v18 = vpop.eup %4034 }
 0xe98   :  { %v4037_v14 = vpop.eup %4036  ;;  %v2927_v20 = vadd.f32 1.0, %v4035_v18 }
 0xe99   :  { %4038 = vtanh.f32 %v2921_v26  ;;  %v2928_v22 = vadd.f32 1.0, %v4037_v14 }
 0xe9a   :  { %4040 = vtanh.f32 %v2922_v17  ;;  %v2931_v40 = vmul.f32 %v2927_v20, %v2899_v23 }
 0xe9b   :  { %v2932_v34 = vmul.f32 %v2928_v22, %v2900_v42 }
 0xe9f   :  { %v4039_v24 = vpop.eup %4038 }
 0xea0   :  { %v4041_v19 = vpop.eup %4040  ;;  %v2929_v29 = vadd.f32 1.0, %v4039_v24 }
 0xea1   :  { %v2930_v32 = vadd.f32 1.0, %v4041_v19 }
 0xea2   :  { %v2933_v21 = vmul.f32 %v2929_v29, %v2901_v25 }
 0xea3   :  { %v2934_v35 = vmul.f32 %v2930_v32, %v2902_v30 }
 0xea4   :  { %v2968_v37 = vpack.c.bf16 %v2933_v21, %v2931_v40 }
 0xea5   :  { %v2969_v52 = vpack.c.bf16 %v2934_v35, %v2932_v34 }
 0xea6   :  { %3074 = vmatmul.bf16.vlgmr.msra.gmra.mxu0 %v2968_v37 }
 0xea7   :  { %3087 = vmatmul.bf16.vlgmr.msrb.gmra.mxu1 %v2969_v52 }
 0xf23   :  { %v3075_v39 = vpop.f32.mrf.mxu0 }
 0xf24   :  { %v3088_v41 = vpop.f32.mrf.mxu1 }
 0xf25   :  { %v3089_v43 = vadd.f32 %v3088_v41, %v3075_v39 }
 0xf27   :  { %v3092_v45 = vadd.f32 %v3089_v43, %v4945_v47  ;;  %v3942_v47 = vld [vmem:[%s5123_s19 + $0x18] sm:$0xff] }
 0xf28   :  { %3175 = vmatpush.bf16.msrb.mxu2 %v3942_v47 }
 0xf29   :  { %v3098_v46 = vadd.f32 %v3965_v44, %v3092_v45 }
 0xf2b   :  { %v3077_v48 = vpop.f32.mrf.mxu0  ;;  %v3100_v49 = vrot.slane %v3098_v46, 4 }
 0xf2c   :  { %v3090_v28 = vpop.f32.mrf.mxu1  ;;  %3176 = vmatpush.bf16.msrb.mxu2 %v3941_v55 }
 0xf2d   :  { %v3102_v50 = vsel %vm5149_vm0, %v3098_v46, %v3100_v49 }
 0xf2e   :  { %v3105_v62 = vsel %vm576_vm4, %v3102_v50, 0.0 }
 0xf2f   :  { %3106 = vadd.xlane.f32.xlu2 %v3105_v62 }
 0xf30   :  { %3177 = vmatpush.bf16.msrb.mxu2 %v3940_v38 }
 0xf34   :  { %3178 = vmatpush.bf16.msrb.mxu2 %v3939_v56 }
 0xfa2   :  { %v3107_v7 = vpop.xlane.xlu2 %3106 }
 0xfa3   :  { %v3108_v51 = vmul.f32 %v3107_v7, %v4368_v36 }
 0xfa5   :  { %v3109_v53 = vsub.f32 %v3102_v50, %v3108_v51 }
 0xfa7   :  { %v3110_v33 = vmul.f32 %v3109_v53, %v3109_v53 }
 0xfa9   :  { %v3111_v27 = vsel %vm576_vm4, %v3110_v33, 0.0 }
 0xfaa   :  { %3112 = vadd.xlane.f32.xlu0 %v3111_v27 }
0x101d   :  { %v3113_v54 = vpop.xlane.xlu0 %3112 }
0x101e   :  { %v3114_v57 = vmul.f32 %v3113_v54, %v4368_v36  ;;  %v3967_v36 = vld [vmem:[%s5122_s18] ss:$0 sm:$0xff] }
0x1020   :  { %v3115_v58 = vadd.f32 1e-06, %v3114_v57 }
0x1022   :  { %4042 = vrsqrt.f32 %v3115_v58  ;;  %vm3122_vm14 = vweird.f32 %v3115_v58 }
0x1028   :  { %v4043_v59 = vpop.eup %4042 }
0x1029   :  { %v3117_v60 = vmul.f32 %v4043_v59, %v3115_v58  ;;  %vm3123_vm4 = vweird.f32 %v4043_v59 }
0x102a   :  { %vm3124_vm7 = vmor %vm3122_vm14, %vm3123_vm4 }
0x102b   :  { %v3118_v61 = vmul.f32 %v4043_v59, %v3117_v60 }
0x102d   :  { %v3119_v63 = vmul.f32 0.5, %v3118_v61 }
0x102f   :  { %v3120_v0 = vsub.f32 1.5, %v3119_v63 }
0x1031   :  { %v3121_v31 = vmul.f32 %v4043_v59, %v3120_v0 }
0x1033   :  { %v3125_v2 = vsel %vm3124_vm7, %v4043_v59, %v3121_v31 }
0x1034   :  { %v3126_v3 = vmul.f32 %v3125_v2, %v3109_v53 }
0x1036   :  { %v3130_v4 = vmul.f32 %v3966_v1, %v3126_v3 }
0x1038   :  { %v3134_v5 = vadd.f32 %v3967_v36, %v3130_v4 }
0x103a   :  { %v3143_v6 = vpack.c.bf16 %v3134_v5, %v3134_v5 }
0x103c   :  { %3818 = vmatmul.msk.bf16.vlgmr.msrb.gmra.mxu2 %vm572_vm3, %v3143_v6 }
0x10bf   :  { %v3180_v9 = vpop.f32.mrf.mxu2 }
0x10c0   :  { %3185 = vst.msk [vmem:[#allocation2] sm:$0x3] %vm3184_vm8, %v3180_v9 }
0x10c1   :  { %3196 = dma.vmem_to_hbm [thread:$0]  %s3192_s22, 32, %s3194_s11, [#allocation3]  }
0x10c7   :  { %v3182_v10 = vpop.f32.mrf.mxu2 }
0x10c8   :  { %4068 = dma.done.wait [#allocation3], 32  }
0x10c9   :  { %4069 = vsyncadd [#allocation3], 4294967264 }
0x10ca   :  { %3201 = vsyncpa [#allocation3], 1 }

</bundles_post_ra>
